<compile_context>
chip_gen: v5e
topology: v5e:2x2
jax: 0.10.0
libtpu: 0.0.40
codegen_flags: <defaults>
</compile_context>

<pallas_src>
import functools
import math

import jax
import jax.numpy as jnp
import numpy as np
from jax.experimental import pallas as pl
from jax.experimental.pallas import tpu as pltpu


def _patch_embed_kernel(x_ref, band_ref, bias_ref, o_ref, *, g, h, w, e, inv_p):
    # x_ref:    (G, H+2, (W+2)*C) bf16  padded input rows for the G images of this block
    # band_ref: (3, (W+2)*C, W*E) bf16  banded conv weight, one matrix per kernel row dh
    # bias_ref: (1, W*E)          f32   conv bias tiled across the W output columns
    # o_ref:    (G, E)                  pooled embeddings for the G images of this block
    wc2 = x_ref.shape[2]

    # Conv as 3 bf16 MXU matmuls with f32 accumulation (one per kernel row dh).
    # x_ref[:, dh:dh+h, :] are exactly the padded rows feeding output row h for that dh.
    def tap(dh):
        rows = x_ref[:, dh:dh + h, :].reshape(g * h, wc2)   # fold images into sublanes
        return jnp.dot(rows, band_ref[dh], preferred_element_type=jnp.float32)

    acc = tap(0) + tap(1) + tap(2)                          # (G*H, W*E) f32 pre-activation
    acc = jnp.maximum(acc + bias_ref[...], 0.0)             # bias + ReLU (f32, VPU)

    # Average pool.  Over w: add the W lane-aligned E-wide chunks (no lane reshape).
    pooled_w = acc[:, 0:e]
    for wi in range(1, w):
        pooled_w = pooled_w + acc[:, wi * e:(wi + 1) * e]   # (G*H, E)

    # Over h: unfold the sublane fold and reduce.
    # TODO(synk): for H % 8 != 0 the fold/unfold reshapes may force relayout copies;
    # pad H up to a multiple of 8 in the wrapper if that case ever matters.
    pooled = jnp.sum(pooled_w.reshape(g, h, e), axis=1) * inv_p   # (G, E)
    o_ref[...] = pooled.astype(o_ref.dtype)


def _round_up(x, m):
    return -(-x // m) * m


def _choose_group_size(bn, h, w, c, e):
    """Images per grid step (G), with honest VMEM accounting.

    Working set per step (tile-padded bytes):
      2x double-buffered bf16 input block
      + ~2x the f32 (G*H, W*E) conv intermediate (acc + ReLU'd copy)
      + 2x the f32 (G, E) output block
      + the resident banded weight / tiled bias (counted double-buffered to be safe).
    Budgeted against 12 MiB so it fits the *scoped* VMEM defaults on every chip
    (16 MiB v5e, 32 MiB v6e/v7x) without a vmem_limit_bytes override.  The f32
    intermediate is additionally capped at ~2 MiB to limit vreg/VMEM churn.
    """
    wc2 = (w + 2) * c
    we = w * e
    in_img = _round_up(h + 2, 16) * _round_up(wc2, 128) * 2          # bf16 input rows
    acc_img = _round_up(h, 8) * _round_up(we, 128) * 4               # f32 pre-activation
    out_img = _round_up(e, 128) * 4                                  # f32 output row
    resident = 2 * (3 * _round_up(wc2, 16) * _round_up(we, 128) * 2  # banded weight
                    + 8 * _round_up(we, 128) * 4)                    # tiled bias
    per_img = 2 * in_img + 2 * acc_img + 2 * out_img
    budget = 12 * 1024 * 1024
    g_cap = max(1, min((budget - resident) // per_img,
                       (2 * 1024 * 1024) // acc_img))

    # Candidate block sizes: multiples of 8 dividing BN (sublane-aligned output blocks)
    # plus BN itself (a full-dim block is always legal).
    cands = [d for d in range(8, bn + 1, 8) if bn % d == 0]
    if bn not in cands:
        cands.append(bn)
    fitting = [d for d in cands if d <= g_cap] or [min(cands)]

    multi = [d for d in fitting if bn // d >= 4]
    if multi:
        # Large problem: >=4 steps -> steady-state input prefetch on 1-TC chips and
        # >=2 steps per TensorCore on v7x.
        return max(multi)
    if bn * h * w <= 4096 and bn in fitting:
        # Tiny problem: a single step minimizes the ~0.35us/step fixed overhead
        # (leaves one v7x core idle, but the whole kernel is only a few us).
        return bn
    return max(fitting)


def patch_embedder(patches, w_conv, b_conv):
    """patches: (B, N, C, H, W) f32; w_conv: (E, C, 3, 3); b_conv: (E,)  ->  (B, N, E)."""
    B, N, C, H, Wd = patches.shape
    E = w_conv.shape[0]
    BN = B * N
    P = H * Wd
    WC2 = (Wd + 2) * C
    WE = Wd * E

    # ---- glue: cheap data movement only, no 9x inflation -------------------------
    # NCHW -> NHWC, zero-pad H and W by 1, flatten (W+2, C) into one "row" axis.
    x = patches.reshape(BN, C, H, Wd).transpose(0, 2, 3, 1)          # (BN, H, W, C)
    x = jnp.pad(x, ((0, 0), (1, 1), (1, 1), (0, 0)))                 # (BN, H+2, W+2, C)
    x = x.reshape(BN, H + 2, WC2).astype(jnp.bfloat16)               # (BN, H+2, (W+2)*C)

    # Banded (Toeplitz) conv weight: band[dh, (w+dw)*C + c, w*E + e] = w_conv[e, c, dh, dw].
    kmat = jnp.transpose(w_conv, (2, 3, 1, 0)).reshape(3, 3 * C, E)  # (dh, dw*C+c, e)
    place = np.zeros((WC2, Wd, 3 * C), np.float32)                   # static 0/1 placement
    for wi in range(Wd):
        place[wi * C:wi * C + 3 * C, wi, :] = np.eye(3 * C, dtype=np.float32)
    band = jnp.einsum("jwm,kme->kjwe", jnp.asarray(place), kmat.astype(jnp.float32))
    band = band.reshape(3, WC2, WE).astype(jnp.bfloat16)

    bias = jnp.tile(b_conv.astype(jnp.float32), Wd).reshape(1, WE)   # bias[0, w*E+e] = b[e]

    G = _choose_group_size(BN, H, Wd, C, E)
    num_blocks = BN // G

    out = pl.pallas_call(
        functools.partial(_patch_embed_kernel, g=G, h=H, w=Wd, e=E, inv_p=1.0 / P),
        out_shape=jax.ShapeDtypeStruct((BN, E), patches.dtype),
        grid_spec=pltpu.PrefetchScalarGridSpec(
            num_scalar_prefetch=0,
            grid=(num_blocks,),
            in_specs=[
                pl.BlockSpec((G, H + 2, WC2), lambda i: (i, 0, 0)),
                # Constant index_maps -> grid-invariant blocks, kept resident in VMEM.
                # (pipeline_mode=pl.Buffered(1) could force single-buffering if C/E ever
                #  grow large enough for a redundant second buffer to matter.)
                pl.BlockSpec((3, WC2, WE), lambda i: (0, 0, 0)),
                pl.BlockSpec((1, WE), lambda i: (0, 0)),
            ],
            out_specs=pl.BlockSpec((G, E), lambda i: (i, 0)),
        ),
        compiler_params=pltpu.CompilerParams(
            # _choose_group_size keeps the working set under 12 MiB, so the scoped VMEM
            # default suffices on v5e/v6e/v7x; raise vmem_limit_bytes here if that
            # budget is ever increased.
            dimension_semantics=("parallel",),
        ),
    )(x, band, bias)

    return out.reshape(B, N, E)


def _reference(patches, w_conv, b_conv):
    B, N, C, H, Wd = patches.shape
    E = w_conv.shape[0]
    x = patches.reshape(B * N, C, H, Wd)
    y = jax.lax.conv_general_dilated(
        x, w_conv, window_strides=(1, 1), padding="SAME",
        dimension_numbers=("NCHW", "OIHW", "NCHW"),
        precision=jax.lax.Precision.HIGHEST,
    )
    y = jnp.maximum(y + b_conv[None, :, None, None], 0.0)
    return jnp.mean(y, axis=(2, 3)).reshape(B, N, E)


if __name__ == "__main__":
    # Module defaults: in_channels=3, embed_dim=128; small patch grid.
    B, N, C, H, Wd, E = 2, 8, 3, 8, 8, 128

    key = jax.random.PRNGKey(0)
    kx, kw, kb = jax.random.split(key, 3)

    # Deterministic Conv2d-style init (kaiming-uniform bounds).
    fan_in = C * 3 * 3
    bound = 1.0 / math.sqrt(fan_in)
    w_conv = jax.random.uniform(kw, (E, C, 3, 3), jnp.float32, -bound, bound)
    b_conv = jax.random.uniform(kb, (E,), jnp.float32, -bound, bound)

    patches = jax.random.normal(kx, (B, N, C, H, Wd), jnp.float32)

    embed = jax.jit(patch_embedder)
    out = jax.block_until_ready(embed(patches, w_conv, b_conv))
    ref = jax.block_until_ready(_reference(patches, w_conv, b_conv))

    assert out.shape == (B, N, E), out.shape
    np.testing.assert_allclose(np.asarray(out), np.asarray(ref), atol=2e-2, rtol=2e-2)

    print("KERNEL_OK")
</pallas_src>

<mosaic_0001>
module attributes {stable_mosaic.version = 11 : i64} {
  func.func @_patch_embed_kernel(%arg0: i32, %arg1: memref<16x10x30xbf16, #tpu.memory_space<vmem>>, %arg2: memref<3x30x1024xbf16, #tpu.memory_space<vmem>>, %arg3: memref<1x1024xf32, #tpu.memory_space<vmem>>, %arg4: memref<16x128xf32, #tpu.memory_space<vmem>>) attributes {dimension_semantics = [#tpu.dimension_semantics<parallel>], iteration_bounds = array<i64: 1>, scalar_prefetch = 0 : i64, scratch_operands = 0 : i64, tpu.core_type = #tpu.core_type<tc>, window_params = [{transform_indices = @transform_0, window_bounds = array<i64: 16, 10, 30>}, {pipeline_mode = #tpu.pipeline_mode<synchronous>, transform_indices = @transform_1, window_bounds = array<i64: 3, 30, 1024>}, {pipeline_mode = #tpu.pipeline_mode<synchronous>, transform_indices = @transform_2, window_bounds = array<i64: 1, 1024>}, {transform_indices = @transform_3, window_bounds = array<i64: 16, 128>}]} {
    %c0 = arith.constant 0 : index
    %c0_0 = arith.constant 0 : index
    %c0_1 = arith.constant 0 : index
    %0 = vector.load %arg1[%c0, %c0_0, %c0_1] : memref<16x10x30xbf16, #tpu.memory_space<vmem>>, vector<16x8x30xbf16>
    %1 = vector.shape_cast %0 : vector<16x8x30xbf16> to vector<128x30xbf16>
    %c0_2 = arith.constant 0 : index
    %c0_3 = arith.constant 0 : index
    %c0_4 = arith.constant 0 : index
    %2 = vector.load %arg2[%c0_2, %c0_3, %c0_4] : memref<3x30x1024xbf16, #tpu.memory_space<vmem>>, vector<1x30x1024xbf16>
    %3 = vector.shape_cast %2 : vector<1x30x1024xbf16> to vector<30x1024xbf16>
    %cst = arith.constant dense<0.000000e+00> : vector<128x1024xf32>
    %4 = tpu.matmul %1, %3, %cst {dimension_numbers = #tpu.dot_dimension_numbers<[1], [0], [0], [1], [0, 0, 1, 1], [], []>} : vector<128x30xbf16>, vector<30x1024xbf16>, vector<128x1024xf32> -> vector<128x1024xf32>
    %c0_5 = arith.constant 0 : index
    %c1 = arith.constant 1 : index
    %c0_6 = arith.constant 0 : index
    %5 = vector.load %arg1[%c0_5, %c1, %c0_6] : memref<16x10x30xbf16, #tpu.memory_space<vmem>>, vector<16x8x30xbf16>
    %6 = vector.shape_cast %5 : vector<16x8x30xbf16> to vector<128x30xbf16>
    %c1_7 = arith.constant 1 : index
    %c0_8 = arith.constant 0 : index
    %c0_9 = arith.constant 0 : index
    %7 = vector.load %arg2[%c1_7, %c0_8, %c0_9] : memref<3x30x1024xbf16, #tpu.memory_space<vmem>>, vector<1x30x1024xbf16>
    %8 = vector.shape_cast %7 : vector<1x30x1024xbf16> to vector<30x1024xbf16>
    %cst_10 = arith.constant dense<0.000000e+00> : vector<128x1024xf32>
    %9 = tpu.matmul %6, %8, %cst_10 {dimension_numbers = #tpu.dot_dimension_numbers<[1], [0], [0], [1], [0, 0, 1, 1], [], []>} : vector<128x30xbf16>, vector<30x1024xbf16>, vector<128x1024xf32> -> vector<128x1024xf32>
    %10 = arith.addf %4, %9 : vector<128x1024xf32>
    %c0_11 = arith.constant 0 : index
    %c2 = arith.constant 2 : index
    %c0_12 = arith.constant 0 : index
    %11 = vector.load %arg1[%c0_11, %c2, %c0_12] : memref<16x10x30xbf16, #tpu.memory_space<vmem>>, vector<16x8x30xbf16>
    %12 = vector.shape_cast %11 : vector<16x8x30xbf16> to vector<128x30xbf16>
    %c2_13 = arith.constant 2 : index
    %c0_14 = arith.constant 0 : index
    %c0_15 = arith.constant 0 : index
    %13 = vector.load %arg2[%c2_13, %c0_14, %c0_15] : memref<3x30x1024xbf16, #tpu.memory_space<vmem>>, vector<1x30x1024xbf16>
    %14 = vector.shape_cast %13 : vector<1x30x1024xbf16> to vector<30x1024xbf16>
    %cst_16 = arith.constant dense<0.000000e+00> : vector<128x1024xf32>
    %15 = tpu.matmul %12, %14, %cst_16 {dimension_numbers = #tpu.dot_dimension_numbers<[1], [0], [0], [1], [0, 0, 1, 1], [], []>} : vector<128x30xbf16>, vector<30x1024xbf16>, vector<128x1024xf32> -> vector<128x1024xf32>
    %16 = arith.addf %10, %15 : vector<128x1024xf32>
    %c0_17 = arith.constant 0 : index
    %c0_18 = arith.constant 0 : index
    %17 = vector.load %arg3[%c0_17, %c0_18] : memref<1x1024xf32, #tpu.memory_space<vmem>>, vector<1x1024xf32>
    %18 = vector.broadcast %17 : vector<1x1024xf32> to vector<128x1024xf32>
    %19 = arith.addf %16, %18 : vector<128x1024xf32>
    %cst_19 = arith.constant 0.000000e+00 : f32
    %20 = vector.broadcast %cst_19 : f32 to vector<128x1024xf32>
    %21 = arith.maximumf %19, %20 : vector<128x1024xf32>
    %22 = vector.extract_strided_slice %21 {offsets = [0, 0], sizes = [128, 128], strides = [1, 1]} : vector<128x1024xf32> to vector<128x128xf32>
    %23 = vector.extract_strided_slice %21 {offsets = [0, 128], sizes = [128, 128], strides = [1, 1]} : vector<128x1024xf32> to vector<128x128xf32>
    %24 = arith.addf %22, %23 : vector<128x128xf32>
    %25 = vector.extract_strided_slice %21 {offsets = [0, 256], sizes = [128, 128], strides = [1, 1]} : vector<128x1024xf32> to vector<128x128xf32>
    %26 = arith.addf %24, %25 : vector<128x128xf32>
    %27 = vector.extract_strided_slice %21 {offsets = [0, 384], sizes = [128, 128], strides = [1, 1]} : vector<128x1024xf32> to vector<128x128xf32>
    %28 = arith.addf %26, %27 : vector<128x128xf32>
    %29 = vector.extract_strided_slice %21 {offsets = [0, 512], sizes = [128, 128], strides = [1, 1]} : vector<128x1024xf32> to vector<128x128xf32>
    %30 = arith.addf %28, %29 : vector<128x128xf32>
    %31 = vector.extract_strided_slice %21 {offsets = [0, 640], sizes = [128, 128], strides = [1, 1]} : vector<128x1024xf32> to vector<128x128xf32>
    %32 = arith.addf %30, %31 : vector<128x128xf32>
    %33 = vector.extract_strided_slice %21 {offsets = [0, 768], sizes = [128, 128], strides = [1, 1]} : vector<128x1024xf32> to vector<128x128xf32>
    %34 = arith.addf %32, %33 : vector<128x128xf32>
    %35 = vector.extract_strided_slice %21 {offsets = [0, 896], sizes = [128, 128], strides = [1, 1]} : vector<128x1024xf32> to vector<128x128xf32>
    %36 = arith.addf %34, %35 : vector<128x128xf32>
    %37 = vector.shape_cast %36 : vector<128x128xf32> to vector<16x8x128xf32>
    %cst_20 = arith.constant dense<0.000000e+00> : vector<16x128xf32>
    %38 = vector.multi_reduction <add>, %37, %cst_20 [1] : vector<16x8x128xf32> to vector<16x128xf32>
    %cst_21 = arith.constant 1.562500e-02 : f32
    %39 = vector.broadcast %cst_21 : f32 to vector<16x128xf32>
    %40 = arith.mulf %38, %39 : vector<16x128xf32>
    %c0_22 = arith.constant 0 : index
    %c0_23 = arith.constant 0 : index
    %41 = vector.load %arg4[%c0_22, %c0_23] : memref<16x128xf32, #tpu.memory_space<vmem>>, vector<16x128xf32>
    tpu.vector_store %arg4[%c0_22, %c0_23], %40 {strides = array<i32>} : memref<16x128xf32, #tpu.memory_space<vmem>>, vector<16x128xf32>,
    return
  }
  func.func @transform_0(%arg0: i32) -> (i32, i32, i32) {
    %c0_i32 = arith.constant 0 : i32
    %c0_i32_0 = arith.constant 0 : i32
    %c0_i32_1 = arith.constant 0 : i32
    return %arg0, %c0_i32, %c0_i32_0 : i32, i32, i32
  }
  func.func @transform_1(%arg0: i32) -> (i32, i32, i32) {
    %c0_i32 = arith.constant 0 : i32
    %c0_i32_0 = arith.constant 0 : i32
    %c0_i32_1 = arith.constant 0 : i32
    %c0_i32_2 = arith.constant 0 : i32
    return %c0_i32, %c0_i32_0, %c0_i32_1 : i32, i32, i32
  }
  func.func @transform_2(%arg0: i32) -> (i32, i32) {
    %c0_i32 = arith.constant 0 : i32
    %c0_i32_0 = arith.constant 0 : i32
    %c0_i32_1 = arith.constant 0 : i32
    return %c0_i32, %c0_i32_0 : i32, i32
  }
  func.func @transform_3(%arg0: i32) -> (i32, i32) {
    %c0_i32 = arith.constant 0 : i32
    %c0_i32_0 = arith.constant 0 : i32
    return %arg0, %c0_i32 : i32, i32
  }
}

</mosaic_0001>

<bundles_post_ra>
// kernel: tile.8
= control target key start
LH: loop header
LB: loop body
LE: loop exit
PB: predicated region body
PF: predicated region fallthrough
CT: control target
= control target key end

     0   :  { %s22_s0 = inlined_call_operand.vmem [shape: f32[128], index: 0, kind: input, shape index: {}]   ;;  %s23_s1 = inlined_call_operand.vmem [shape: f32[8,128], index: 1, kind: output, shape index: {}]  }
   0x1   :  { %v4_v0 = vld [vmem:[%s22_s0] ss:$0 sm:$0xff] }
   0x2   :  { %5 = vst [vmem:[%s23_s1] sm:$0xff] %v4_v0 }

// kernel: patch_embedder.1
= control target key start
LH: loop header
LB: loop body
LE: loop exit
PB: predicated region body
PF: predicated region fallthrough
CT: control target
= control target key end

     0   :  { %vm429_vm0 = vcmask 1046528   ;;  %vm64_vm1 = vsmask.f32 3328  ;;  %vm65_vm2 = vsmask.f32 7440  ;;  %vm404_vm4 = vcmask 244736   ;;  %s5387_s0 = inlined_call_operand.vmem [shape: bf16[16,10,30], index: 0, kind: input, shape index: {}]   ;;  %s5388_s1 = inlined_call_operand.vmem [shape: bf16[3,30,1024], index: 1, kind: input, shape index: {}]   ;;  %s5389_s2 = inlined_call_operand.vmem [shape: f32[1,1024], index: 2, kind: input, shape index: {}]   ;;  %s5390_s3 = inlined_call_operand.hbm [shape: f32[16,128], index: 3, kind: output, shape index: {}]  }
   0x1   :  { %v2801_v0 = vld [vmem:[%s5388_s1 + $0xc0] sm:$0xf]  ;;  %v3247_v3 = vld [vmem:[%s5388_s1 + $0xc4] sm:$0xf]  ;;  %v2809_v5 = vld [vmem:[%s5388_s1 + $0xc8] sm:$0xf] }
   0x2   :  { %v3251_v1 = vld [vmem:[%s5388_s1 + $0xdc] sm:$0x70]  ;;  %v2803_v4 = vld [vmem:[%s5388_s1 + $0xe0] sm:$0x70]  ;;  %v3252_v7 = vld [vmem:[%s5388_s1 + $0xe4] sm:$0x70] }
   0x3   :  { %v2802_v2 = vor.u32 %v3251_v1, %v2801_v0  ;;  %v2806_v6 = vor.u32 %v3247_v3, %v2803_v4  ;;  %v3248_v8 = vld [vmem:[%s5388_s1 + $0xcc] sm:$0xf]  ;;  %v2810_v11 = vor.u32 %v3252_v7, %v2809_v5  ;;  %v2769_v13 = vld [vmem:[%s5388_s1 + $0x80] sm:$0xf]  ;;  %v3239_v17 = vld [vmem:[%s5388_s1 + $0x84] sm:$0xf] }
   0x4   :  { %v2811_v9 = vld [vmem:[%s5388_s1 + $0xe8] sm:$0x70]  ;;  %v3243_v14 = vld [vmem:[%s5388_s1 + $0x9c] sm:$0xf0]  ;;  %v2771_v18 = vld [vmem:[%s5388_s1 + $0xa0] sm:$0xf0] }
   0x5   :  { %v431_v10 = vsel %vm429_vm0, %v2802_v2, 0  ;;  %v2814_v12 = vor.u32 %v3248_v8, %v2811_v9  ;;  %v434_v15 = vsel %vm429_vm0, %v2806_v6, 0  ;;  %v2770_v16 = vor.u32 %v3243_v14, %v2769_v13  ;;  %v2777_v22 = vld [vmem:[%s5388_s1 + $0x88] sm:$0xf]  ;;  %v3240_v25 = vld [vmem:[%s5388_s1 + $0x8c] sm:$0xf]  ;;  %vm3414_vm3 = vmor %vm64_vm1, %vm65_vm2 }
   0x6   :  { %460 = vmatpush.bf16.msra.mxu0 %v431_v10  ;;  %509 = vmatpush.bf16.msra.mxu1 %v434_v15  ;;  %v437_v19 = vsel %vm429_vm0, %v2810_v11, 0  ;;  %v2774_v21 = vor.u32 %v3239_v17, %v2771_v18  ;;  %v3244_v23 = vld [vmem:[%s5388_s1 + $0xa4] sm:$0xf0]  ;;  %v2779_v26 = vld [vmem:[%s5388_s1 + $0xa8] sm:$0xf0] }
   0x7   :  { %v440_v20 = vsel %vm429_vm0, %v2814_v12, 0  ;;  %558 = vmatpush.bf16.msra.mxu2 %v437_v19  ;;  %v2778_v24 = vor.u32 %v3244_v23, %v2777_v22  ;;  %v16_v27 = vld [vmem:[%s5387_s0] sm:$0xf]  ;;  %v2782_v28 = vor.u32 %v3240_v25, %v2779_v26  ;;  %v17_v29 = vld [vmem:[%s5387_s0 + $0x8] sm:$0xf] }
   0x8   :  { %607 = vmatpush.bf16.msra.mxu3 %v440_v20  ;;  %v48_v30 = vld [vmem:[%s5387_s0 + $0x4] sm:$0x1]  ;;  %v49_v31 = vld [vmem:[%s5387_s0 + $0xc] sm:$0x1]  ;;  %v68_v32 = vshrl.u32 %v16_v27, 16  ;;  %v71_v33 = vshll.u32 %v16_v27, 16 }
   0x9   :  { %v77_v34 = vshll.u32 %v48_v30, 16  ;;  %v82_v35 = vshrl.u32 %v17_v29, 16  ;;  %v85_v36 = vshll.u32 %v17_v29, 16  ;;  %v91_v37 = vshll.u32 %v49_v31, 16  ;;  %v2825_v38 = vld [vmem:[%s5388_s1 + $0xd8] sm:$0xf] }
   0xa   :  { %461 = vmatpush.bf16.msra.mxu0 %v2770_v16  ;;  %510 = vmatpush.bf16.msra.mxu1 %v2774_v21  ;;  %v70_v39 = vrot.slane %v68_v32, 4  ;;  %v73_v40 = vrot.slane %v71_v33, 5  ;;  %v3254_v41 = vld [vmem:[%s5388_s1 + $0xf4] sm:$0x70]  ;;  %v2817_v42 = vld [vmem:[%s5388_s1 + $0xd0] sm:$0xf] }
   0xb   :  { %559 = vmatpush.bf16.msra.mxu2 %v2778_v24  ;;  %v79_v44 = vrot.slane %v77_v34, 5  ;;  %v84_v45 = vrot.slane %v82_v35, 4  ;;  %v87_v46 = vrot.slane %v85_v36, 5  ;;  %v93_v47 = vrot.slane %v91_v37, 5  ;;  %v3253_v48 = vld [vmem:[%s5388_s1 + $0xec] sm:$0x70] }
   0xc   :  { %608 = vmatpush.bf16.msra.mxu3 %v2782_v28  ;;  %v74_v49 = vor.u32 %v73_v40, %v70_v39  ;;  %v2826_v50 = vor.u32 %v3254_v41, %v2825_v38  ;;  %v2818_v51 = vor.u32 %v3253_v48, %v2817_v42  ;;  %v3250_v52 = vld [vmem:[%s5388_s1 + $0xdc] sm:$0xf]  ;;  %v3249_v54 = vld [vmem:[%s5388_s1 + $0xd4] sm:$0xf]  ;;  %v18_v58 = vld [vmem:[%s5387_s0 + $0x10] sm:$0xf] }
   0xd   :  { %v2827_v53 = vld [vmem:[%s5388_s1 + $0xf8] sm:$0x70]  ;;  %v88_v55 = vor.u32 %v87_v46, %v84_v45  ;;  %v2819_v57 = vld [vmem:[%s5388_s1 + $0xf0] sm:$0x70]  ;;  %v19_v59 = vld [vmem:[%s5387_s0 + $0x18] sm:$0xf] }
   0xe   :  { %v2830_v56 = vor.u32 %v3250_v52, %v2827_v53  ;;  %v75_v60 = vrot.slane %v74_v49, 4  ;;  %v449_v61 = vsel %vm429_vm0, %v2826_v50, 0  ;;  %v443_v62 = vsel %vm429_vm0, %v2818_v51, 0  ;;  %v50_v6 = vld [vmem:[%s5387_s0 + $0x14] sm:$0x1] }
   0xf   :  { %v2822_v63 = vor.u32 %v3249_v54, %v2819_v57  ;;  %v89_v0 = vrot.slane %v88_v55, 4  ;;  %754 = vmatpush.bf16.msrb.mxu2 %v449_v61  ;;  %656 = vmatpush.bf16.msrb.mxu0 %v443_v62  ;;  %v96_v2 = vshrl.u32 %v18_v58, 16  ;;  %v99_v3 = vshll.u32 %v18_v58, 16  ;;  %v51_v7 = vld [vmem:[%s5387_s0 + $0x1c] sm:$0x1] }
  0x10   :  { %v452_v1 = vsel %vm429_vm0, %v2830_v56, 0  ;;  %v80_v4 = vsel %vm3414_vm3, %v75_v60, %v79_v44  ;;  %v110_v8 = vshrl.u32 %v19_v59, 16  ;;  %v113_v15 = vshll.u32 %v19_v59, 16 }
  0x11   :  { %803 = vmatpush.bf16.msrb.mxu3 %v452_v1  ;;  %v446_v5 = vsel %vm429_vm0, %v2822_v63, 0  ;;  %v94_v9 = vsel %vm3414_vm3, %v89_v0, %v93_v47  ;;  %v308_v10 = vunpack.c.l.b16 %v80_v4  ;;  %v98_v11 = vrot.slane %v96_v2, 4 }
  0x12   :  { %705 = vmatpush.bf16.msrb.mxu1 %v446_v5  ;;  %v101_v12 = vrot.slane %v99_v3, 5  ;;  %v309_v13 = vunpack.c.l.b16 %v94_v9  ;;  %v112_v14 = vrot.slane %v110_v8, 4  ;;  %v105_v17 = vshll.u32 %v50_v6, 16 }
  0x13   :  { %v119_v18 = vshll.u32 %v51_v7, 16 }
  0x14   :  { %v102_v16 = vor.u32 %v101_v12, %v98_v11 }
  0x15   :  { %8 = vsyncpa [#allocation3], 0  ;;  %v3453_v19 = vpack.c.b16 %v309_v13, %v308_v10  ;;  %v115_v20 = vrot.slane %v113_v15, 5  ;;  %v107_v23 = vrot.slane %v105_v17, 5  ;;  %v121_v24 = vrot.slane %v119_v18, 5  ;;  %s2739_s15 = sshll.u32 %s5390_s3, 4  ;;  %s2740_s15 = int_to_ptr.hbm [resolvable:$true] %s2739_s15 }
  0x16   :  { %v103_v22 = vrot.slane %v102_v16, 4  ;;  %v20_v25 = vld [vmem:[%s5387_s0 + $0x20] sm:$0xf]  ;;  %v21_v27 = vld [vmem:[%s5387_s0 + $0x28] sm:$0xf]  ;;  %vm1446_vm5 = vcmask 1042432  }
  0x17   :  { %2831 = vmatmul.msk.bf16.vlgmr.msra.gmra.mxu0 %vm404_vm4, %v3453_v19  ;;  %2839 = vmatmul.msk.bf16.vlgmr.msra.gmra.mxu1 %vm404_vm4, %v3453_v19  ;;  %v116_v21 = vor.u32 %v115_v20, %v112_v14  ;;  %v124_v28 = vshrl.u32 %v20_v25, 16  ;;  %v127_v29 = vshll.u32 %v20_v25, 16  ;;  %v138_v32 = vshrl.u32 %v21_v27, 16  ;;  %v52_v40 = vld [vmem:[%s5387_s0 + $0x24] sm:$0x1]  ;;  %s3317_s16 = smov 128  }
  0x18   :  { %2847 = vmatmul.msk.bf16.vlgmr.msra.gmra.mxu2 %vm404_vm4, %v3453_v19  ;;  %2855 = vmatmul.msk.bf16.vlgmr.msra.gmra.mxu3 %vm404_vm4, %v3453_v19  ;;  %v108_v30 = vsel %vm3414_vm3, %v103_v22, %v107_v23  ;;  %v141_v33 = vshll.u32 %v21_v27, 16  ;;  %v53_v41 = vld [vmem:[%s5387_s0 + $0x2c] sm:$0x1]  ;;  %v133_v45 = vshll.u32 %v52_v40, 16  ;;  %v22_v48 = vld [vmem:[%s5387_s0 + $0x30] sm:$0xf] }
  0x19   :  { %v117_v26 = vrot.slane %v116_v21, 4  ;;  %v310_v34 = vunpack.c.l.b16 %v108_v30  ;;  %v126_v36 = vrot.slane %v124_v28, 4  ;;  %v129_v37 = vrot.slane %v127_v29, 5  ;;  %v23_v49 = vld [vmem:[%s5387_s0 + $0x38] sm:$0xf]  ;;  %s3318_s17 = smov 8  }
  0x1a   :  { %v140_v38 = vrot.slane %v138_v32, 4  ;;  %v143_v39 = vrot.slane %v141_v33, 5  ;;  %v147_v47 = vshll.u32 %v53_v41, 16  ;;  %v135_v51 = vrot.slane %v133_v45, 5  ;;  %v54_v62 = vld [vmem:[%s5387_s0 + $0x34] sm:$0x1] }
  0x1b   :  { %v122_v31 = vsel %vm3414_vm3, %v117_v26, %v121_v24  ;;  %v130_v44 = vor.u32 %v129_v37, %v126_v36  ;;  %v152_v54 = vshrl.u32 %v22_v48, 16  ;;  %v155_v55 = vshll.u32 %v22_v48, 16  ;;  %v55_v3 = vld [vmem:[%s5387_s0 + $0x3c] sm:$0x1]  ;;  %v24_v13 = vld [vmem:[%s5387_s0 + $0x40] sm:$0xf] }
  0x1c   :  { %v311_v35 = vunpack.c.l.b16 %v122_v31  ;;  %v144_v46 = vor.u32 %v143_v39, %v140_v38  ;;  %v149_v53 = vrot.slane %v147_v47, 5  ;;  %v166_v56 = vshrl.u32 %v23_v49, 16  ;;  %v25_v14 = vld [vmem:[%s5387_s0 + $0x48] sm:$0xf]  ;;  %v2793_v15 = vld [vmem:[%s5388_s1 + $0x98] sm:$0xf] }
  0x1d   :  { %v131_v50 = vrot.slane %v130_v44, 4  ;;  %v169_v57 = vshll.u32 %v23_v49, 16  ;;  %v154_v60 = vrot.slane %v152_v54, 4  ;;  %v157_v61 = vrot.slane %v155_v55, 5  ;;  %v3246_v16 = vld [vmem:[%s5388_s1 + $0xb4] sm:$0xf0] }
  0x1e   :  { %v3479_v42 = vpack.c.b16 %v311_v35, %v310_v34  ;;  %v145_v52 = vrot.slane %v144_v46, 4  ;;  %v168_v63 = vrot.slane %v166_v56, 4  ;;  %v161_v5 = vshll.u32 %v54_v62, 16  ;;  %v2785_v17 = vld [vmem:[%s5388_s1 + $0x90] sm:$0xf] }
  0x1f   :  { %v136_v58 = vsel %vm3414_vm3, %v131_v50, %v135_v51  ;;  %v171_v0 = vrot.slane %v169_v57, 5  ;;  %v158_v4 = vor.u32 %v157_v61, %v154_v60  ;;  %v175_v7 = vshll.u32 %v55_v3, 16  ;;  %v3245_v21 = vld [vmem:[%s5388_s1 + $0xac] sm:$0xf0]  ;;  %v3242_v22 = vld [vmem:[%s5388_s1 + $0x9c] sm:$0xf] }
  0x20   :  { %v150_v59 = vsel %vm3414_vm3, %v145_v52, %v149_v53  ;;  %v312_v1 = vunpack.c.l.b16 %v136_v58  ;;  %v163_v10 = vrot.slane %v161_v5, 5  ;;  %v2794_v20 = vor.u32 %v3246_v16, %v2793_v15  ;;  %v2795_v23 = vld [vmem:[%s5388_s1 + $0xb8] sm:$0xf0]  ;;  %v3241_v28 = vld [vmem:[%s5388_s1 + $0x94] sm:$0xf] }
  0x21   :  { %v313_v2 = vunpack.c.l.b16 %v150_v59  ;;  %v172_v6 = vor.u32 %v171_v0, %v168_v63  ;;  %v159_v9 = vrot.slane %v158_v4, 4  ;;  %v177_v12 = vrot.slane %v175_v7, 5  ;;  %v2787_v29 = vld [vmem:[%s5388_s1 + $0xb0] sm:$0xf0]  ;;  %v56_v40 = vld [vmem:[%s5387_s0 + $0x44] sm:$0x1] }
  0x22   :  { %v180_v25 = vshrl.u32 %v24_v13, 16  ;;  %v2786_v26 = vor.u32 %v3245_v21, %v2785_v17  ;;  %v2798_v27 = vor.u32 %v3242_v22, %v2795_v23  ;;  %v183_v30 = vshll.u32 %v24_v13, 16  ;;  %755 = vmatpush.bf16.msrb.mxu2 %v2794_v20  ;;  %v57_v41 = vld [vmem:[%s5387_s0 + $0x4c] sm:$0x1]  ;;  %v26_v53 = vld [vmem:[%s5387_s0 + $0x50] sm:$0xf] }
  0x23   :  { %v3505_v8 = vpack.c.b16 %v313_v2, %v312_v1  ;;  %v173_v11 = vrot.slane %v172_v6, 4  ;;  %v164_v18 = vsel %vm3414_vm3, %v159_v9, %v163_v10  ;;  %v194_v31 = vshrl.u32 %v25_v14, 16  ;;  %v27_v54 = vld [vmem:[%s5387_s0 + $0x58] sm:$0xf]  ;;  %v58_v3 = vld [vmem:[%s5387_s0 + $0x54] sm:$0x1] }
  0x24   :  { %v197_v32 = vshll.u32 %v25_v14, 16  ;;  %v2790_v33 = vor.u32 %v3241_v28, %v2787_v29  ;;  %657 = vmatpush.bf16.msrb.mxu0 %v2786_v26  ;;  %804 = vmatpush.bf16.msrb.mxu3 %v2798_v27  ;;  %v314_v34 = vunpack.c.l.b16 %v164_v18  ;;  %v182_v36 = vrot.slane %v180_v25, 4  ;;  %v59_v4 = vld [vmem:[%s5387_s0 + $0x5c] sm:$0x1] }
  0x25   :  { %v178_v24 = vsel %vm3414_vm3, %v173_v11, %v177_v12  ;;  %v185_v37 = vrot.slane %v183_v30, 5  ;;  %v196_v38 = vrot.slane %v194_v31, 4  ;;  %v189_v46 = vshll.u32 %v56_v40, 16  ;;  %v28_v11 = vld [vmem:[%s5387_s0 + $0x60] sm:$0xf] }
  0x26   :  { %706 = vmatpush.bf16.msrb.mxu1 %v2790_v33  ;;  %v315_v35 = vunpack.c.l.b16 %v178_v24  ;;  %v199_v39 = vrot.slane %v197_v32, 5  ;;  %v203_v48 = vshll.u32 %v57_v41, 16  ;;  %v208_v57 = vshrl.u32 %v26_v53, 16  ;;  %v29_v12 = vld [vmem:[%s5387_s0 + $0x68] sm:$0xf] }
  0x27   :  { %2832 = vmatmul.msk.bf16.gmra.mxu0 %vm404_vm4, %v3479_v42  ;;  %2840 = vmatmul.msk.bf16.gmra.mxu1 %vm404_vm4, %v3479_v42  ;;  %v186_v45 = vor.u32 %v185_v37, %v182_v36  ;;  %v191_v50 = vrot.slane %v189_v46, 5  ;;  %v211_v58 = vshll.u32 %v26_v53, 16  ;;  %v222_v59 = vshrl.u32 %v27_v54, 16  ;;  %v60_v30 = vld [vmem:[%s5387_s0 + $0x64] sm:$0x1] }
  0x28   :  { %2848 = vmatmul.msk.bf16.gmra.mxu2 %vm404_vm4, %v3479_v42  ;;  %2856 = vmatmul.msk.bf16.gmra.mxu3 %vm404_vm4, %v3479_v42  ;;  %v3555_v44 = vpack.c.b16 %v315_v35, %v314_v34  ;;  %v200_v47 = vor.u32 %v199_v39, %v196_v38  ;;  %v205_v52 = vrot.slane %v203_v48, 5  ;;  %v225_v60 = vshll.u32 %v27_v54, 16  ;;  %v61_v31 = vld [vmem:[%s5387_s0 + $0x6c] sm:$0x1]  ;;  %v30_v41 = vld [vmem:[%s5387_s0 + $0x70] sm:$0xf] }
  0x29   :  { %v187_v49 = vrot.slane %v186_v45, 4  ;;  %v210_v63 = vrot.slane %v208_v57, 4  ;;  %v213_v0 = vrot.slane %v211_v58, 5  ;;  %v224_v1 = vrot.slane %v222_v59, 4  ;;  %v31_v45 = vld [vmem:[%s5387_s0 + $0x78] sm:$0xf] }
  0x2a   :  { %v201_v51 = vrot.slane %v200_v47, 4  ;;  %v227_v2 = vrot.slane %v225_v60, 5  ;;  %v217_v7 = vshll.u32 %v58_v3, 16  ;;  %v231_v10 = vshll.u32 %v59_v4, 16  ;;  %v62_v58 = vld [vmem:[%s5387_s0 + $0x74] sm:$0x1] }
  0x2b   :  { %v192_v55 = vsel %vm3414_vm3, %v187_v49, %v191_v50  ;;  %v214_v6 = vor.u32 %v213_v0, %v210_v63  ;;  %v236_v17 = vshrl.u32 %v28_v11, 16  ;;  %v239_v18 = vshll.u32 %v28_v11, 16  ;;  %v63_v59 = vld [vmem:[%s5387_s0 + $0x7c] sm:$0x1]  ;;  %v3235_v11 = vld [vmem:[%s5388_s1 + $0x5c] sm:$0x70] }
  0x2c   :  { %v206_v56 = vsel %vm3414_vm3, %v201_v51, %v205_v52  ;;  %v316_v61 = vunpack.c.l.b16 %v192_v55  ;;  %v228_v9 = vor.u32 %v227_v2, %v224_v1  ;;  %v219_v14 = vrot.slane %v217_v7, 5  ;;  %v3236_v7 = vld [vmem:[%s5388_s1 + $0x64] sm:$0x70] }
  0x2d   :  { %v317_v62 = vunpack.c.l.b16 %v206_v56  ;;  %v215_v13 = vrot.slane %v214_v6, 4  ;;  %v233_v16 = vrot.slane %v231_v10, 5  ;;  %v250_v20 = vshrl.u32 %v29_v12, 16  ;;  %v2969_v6 = vld [vmem:[%s5388_s1 + $0x48] sm:$0xf] }
  0x2e   :  { %v229_v15 = vrot.slane %v228_v9, 4  ;;  %v253_v21 = vshll.u32 %v29_v12, 16  ;;  %v238_v24 = vrot.slane %v236_v17, 4  ;;  %v241_v25 = vrot.slane %v239_v18, 5  ;;  %v2961_v9 = vld [vmem:[%s5388_s1 + $0x40] sm:$0xf] }
  0x2f   :  { %v3581_v5 = vpack.c.b16 %v317_v62, %v316_v61  ;;  %v220_v22 = vsel %vm3414_vm3, %v215_v13, %v219_v14  ;;  %v252_v26 = vrot.slane %v250_v20, 4  ;;  %v245_v33 = vshll.u32 %v60_v30, 16  ;;  %v3232_v12 = vld [vmem:[%s5388_s1 + $0x4c] sm:$0xf]  ;;  %v3231_v18 = vld [vmem:[%s5388_s1 + $0x44] sm:$0xf] }
  0x30   :  { %v234_v23 = vsel %vm3414_vm3, %v229_v15, %v233_v16  ;;  %v255_v27 = vrot.slane %v253_v21, 5  ;;  %v318_v28 = vunpack.c.l.b16 %v220_v22  ;;  %v242_v32 = vor.u32 %v241_v25, %v238_v24  ;;  %v2971_v13 = vld [vmem:[%s5388_s1 + $0x68] sm:$0x70]  ;;  %v2963_v20 = vld [vmem:[%s5388_s1 + $0x60] sm:$0x70] }
  0x31   :  { %v319_v29 = vunpack.c.l.b16 %v234_v23  ;;  %v259_v35 = vshll.u32 %v61_v31, 16  ;;  %v247_v38 = vrot.slane %v245_v33, 5  ;;  %v264_v48 = vshrl.u32 %v30_v41, 16 }
  0x32   :  { %v256_v34 = vor.u32 %v255_v27, %v252_v26  ;;  %v243_v37 = vrot.slane %v242_v32, 4  ;;  %v267_v49 = vshll.u32 %v30_v41, 16  ;;  %v278_v50 = vshrl.u32 %v31_v45, 16 }
  0x33   :  { %v3607_v36 = vpack.c.b16 %v319_v29, %v318_v28  ;;  %v261_v40 = vrot.slane %v259_v35, 5  ;;  %v281_v51 = vshll.u32 %v31_v45, 16  ;;  %v266_v54 = vrot.slane %v264_v48, 4 }
  0x34   :  { %v257_v39 = vrot.slane %v256_v34, 4  ;;  %v248_v46 = vsel %vm3414_vm3, %v243_v37, %v247_v38  ;;  %v269_v55 = vrot.slane %v267_v49, 5  ;;  %v280_v56 = vrot.slane %v278_v50, 4  ;;  %v3228_v49 = vld [vmem:[%s5388_s1 + $0x24] sm:$0xf0] }
  0x35   :  { %v320_v52 = vunpack.c.l.b16 %v248_v46  ;;  %v283_v57 = vrot.slane %v281_v51, 5  ;;  %v273_v62 = vshll.u32 %v62_v58, 16  ;;  %v287_v0 = vshll.u32 %v63_v59, 16  ;;  %v2929_v50 = vld [vmem:[%s5388_s1] sm:$0xf] }
  0x36   :  { %v262_v47 = vsel %vm3414_vm3, %v257_v39, %v261_v40  ;;  %v270_v61 = vor.u32 %v269_v55, %v266_v54  ;;  %v2970_v10 = vor.u32 %v3236_v7, %v2969_v6  ;;  %v2962_v14 = vor.u32 %v3235_v11, %v2961_v9  ;;  %v3223_v58 = vld [vmem:[%s5388_s1 + $0x4] sm:$0xf] }
  0x37   :  { %2833 = vmatmul.msk.bf16.gmra.mxu0 %vm404_vm4, %v3505_v8  ;;  %2841 = vmatmul.msk.bf16.gmra.mxu1 %vm404_vm4, %v3505_v8  ;;  %v321_v53 = vunpack.c.l.b16 %v262_v47  ;;  %v284_v63 = vor.u32 %v283_v57, %v280_v56  ;;  %v275_v2 = vrot.slane %v273_v62, 5  ;;  %v289_v4 = vrot.slane %v287_v0, 5  ;;  %v2931_v59 = vld [vmem:[%s5388_s1 + $0x20] sm:$0xf0] }
  0x38   :  { %2849 = vmatmul.msk.bf16.gmra.mxu2 %vm404_vm4, %v3505_v8  ;;  %2857 = vmatmul.msk.bf16.gmra.mxu3 %vm404_vm4, %v3505_v8  ;;  %v271_v1 = vrot.slane %v270_v61, 4  ;;  %v2974_v15 = vor.u32 %v3232_v12, %v2971_v13  ;;  %v989_v17 = vsel %vm429_vm0, %v2970_v10, 0  ;;  %v983_v22 = vsel %vm429_vm0, %v2962_v14, 0 }
  0x39   :  { %v3633_v60 = vpack.c.b16 %v321_v53, %v320_v52  ;;  %v285_v3 = vrot.slane %v284_v63, 4  ;;  %1110 = vmatpush.bf16.msra.mxu2 %v989_v17  ;;  %v2966_v24 = vor.u32 %v3231_v18, %v2963_v20  ;;  %1012 = vmatpush.bf16.msra.mxu0 %v983_v22  ;;  %v3227_v52 = vld [vmem:[%s5388_s1 + $0x1c] sm:$0xf0]  ;;  %v2939_v53 = vld [vmem:[%s5388_s1 + $0x28] sm:$0xf0]  ;;  %v2934_v63 = vor.u32 %v3223_v58, %v2931_v59 }
  0x3a   :  { %v276_v16 = vsel %vm3414_vm3, %v271_v1, %v275_v2  ;;  %v992_v23 = vsel %vm429_vm0, %v2974_v15, 0  ;;  %v2930_v54 = vor.u32 %v3227_v52, %v2929_v50  ;;  %v2977_v50 = vld [vmem:[%s5388_s1 + $0x50] sm:$0xf]  ;;  %vm1447_vm6 = vcmask 1046532  }
  0x3b   :  { %v290_v21 = vsel %vm3414_vm3, %v285_v3, %v289_v4  ;;  %1159 = vmatpush.bf16.msra.mxu3 %v992_v23  ;;  %v986_v25 = vsel %vm429_vm0, %v2966_v24, 0  ;;  %v322_v26 = vunpack.c.l.b16 %v276_v16  ;;  %v3237_v52 = vld [vmem:[%s5388_s1 + $0x6c] sm:$0x70]  ;;  %vm4481_vm7 = vmor %vm1446_vm5, %vm1447_vm6  ;;  %vm2708_vm8 = vcmask 1041409  }
  0x3c   :  { %v323_v27 = vunpack.c.l.b16 %v290_v21  ;;  %1061 = vmatpush.bf16.msra.mxu1 %v986_v25  ;;  %vm2710_vm9 = vcmask 1042434   ;;  %vm2712_vm10 = vcmask 1043459   ;;  %vm2714_vm11 = vcmask 1044484  }
  0x3d   :  { %1013 = vmatpush.bf16.msra.mxu0 %v2930_v54  ;;  %vm2716_vm12 = vcmask 1045509   ;;  %vm2718_vm13 = vcmask 1046534   ;;  %vm2720_vm14 = vcmask 1047559  }
  0x3e   :  { %v3675_v28 = vpack.c.b16 %v323_v27, %v322_v26 }
  0x40   :  { %1062 = vmatpush.bf16.msra.mxu1 %v2934_v63  ;;  %v3233_v63 = vld [vmem:[%s5388_s1 + $0x54] sm:$0xf] }
  0x47   :  { %2834 = vmatmul.msk.bf16.gmra.mxu0 %vm404_vm4, %v3555_v44  ;;  %2842 = vmatmul.msk.bf16.gmra.mxu1 %vm404_vm4, %v3555_v44 }
  0x48   :  { %2850 = vmatmul.msk.bf16.gmra.mxu2 %vm404_vm4, %v3555_v44  ;;  %2858 = vmatmul.msk.bf16.gmra.mxu3 %vm404_vm4, %v3555_v44 }
  0x57   :  { %2835 = vmatmul.msk.bf16.gmra.mxu0 %vm404_vm4, %v3581_v5  ;;  %2843 = vmatmul.msk.bf16.gmra.mxu1 %vm404_vm4, %v3581_v5 }
  0x58   :  { %2851 = vmatmul.msk.bf16.gmra.mxu2 %vm404_vm4, %v3581_v5  ;;  %2859 = vmatmul.msk.bf16.gmra.mxu3 %vm404_vm4, %v3581_v5 }
  0x67   :  { %2836 = vmatmul.msk.bf16.gmra.mxu0 %vm404_vm4, %v3607_v36  ;;  %2844 = vmatmul.msk.bf16.gmra.mxu1 %vm404_vm4, %v3607_v36 }
  0x68   :  { %2852 = vmatmul.msk.bf16.gmra.mxu2 %vm404_vm4, %v3607_v36  ;;  %2860 = vmatmul.msk.bf16.gmra.mxu3 %vm404_vm4, %v3607_v36 }
  0x77   :  { %2837 = vmatmul.msk.bf16.gmra.mxu0 %vm404_vm4, %v3633_v60  ;;  %2845 = vmatmul.msk.bf16.gmra.mxu1 %vm404_vm4, %v3633_v60 }
  0x78   :  { %2853 = vmatmul.msk.bf16.gmra.mxu2 %vm404_vm4, %v3633_v60  ;;  %2861 = vmatmul.msk.bf16.gmra.mxu3 %vm404_vm4, %v3633_v60 }
  0x87   :  { %2838 = vmatmul.msk.bf16.gmra.mxu0 %vm404_vm4, %v3675_v28  ;;  %2846 = vmatmul.msk.bf16.gmra.mxu1 %vm404_vm4, %v3675_v28 }
  0x88   :  { %2854 = vmatmul.msk.bf16.gmra.mxu2 %vm404_vm4, %v3675_v28  ;;  %2862 = vmatmul.msk.bf16.gmra.mxu3 %vm404_vm4, %v3675_v28 }
  0x94   :  { %v3685_v43 = vpop.f32.mrf.mxu0  ;;  %v3687_v29 = vpop.f32.mrf.mxu1 }
  0x97   :  { %2863 = vmatmul.msk.bf16.vlgmr.msrb.gmra.mxu0 %vm404_vm4, %v3453_v19  ;;  %2871 = vmatmul.msk.bf16.vlgmr.msrb.gmra.mxu1 %vm404_vm4, %v3453_v19 }
  0x98   :  { %2879 = vmatmul.msk.bf16.vlgmr.msrb.gmra.mxu2 %vm404_vm4, %v3453_v19  ;;  %2887 = vmatmul.msk.bf16.vlgmr.msrb.gmra.mxu3 %vm404_vm4, %v3453_v19 }
  0x9b   :  { %v3697_v30 = vpop.f32.mrf.mxu2  ;;  %v3699_v31 = vpop.f32.mrf.mxu3 }
  0x9c   :  { %v3701_v32 = vpop.f32.mrf.mxu0  ;;  %v3703_v33 = vpop.f32.mrf.mxu1 }
  0xa3   :  { %v3705_v34 = vpop.f32.mrf.mxu2  ;;  %v3707_v35 = vpop.f32.mrf.mxu3 }
  0xa4   :  { %v3709_v37 = vpop.f32.mrf.mxu0  ;;  %v3711_v38 = vpop.f32.mrf.mxu1 }
  0xa7   :  { %2864 = vmatmul.msk.bf16.gmra.mxu0 %vm404_vm4, %v3479_v42  ;;  %2872 = vmatmul.msk.bf16.gmra.mxu1 %vm404_vm4, %v3479_v42 }
  0xa8   :  { %2880 = vmatmul.msk.bf16.gmra.mxu2 %vm404_vm4, %v3479_v42  ;;  %2888 = vmatmul.msk.bf16.gmra.mxu3 %vm404_vm4, %v3479_v42  ;;  %v2937_v42 = vld [vmem:[%s5388_s1 + $0x8] sm:$0xf] }
  0xa9   :  { %v2938_v51 = vor.u32 %v3228_v49, %v2937_v42  ;;  %v3238_v49 = vld [vmem:[%s5388_s1 + $0x74] sm:$0x70] }
  0xab   :  { %v3721_v19 = vpop.f32.mrf.mxu2  ;;  %v3723_v39 = vpop.f32.mrf.mxu3  ;;  %1111 = vmatpush.bf16.msra.mxu2 %v2938_v51 }
  0xac   :  { %v3725_v40 = vpop.f32.mrf.mxu0  ;;  %v3727_v41 = vpop.f32.mrf.mxu1 }
  0xb3   :  { %v3729_v45 = vpop.f32.mrf.mxu2  ;;  %v3731_v46 = vpop.f32.mrf.mxu3 }
  0xb4   :  { %v3733_v47 = vpop.f32.mrf.mxu0  ;;  %v3735_v48 = vpop.f32.mrf.mxu1 }
  0xb7   :  { %2865 = vmatmul.msk.bf16.gmra.mxu0 %vm404_vm4, %v3505_v8  ;;  %2873 = vmatmul.msk.bf16.gmra.mxu1 %vm404_vm4, %v3505_v8 }
  0xb8   :  { %2881 = vmatmul.msk.bf16.gmra.mxu2 %vm404_vm4, %v3505_v8  ;;  %2889 = vmatmul.msk.bf16.gmra.mxu3 %vm404_vm4, %v3505_v8  ;;  %v3224_v8 = vld [vmem:[%s5388_s1 + $0xc] sm:$0xf] }
  0xb9   :  { %v2942_v55 = vor.u32 %v3224_v8, %v2939_v53  ;;  %v2987_v8 = vld [vmem:[%s5388_s1 + $0x78] sm:$0x70]  ;;  %v2978_v53 = vor.u32 %v3237_v52, %v2977_v50 }
  0xbb   :  { %v3763_v56 = vpop.f32.mrf.mxu2  ;;  %v3765_v57 = vpop.f32.mrf.mxu3  ;;  %1160 = vmatpush.bf16.msra.mxu3 %v2942_v55  ;;  %v995_v50 = vsel %vm429_vm0, %v2978_v53, 0 }
  0xbc   :  { %v3773_v61 = vpop.f32.mrf.mxu0  ;;  %v3775_v62 = vpop.f32.mrf.mxu1  ;;  %1208 = vmatpush.bf16.msrb.mxu0 %v995_v50  ;;  %v3215_v50 = vld [vmem:[%s5387_s0 + $0x4] sm:$0xf0] }
  0xc3   :  { %v3777_v0 = vpop.f32.mrf.mxu2  ;;  %v3779_v1 = vpop.f32.mrf.mxu3 }
  0xc4   :  { %5397 = vst [vmem:[#allocation5_spill] sm:$0xff] %v3777_v0  ;;  %v3781_v2 = vpop.f32.mrf.mxu0  ;;  %v3783_v3 = vpop.f32.mrf.mxu1 }
  0xc5   :  { %5398 = vst [vmem:[#allocation6_spill] sm:$0xff] %v3779_v1 }
  0xc6   :  { %5399 = vst [vmem:[#allocation7_spill] sm:$0xff] %v3781_v2 }
  0xc7   :  { %5400 = vst [vmem:[#allocation8_spill] sm:$0xff] %v3783_v3  ;;  %2866 = vmatmul.msk.bf16.gmra.mxu0 %vm404_vm4, %v3555_v44  ;;  %2874 = vmatmul.msk.bf16.gmra.mxu1 %vm404_vm4, %v3555_v44 }
  0xc8   :  { %2882 = vmatmul.msk.bf16.gmra.mxu2 %vm404_vm4, %v3555_v44  ;;  %2890 = vmatmul.msk.bf16.gmra.mxu3 %vm404_vm4, %v3555_v44 }
  0xcb   :  { %v3793_v4 = vpop.f32.mrf.mxu2  ;;  %v3795_v6 = vpop.f32.mrf.mxu3 }
  0xcc   :  { %5401 = vst [vmem:[#allocation9_spill] sm:$0xff] %v3793_v4  ;;  %v3797_v7 = vpop.f32.mrf.mxu0  ;;  %v3799_v9 = vpop.f32.mrf.mxu1 }
  0xcd   :  { %5402 = vst [vmem:[#allocation10_spill] sm:$0xff] %v3795_v6 }
  0xce   :  { %5403 = vst [vmem:[#allocation11_spill] sm:$0xff] %v3797_v7 }
  0xcf   :  { %5404 = vst [vmem:[#allocation12_spill] sm:$0xff] %v3799_v9  ;;  %v3255_v9 = vld [vmem:[%s5388_s1 + $0x104] sm:$0xf] }
  0xd3   :  { %v3801_v10 = vpop.f32.mrf.mxu2  ;;  %v3803_v11 = vpop.f32.mrf.mxu3 }
  0xd4   :  { %5405 = vst [vmem:[#allocation13_spill] sm:$0xff] %v3801_v10  ;;  %v3805_v12 = vpop.f32.mrf.mxu0  ;;  %v3807_v13 = vpop.f32.mrf.mxu1 }
  0xd5   :  { %5406 = vst [vmem:[#allocation14_spill] sm:$0xff] %v3803_v11 }
  0xd6   :  { %5407 = vst [vmem:[#allocation15_spill] sm:$0xff] %v3805_v12 }
  0xd7   :  { %5408 = vst [vmem:[#allocation16_spill] sm:$0xff] %v3807_v13  ;;  %2867 = vmatmul.msk.bf16.gmra.mxu0 %vm404_vm4, %v3581_v5  ;;  %2875 = vmatmul.msk.bf16.gmra.mxu1 %vm404_vm4, %v3581_v5 }
  0xd8   :  { %2883 = vmatmul.msk.bf16.gmra.mxu2 %vm404_vm4, %v3581_v5  ;;  %2891 = vmatmul.msk.bf16.gmra.mxu3 %vm404_vm4, %v3581_v5 }
  0xdb   :  { %v3817_v44 = vpop.f32.mrf.mxu2  ;;  %v3819_v14 = vpop.f32.mrf.mxu3 }
  0xdc   :  { %5409 = vst [vmem:[#allocation17_spill] sm:$0xff] %v3817_v44  ;;  %v3821_v15 = vpop.f32.mrf.mxu0  ;;  %v3823_v16 = vpop.f32.mrf.mxu1  ;;  %v3099_v44 = vld [vmem:[%s5388_s1 + $0x128] sm:$0xf0] }
  0xdd   :  { %5410 = vst [vmem:[#allocation18_spill] sm:$0xff] %v3819_v14  ;;  %v3259_v14 = vld [vmem:[%s5388_s1 + $0x11c] sm:$0xf0] }
  0xde   :  { %5411 = vst [vmem:[#allocation19_spill] sm:$0xff] %v3821_v15 }
  0xdf   :  { %5412 = vst [vmem:[#allocation20_spill] sm:$0xff] %v3823_v16  ;;  %v3089_v16 = vld [vmem:[%s5388_s1 + $0x100] sm:$0xf] }
  0xe0   :  { %v3090_v13 = vor.u32 %v3259_v14, %v3089_v16  ;;  %v3091_v14 = vld [vmem:[%s5388_s1 + $0x120] sm:$0xf0] }
  0xe3   :  { %v3825_v17 = vpop.f32.mrf.mxu2  ;;  %v3827_v18 = vpop.f32.mrf.mxu3 }
  0xe4   :  { %5413 = vst [vmem:[#allocation21_spill] sm:$0xff] %v3825_v17  ;;  %v3829_v20 = vpop.f32.mrf.mxu0  ;;  %v3831_v21 = vpop.f32.mrf.mxu1  ;;  %v3260_v17 = vld [vmem:[%s5388_s1 + $0x124] sm:$0xf0] }
  0xe5   :  { %5414 = vst [vmem:[#allocation22_spill] sm:$0xff] %v3827_v18 }
  0xe6   :  { %5415 = vst [vmem:[#allocation23_spill] sm:$0xff] %v3829_v20 }
  0xe7   :  { %5416 = vst [vmem:[#allocation24_spill] sm:$0xff] %v3831_v21  ;;  %2868 = vmatmul.msk.bf16.gmra.mxu0 %vm404_vm4, %v3607_v36  ;;  %2876 = vmatmul.msk.bf16.gmra.mxu1 %vm404_vm4, %v3607_v36 }
  0xe8   :  { %2884 = vmatmul.msk.bf16.gmra.mxu2 %vm404_vm4, %v3607_v36  ;;  %2892 = vmatmul.msk.bf16.gmra.mxu3 %vm404_vm4, %v3607_v36  ;;  %v2985_v36 = vld [vmem:[%s5388_s1 + $0x58] sm:$0xf] }
  0xe9   :  { %v2986_v51 = vor.u32 %v3238_v49, %v2985_v36  ;;  %v2979_v36 = vld [vmem:[%s5388_s1 + $0x70] sm:$0x70] }
  0xeb   :  { %v3841_v5 = vpop.f32.mrf.mxu2  ;;  %v3843_v22 = vpop.f32.mrf.mxu3  ;;  %v1001_v59 = vsel %vm429_vm0, %v2986_v51, 0 }
  0xec   :  { %5417 = vst [vmem:[#allocation25_spill] sm:$0xff] %v3841_v5  ;;  %v3845_v23 = vpop.f32.mrf.mxu0  ;;  %v3847_v24 = vpop.f32.mrf.mxu1  ;;  %1306 = vmatpush.bf16.msrb.mxu2 %v1001_v59 }
  0xed   :  { %5418 = vst [vmem:[#allocation26_spill] sm:$0xff] %v3843_v22 }
  0xee   :  { %5419 = vst [vmem:[#allocation27_spill] sm:$0xff] %v3845_v23 }
  0xef   :  { %5420 = vst [vmem:[#allocation28_spill] sm:$0xff] %v3847_v24 }
  0xf3   :  { %v3849_v25 = vpop.f32.mrf.mxu2  ;;  %v3851_v26 = vpop.f32.mrf.mxu3 }
  0xf4   :  { %5421 = vst [vmem:[#allocation29_spill] sm:$0xff] %v3849_v25  ;;  %v3853_v27 = vpop.f32.mrf.mxu0  ;;  %v3855_v42 = vpop.f32.mrf.mxu1 }
  0xf5   :  { %5422 = vst [vmem:[#allocation30_spill] sm:$0xff] %v3851_v26 }
  0xf6   :  { %5423 = vst [vmem:[#allocation31_spill] sm:$0xff] %v3853_v27 }
  0xf7   :  { %5424 = vst [vmem:[#allocation32_spill] sm:$0xff] %v3855_v42  ;;  %2869 = vmatmul.msk.bf16.gmra.mxu0 %vm404_vm4, %v3633_v60  ;;  %2877 = vmatmul.msk.bf16.gmra.mxu1 %vm404_vm4, %v3633_v60 }
  0xf8   :  { %2885 = vmatmul.msk.bf16.gmra.mxu2 %vm404_vm4, %v3633_v60  ;;  %2893 = vmatmul.msk.bf16.gmra.mxu3 %vm404_vm4, %v3633_v60  ;;  %v3234_v60 = vld [vmem:[%s5388_s1 + $0x5c] sm:$0xf] }
  0xf9   :  { %v2990_v54 = vor.u32 %v3234_v60, %v2987_v8  ;;  %v2982_v60 = vor.u32 %v3233_v63, %v2979_v36  ;;  %v2897_v36 = vld [vmem:[%s5387_s0] sm:$0xf] }
  0xfb   :  { %v3883_v55 = vpop.f32.mrf.mxu2  ;;  %v3885_v58 = vpop.f32.mrf.mxu3  ;;  %v1004_v52 = vsel %vm429_vm0, %v2990_v54, 0  ;;  %v998_v51 = vsel %vm429_vm0, %v2982_v60, 0 }
  0xfc   :  { %5425 = vst [vmem:[#allocation33_spill] sm:$0xff] %v3883_v55  ;;  %v3894_v49 = vpop.f32.mrf.mxu0  ;;  %v3896_v42 = vpop.f32.mrf.mxu1  ;;  %1355 = vmatpush.bf16.msrb.mxu3 %v1004_v52  ;;  %1257 = vmatpush.bf16.msrb.mxu1 %v998_v51 }
  0xfd   :  { %5426 = vst [vmem:[#allocation34_spill] sm:$0xff] %v3885_v58 }
  0xfe   :  { %5427 = vst [vmem:[#allocation35_spill] sm:$0xff] %v3894_v49 }
  0xff   :  { %5428 = vst [vmem:[#allocation36_spill] sm:$0xff] %v3896_v42 }
 0x103   :  { %v3901_v8 = vpop.f32.mrf.mxu2  ;;  %v3903_v58 = vpop.f32.mrf.mxu3 }
 0x104   :  { %5429 = vst [vmem:[#allocation37_spill] sm:$0xff] %v3901_v8  ;;  %v3905_v55 = vpop.f32.mrf.mxu0  ;;  %v3907_v49 = vpop.f32.mrf.mxu1 }
 0x105   :  { %5430 = vst [vmem:[#allocation38_spill] sm:$0xff] %v3903_v58 }
 0x106   :  { %5431 = vst [vmem:[#allocation39_spill] sm:$0xff] %v3905_v55 }
 0x107   :  { %5432 = vst [vmem:[#allocation40_spill] sm:$0xff] %v3907_v49  ;;  %2870 = vmatmul.msk.bf16.gmra.mxu0 %vm404_vm4, %v3675_v28  ;;  %2878 = vmatmul.msk.bf16.gmra.mxu1 %vm404_vm4, %v3675_v28 }
 0x108   :  { %2886 = vmatmul.msk.bf16.gmra.mxu2 %vm404_vm4, %v3675_v28  ;;  %2894 = vmatmul.msk.bf16.gmra.mxu3 %vm404_vm4, %v3675_v28  ;;  %v3935_v28 = vor.u32 %v3215_v50, %v2897_v36 }
 0x10b   :  { %v3917_v53 = vpop.f32.mrf.mxu2  ;;  %v3919_v54 = vpop.f32.mrf.mxu3 }
 0x10c   :  { %5433 = vst [vmem:[#allocation41_spill] sm:$0xff] %v3917_v53  ;;  %v3921_v59 = vpop.f32.mrf.mxu0  ;;  %v3923_v63 = vpop.f32.mrf.mxu1 }
 0x10d   :  { %5434 = vst [vmem:[#allocation42_spill] sm:$0xff] %v3919_v54 }
 0x10e   :  { %5435 = vst [vmem:[#allocation43_spill] sm:$0xff] %v3921_v59 }
 0x10f   :  { %5436 = vst [vmem:[#allocation44_spill] sm:$0xff] %v3923_v63 }
 0x113   :  { %v3931_v52 = vpop.f32.mrf.mxu2  ;;  %v3933_v60 = vpop.f32.mrf.mxu3 }
 0x114   :  { %5437 = vst [vmem:[#allocation45_spill] sm:$0xff] %v3931_v52  ;;  %v3937_v51 = vpop.f32.mrf.mxu0  ;;  %v3939_v54 = vpop.f32.mrf.mxu1 }
 0x115   :  { %5438 = vst [vmem:[#allocation46_spill] sm:$0xff] %v3933_v60  ;;  %v3216_v60 = vld [vmem:[%s5387_s0 + $0x14] sm:$0xf0] }
 0x116   :  { %5439 = vst [vmem:[#allocation47_spill] sm:$0xff] %v3937_v51 }
 0x117   :  { %5440 = vst [vmem:[#allocation48_spill] sm:$0xff] %v3939_v54  ;;  %2991 = vmatmul.msk.bf16.vlgmr.msra.gmra.mxu0 %vm404_vm4, %v3935_v28  ;;  %2999 = vmatmul.msk.bf16.vlgmr.msra.gmra.mxu1 %vm404_vm4, %v3935_v28  ;;  %v2901_v54 = vld [vmem:[%s5387_s0 + $0x10] sm:$0xf] }
 0x118   :  { %3007 = vmatmul.msk.bf16.vlgmr.msra.gmra.mxu2 %vm404_vm4, %v3935_v28  ;;  %3015 = vmatmul.msk.bf16.vlgmr.msra.gmra.mxu3 %vm404_vm4, %v3935_v28  ;;  %v3967_v53 = vor.u32 %v3216_v60, %v2901_v54 }
 0x11b   :  { %v3949_v52 = vpop.f32.mrf.mxu2  ;;  %v3951_v36 = vpop.f32.mrf.mxu3 }
 0x11c   :  { %5441 = vst [vmem:[#allocation49_spill] sm:$0xff] %v3949_v52  ;;  %v3953_v50 = vpop.f32.mrf.mxu0  ;;  %v3955_v51 = vpop.f32.mrf.mxu1 }
 0x11d   :  { %5442 = vst [vmem:[#allocation50_spill] sm:$0xff] %v3951_v36 }
 0x11e   :  { %5443 = vst [vmem:[#allocation51_spill] sm:$0xff] %v3953_v50 }
 0x11f   :  { %5444 = vst [vmem:[#allocation52_spill] sm:$0xff] %v3955_v51 }
 0x123   :  { %v3963_v63 = vpop.f32.mrf.mxu2  ;;  %v3965_v59 = vpop.f32.mrf.mxu3 }
 0x124   :  { %5445 = vst [vmem:[#allocation53_spill] sm:$0xff] %v3963_v63  ;;  %v3969_v52 = vpop.f32.mrf.mxu0  ;;  %v3971_v36 = vpop.f32.mrf.mxu1 }
 0x125   :  { %5446 = vst [vmem:[#allocation54_spill] sm:$0xff] %v3965_v59  ;;  %v3217_v59 = vld [vmem:[%s5387_s0 + $0x24] sm:$0xf0] }
 0x126   :  { %5447 = vst [vmem:[#allocation55_spill] sm:$0xff] %v3969_v52 }
 0x127   :  { %5448 = vst [vmem:[#allocation56_spill] sm:$0xff] %v3971_v36  ;;  %2992 = vmatmul.msk.bf16.gmra.mxu0 %vm404_vm4, %v3967_v53  ;;  %3000 = vmatmul.msk.bf16.gmra.mxu1 %vm404_vm4, %v3967_v53  ;;  %v2905_v36 = vld [vmem:[%s5387_s0 + $0x20] sm:$0xf] }
 0x128   :  { %3008 = vmatmul.msk.bf16.gmra.mxu2 %vm404_vm4, %v3967_v53  ;;  %3016 = vmatmul.msk.bf16.gmra.mxu3 %vm404_vm4, %v3967_v53  ;;  %v3999_v49 = vor.u32 %v3217_v59, %v2905_v36  ;;  %v2953_v59 = vld [vmem:[%s5388_s1 + $0x18] sm:$0xf] }
 0x129   :  { %v3230_v36 = vld [vmem:[%s5388_s1 + $0x34] sm:$0xf0] }
 0x12b   :  { %v3981_v63 = vpop.f32.mrf.mxu2  ;;  %v3983_v54 = vpop.f32.mrf.mxu3 }
 0x12c   :  { %5449 = vst [vmem:[#allocation57_spill] sm:$0xff] %v3981_v63  ;;  %v3985_v60 = vpop.f32.mrf.mxu0  ;;  %v3987_v52 = vpop.f32.mrf.mxu1 }
 0x12d   :  { %5450 = vst [vmem:[#allocation58_spill] sm:$0xff] %v3983_v54 }
 0x12e   :  { %5451 = vst [vmem:[#allocation59_spill] sm:$0xff] %v3985_v60 }
 0x12f   :  { %5452 = vst [vmem:[#allocation60_spill] sm:$0xff] %v3987_v52  ;;  %v2955_v52 = vld [vmem:[%s5388_s1 + $0x38] sm:$0xf0] }
 0x133   :  { %v3995_v51 = vpop.f32.mrf.mxu2  ;;  %v3997_v50 = vpop.f32.mrf.mxu3 }
 0x134   :  { %5453 = vst [vmem:[#allocation61_spill] sm:$0xff] %v3995_v51  ;;  %v4001_v63 = vpop.f32.mrf.mxu0  ;;  %v4003_v54 = vpop.f32.mrf.mxu1  ;;  %v3226_v51 = vld [vmem:[%s5388_s1 + $0x1c] sm:$0xf] }
 0x135   :  { %5454 = vst [vmem:[#allocation62_spill] sm:$0xff] %v3997_v50  ;;  %v3229_v50 = vld [vmem:[%s5388_s1 + $0x2c] sm:$0xf0]  ;;  %v2958_v55 = vor.u32 %v3226_v51, %v2955_v52  ;;  %v3218_v51 = vld [vmem:[%s5387_s0 + $0x34] sm:$0xf0] }
 0x136   :  { %5455 = vst [vmem:[#allocation63_spill] sm:$0xff] %v4001_v63  ;;  %v2954_v63 = vor.u32 %v3230_v36, %v2953_v59  ;;  %v3225_v59 = vld [vmem:[%s5388_s1 + $0x14] sm:$0xf] }
 0x137   :  { %5456 = vst [vmem:[#allocation64_spill] sm:$0xff] %v4003_v54  ;;  %2993 = vmatmul.msk.bf16.gmra.mxu0 %vm404_vm4, %v3999_v49  ;;  %3001 = vmatmul.msk.bf16.gmra.mxu1 %vm404_vm4, %v3999_v49  ;;  %v2945_v54 = vld [vmem:[%s5388_s1 + $0x10] sm:$0xf]  ;;  %v2947_v36 = vld [vmem:[%s5388_s1 + $0x30] sm:$0xf0] }
 0x138   :  { %3009 = vmatmul.msk.bf16.gmra.mxu2 %vm404_vm4, %v3999_v49  ;;  %3017 = vmatmul.msk.bf16.gmra.mxu3 %vm404_vm4, %v3999_v49  ;;  %v2946_v60 = vor.u32 %v3229_v50, %v2945_v54  ;;  %v2950_v52 = vor.u32 %v3225_v59, %v2947_v36 }
 0x139   :  { %1307 = vmatpush.bf16.msrb.mxu2 %v2954_v63  ;;  %1356 = vmatpush.bf16.msrb.mxu3 %v2958_v55  ;;  %v2909_v63 = vld [vmem:[%s5387_s0 + $0x30] sm:$0xf] }
 0x13a   :  { %1209 = vmatpush.bf16.msrb.mxu0 %v2946_v60  ;;  %1258 = vmatpush.bf16.msrb.mxu1 %v2950_v52 }
 0x13b   :  { %v4031_v58 = vpop.f32.mrf.mxu2  ;;  %v4033_v8 = vpop.f32.mrf.mxu3 }
 0x13c   :  { %5457 = vst [vmem:[#allocation65_spill] sm:$0xff] %v4031_v58  ;;  %v4041_v42 = vpop.f32.mrf.mxu0  ;;  %v4043_v27 = vpop.f32.mrf.mxu1 }
 0x13d   :  { %5458 = vst [vmem:[#allocation66_spill] sm:$0xff] %v4033_v8  ;;  %v4055_v8 = vor.u32 %v3218_v51, %v2909_v63  ;;  %v2913_v63 = vld [vmem:[%s5387_s0 + $0x40] sm:$0xf]  ;;  %v3219_v51 = vld [vmem:[%s5387_s0 + $0x44] sm:$0xf0] }
 0x13e   :  { %5459 = vst [vmem:[#allocation67_spill] sm:$0xff] %v4041_v42 }
 0x13f   :  { %5460 = vst [vmem:[#allocation68_spill] sm:$0xff] %v4043_v27 }
 0x143   :  { %v4051_v50 = vpop.f32.mrf.mxu2  ;;  %v4053_v54 = vpop.f32.mrf.mxu3 }
 0x144   :  { %5461 = vst [vmem:[#allocation69_spill] sm:$0xff] %v4051_v50  ;;  %v4057_v42 = vpop.f32.mrf.mxu0  ;;  %v4059_v60 = vpop.f32.mrf.mxu1 }
 0x145   :  { %5462 = vst [vmem:[#allocation70_spill] sm:$0xff] %v4053_v54  ;;  %v4087_v54 = vor.u32 %v3219_v51, %v2913_v63 }
 0x146   :  { %5463 = vst [vmem:[#allocation71_spill] sm:$0xff] %v4057_v42 }
 0x147   :  { %5464 = vst [vmem:[#allocation72_spill] sm:$0xff] %v4059_v60  ;;  %2994 = vmatmul.msk.bf16.gmra.mxu0 %vm404_vm4, %v4055_v8  ;;  %3002 = vmatmul.msk.bf16.gmra.mxu1 %vm404_vm4, %v4055_v8 }
 0x148   :  { %3010 = vmatmul.msk.bf16.gmra.mxu2 %vm404_vm4, %v4055_v8  ;;  %3018 = vmatmul.msk.bf16.gmra.mxu3 %vm404_vm4, %v4055_v8 }
 0x14b   :  { %v4069_v55 = vpop.f32.mrf.mxu2  ;;  %v4071_v59 = vpop.f32.mrf.mxu3 }
 0x14c   :  { %5465 = vst [vmem:[#allocation73_spill] sm:$0xff] %v4069_v55  ;;  %v4073_v36 = vpop.f32.mrf.mxu0  ;;  %v4075_v52 = vpop.f32.mrf.mxu1 }
 0x14d   :  { %5466 = vst [vmem:[#allocation74_spill] sm:$0xff] %v4071_v59 }
 0x14e   :  { %5467 = vst [vmem:[#allocation75_spill] sm:$0xff] %v4073_v36 }
 0x14f   :  { %5468 = vst [vmem:[#allocation76_spill] sm:$0xff] %v4075_v52 }
 0x153   :  { %v4083_v60 = vpop.f32.mrf.mxu2  ;;  %v4085_v42 = vpop.f32.mrf.mxu3 }
 0x154   :  { %5469 = vst [vmem:[#allocation77_spill] sm:$0xff] %v4083_v60  ;;  %v4089_v55 = vpop.f32.mrf.mxu0  ;;  %v4091_v59 = vpop.f32.mrf.mxu1 }
 0x155   :  { %5470 = vst [vmem:[#allocation78_spill] sm:$0xff] %v4085_v42  ;;  %v3220_v42 = vld [vmem:[%s5387_s0 + $0x54] sm:$0xf0] }
 0x156   :  { %5471 = vst [vmem:[#allocation79_spill] sm:$0xff] %v4089_v55 }
 0x157   :  { %5472 = vst [vmem:[#allocation80_spill] sm:$0xff] %v4091_v59  ;;  %2995 = vmatmul.msk.bf16.gmra.mxu0 %vm404_vm4, %v4087_v54  ;;  %3003 = vmatmul.msk.bf16.gmra.mxu1 %vm404_vm4, %v4087_v54  ;;  %v2917_v59 = vld [vmem:[%s5387_s0 + $0x50] sm:$0xf] }
 0x158   :  { %3011 = vmatmul.msk.bf16.gmra.mxu2 %vm404_vm4, %v4087_v54  ;;  %3019 = vmatmul.msk.bf16.gmra.mxu3 %vm404_vm4, %v4087_v54  ;;  %v4119_v50 = vor.u32 %v3220_v42, %v2917_v59 }
 0x15b   :  { %v4101_v60 = vpop.f32.mrf.mxu2  ;;  %v4103_v63 = vpop.f32.mrf.mxu3 }
 0x15c   :  { %5473 = vst [vmem:[#allocation81_spill] sm:$0xff] %v4101_v60  ;;  %v4105_v51 = vpop.f32.mrf.mxu0  ;;  %v4107_v55 = vpop.f32.mrf.mxu1 }
 0x15d   :  { %5474 = vst [vmem:[#allocation82_spill] sm:$0xff] %v4103_v63 }
 0x15e   :  { %5475 = vst [vmem:[#allocation83_spill] sm:$0xff] %v4105_v51 }
 0x15f   :  { %5476 = vst [vmem:[#allocation84_spill] sm:$0xff] %v4107_v55 }
 0x163   :  { %v4115_v52 = vpop.f32.mrf.mxu2  ;;  %v4117_v36 = vpop.f32.mrf.mxu3 }
 0x164   :  { %5477 = vst [vmem:[#allocation85_spill] sm:$0xff] %v4115_v52  ;;  %v4121_v60 = vpop.f32.mrf.mxu0  ;;  %v4123_v63 = vpop.f32.mrf.mxu1 }
 0x165   :  { %5478 = vst [vmem:[#allocation86_spill] sm:$0xff] %v4117_v36  ;;  %v3221_v36 = vld [vmem:[%s5387_s0 + $0x64] sm:$0xf0] }
 0x166   :  { %5479 = vst [vmem:[#allocation87_spill] sm:$0xff] %v4121_v60 }
 0x167   :  { %5480 = vst [vmem:[#allocation88_spill] sm:$0xff] %v4123_v63  ;;  %2996 = vmatmul.msk.bf16.gmra.mxu0 %vm404_vm4, %v4119_v50  ;;  %3004 = vmatmul.msk.bf16.gmra.mxu1 %vm404_vm4, %v4119_v50  ;;  %v2921_v63 = vld [vmem:[%s5387_s0 + $0x60] sm:$0xf] }
 0x168   :  { %3012 = vmatmul.msk.bf16.gmra.mxu2 %vm404_vm4, %v4119_v50  ;;  %3020 = vmatmul.msk.bf16.gmra.mxu3 %vm404_vm4, %v4119_v50  ;;  %v4151_v27 = vor.u32 %v3221_v36, %v2921_v63  ;;  %v3129_v36 = vld [vmem:[%s5388_s1 + $0x148] sm:$0xf] }
 0x169   :  { %v3268_v63 = vld [vmem:[%s5388_s1 + $0x164] sm:$0x70] }
 0x16b   :  { %v4133_v52 = vpop.f32.mrf.mxu2  ;;  %v4135_v42 = vpop.f32.mrf.mxu3 }
 0x16c   :  { %5481 = vst [vmem:[#allocation89_spill] sm:$0xff] %v4133_v52  ;;  %v4137_v59 = vpop.f32.mrf.mxu0  ;;  %v4139_v60 = vpop.f32.mrf.mxu1 }
 0x16d   :  { %5482 = vst [vmem:[#allocation90_spill] sm:$0xff] %v4135_v42 }
 0x16e   :  { %5483 = vst [vmem:[#allocation91_spill] sm:$0xff] %v4137_v59 }
 0x16f   :  { %5484 = vst [vmem:[#allocation92_spill] sm:$0xff] %v4139_v60  ;;  %v3131_v60 = vld [vmem:[%s5388_s1 + $0x168] sm:$0x70] }
 0x173   :  { %v4147_v55 = vpop.f32.mrf.mxu2  ;;  %v4149_v51 = vpop.f32.mrf.mxu3 }
 0x174   :  { %5485 = vst [vmem:[#allocation93_spill] sm:$0xff] %v4147_v55  ;;  %v4153_v52 = vpop.f32.mrf.mxu0  ;;  %v4155_v42 = vpop.f32.mrf.mxu1  ;;  %v3264_v55 = vld [vmem:[%s5388_s1 + $0x14c] sm:$0xf] }
 0x175   :  { %5486 = vst [vmem:[#allocation94_spill] sm:$0xff] %v4149_v51  ;;  %v3267_v51 = vld [vmem:[%s5388_s1 + $0x15c] sm:$0x70]  ;;  %v3134_v58 = vor.u32 %v3264_v55, %v3131_v60  ;;  %v3123_v60 = vld [vmem:[%s5388_s1 + $0x160] sm:$0x70] }
 0x176   :  { %5487 = vst [vmem:[#allocation95_spill] sm:$0xff] %v4153_v52  ;;  %v3130_v52 = vor.u32 %v3268_v63, %v3129_v36 }
 0x177   :  { %5488 = vst [vmem:[#allocation96_spill] sm:$0xff] %v4155_v42  ;;  %2997 = vmatmul.msk.bf16.gmra.mxu0 %vm404_vm4, %v4151_v27  ;;  %3005 = vmatmul.msk.bf16.gmra.mxu1 %vm404_vm4, %v4151_v27  ;;  %v3121_v42 = vld [vmem:[%s5388_s1 + $0x140] sm:$0xf]  ;;  %v1660_v22 = vsel %vm429_vm0, %v3134_v58, 0  ;;  %v3222_v58 = vld [vmem:[%s5387_s0 + $0x74] sm:$0xf0] }
 0x178   :  { %3013 = vmatmul.msk.bf16.gmra.mxu2 %vm404_vm4, %v4151_v27  ;;  %3021 = vmatmul.msk.bf16.gmra.mxu3 %vm404_vm4, %v4151_v27  ;;  %v3122_v59 = vor.u32 %v3267_v51, %v3121_v42  ;;  %v1657_v36 = vsel %vm429_vm0, %v3130_v52, 0  ;;  %v3263_v51 = vld [vmem:[%s5388_s1 + $0x144] sm:$0xf]  ;;  %v2925_v42 = vld [vmem:[%s5387_s0 + $0x70] sm:$0xf] }
 0x179   :  { %1778 = vmatpush.bf16.msra.mxu2 %v1657_v36  ;;  %1827 = vmatpush.bf16.msra.mxu3 %v1660_v22  ;;  %v3126_v55 = vor.u32 %v3263_v51, %v3123_v60 }
 0x17a   :  { %v1651_v23 = vsel %vm429_vm0, %v3122_v59, 0 }
 0x17b   :  { %v4183_v26 = vpop.f32.mrf.mxu2  ;;  %v4185_v25 = vpop.f32.mrf.mxu3  ;;  %1680 = vmatpush.bf16.msra.mxu0 %v1651_v23  ;;  %v1654_v52 = vsel %vm429_vm0, %v3126_v55, 0 }
 0x17c   :  { %5489 = vst [vmem:[#allocation97_spill] sm:$0xff] %v4183_v26  ;;  %v4188_v63 = vpop.f32.mrf.mxu0  ;;  %v4190_v24 = vpop.f32.mrf.mxu1  ;;  %1729 = vmatpush.bf16.msra.mxu1 %v1654_v52 }
 0x17d   :  { %5490 = vst [vmem:[#allocation98_spill] sm:$0xff] %v4185_v25 }
 0x17e   :  { %5491 = vst [vmem:[#allocation99_spill] sm:$0xff] %v4188_v63 }
 0x17f   :  { %5492 = vst [vmem:[#allocation100_spill] sm:$0xff] %v4190_v24  ;;  %v4211_v24 = vor.u32 %v3222_v58, %v2925_v42  ;;  %1681 = vmatpush.bf16.msra.mxu0 %v3090_v13 }
 0x183   :  { %v4207_v59 = vpop.f32.mrf.mxu2  ;;  %v4209_v36 = vpop.f32.mrf.mxu3 }
 0x184   :  { %5493 = vst [vmem:[#allocation101_spill] sm:$0xff] %v4207_v59  ;;  %v4213_v23 = vpop.f32.mrf.mxu0  ;;  %v4215_v22 = vpop.f32.mrf.mxu1 }
 0x185   :  { %5494 = vst [vmem:[#allocation102_spill] sm:$0xff] %v4209_v36 }
 0x186   :  { %5495 = vst [vmem:[#allocation103_spill] sm:$0xff] %v4213_v23 }
 0x187   :  { %5496 = vst [vmem:[#allocation104_spill] sm:$0xff] %v4215_v22  ;;  %2998 = vmatmul.msk.bf16.gmra.mxu0 %vm404_vm4, %v4211_v24  ;;  %3006 = vmatmul.msk.bf16.gmra.mxu1 %vm404_vm4, %v4211_v24 }
 0x188   :  { %3014 = vmatmul.msk.bf16.gmra.mxu2 %vm404_vm4, %v4211_v24  ;;  %3022 = vmatmul.msk.bf16.gmra.mxu3 %vm404_vm4, %v4211_v24 }
 0x18b   :  { %v4225_v51 = vpop.f32.mrf.mxu2  ;;  %v4227_v60 = vpop.f32.mrf.mxu3 }
 0x18c   :  { %5497 = vst [vmem:[#allocation105_spill] sm:$0xff] %v4225_v51  ;;  %v4229_v55 = vpop.f32.mrf.mxu0  ;;  %v4231_v52 = vpop.f32.mrf.mxu1 }
 0x18d   :  { %5498 = vst [vmem:[#allocation106_spill] sm:$0xff] %v4227_v60 }
 0x18e   :  { %5499 = vst [vmem:[#allocation107_spill] sm:$0xff] %v4229_v55 }
 0x18f   :  { %5500 = vst [vmem:[#allocation108_spill] sm:$0xff] %v4231_v52 }
 0x193   :  { %v4233_v42 = vpop.f32.mrf.mxu2  ;;  %v4235_v58 = vpop.f32.mrf.mxu3 }
 0x194   :  { %5501 = vst [vmem:[#allocation109_spill] sm:$0xff] %v4233_v42  ;;  %v4237_v22 = vpop.f32.mrf.mxu0  ;;  %v4239_v23 = vpop.f32.mrf.mxu1 }
 0x195   :  { %5502 = vst [vmem:[#allocation110_spill] sm:$0xff] %v4235_v58 }
 0x197   :  { %3023 = vmatmul.msk.bf16.vlgmr.msrb.gmra.mxu0 %vm404_vm4, %v3935_v28  ;;  %3031 = vmatmul.msk.bf16.vlgmr.msrb.gmra.mxu1 %vm404_vm4, %v3935_v28 }
 0x198   :  { %3039 = vmatmul.msk.bf16.vlgmr.msrb.gmra.mxu2 %vm404_vm4, %v3935_v28  ;;  %3047 = vmatmul.msk.bf16.vlgmr.msrb.gmra.mxu3 %vm404_vm4, %v3935_v28 }
 0x19b   :  { %v4249_v52 = vpop.f32.mrf.mxu2  ;;  %v4251_v42 = vpop.f32.mrf.mxu3 }
 0x19c   :  { %v4253_v58 = vpop.f32.mrf.mxu0  ;;  %v4255_v55 = vpop.f32.mrf.mxu1 }
 0x1a3   :  { %v4257_v60 = vpop.f32.mrf.mxu2  ;;  %v4259_v51 = vpop.f32.mrf.mxu3 }
 0x1a4   :  { %v4261_v36 = vpop.f32.mrf.mxu0  ;;  %v4263_v59 = vpop.f32.mrf.mxu1 }
 0x1a7   :  { %3024 = vmatmul.msk.bf16.gmra.mxu0 %vm404_vm4, %v3967_v53  ;;  %3032 = vmatmul.msk.bf16.gmra.mxu1 %vm404_vm4, %v3967_v53 }
 0x1a8   :  { %3040 = vmatmul.msk.bf16.gmra.mxu2 %vm404_vm4, %v3967_v53  ;;  %3048 = vmatmul.msk.bf16.gmra.mxu3 %vm404_vm4, %v3967_v53  ;;  %v3097_v53 = vld [vmem:[%s5388_s1 + $0x108] sm:$0xf] }
 0x1a9   :  { %v3098_v15 = vor.u32 %v3260_v17, %v3097_v53 }
 0x1ab   :  { %v4273_v28 = vpop.f32.mrf.mxu2  ;;  %v4275_v63 = vpop.f32.mrf.mxu3  ;;  %1779 = vmatpush.bf16.msra.mxu2 %v3098_v15 }
 0x1ac   :  { %v4277_v25 = vpop.f32.mrf.mxu0  ;;  %v4279_v26 = vpop.f32.mrf.mxu1 }
 0x1b3   :  { %v4281_v5 = vpop.f32.mrf.mxu2  ;;  %v4283_v21 = vpop.f32.mrf.mxu3 }
 0x1b4   :  { %v4285_v20 = vpop.f32.mrf.mxu0  ;;  %v4287_v18 = vpop.f32.mrf.mxu1 }
 0x1b7   :  { %3025 = vmatmul.msk.bf16.gmra.mxu0 %vm404_vm4, %v3999_v49  ;;  %3033 = vmatmul.msk.bf16.gmra.mxu1 %vm404_vm4, %v3999_v49 }
 0x1b8   :  { %3041 = vmatmul.msk.bf16.gmra.mxu2 %vm404_vm4, %v3999_v49  ;;  %3049 = vmatmul.msk.bf16.gmra.mxu3 %vm404_vm4, %v3999_v49  ;;  %v3256_v49 = vld [vmem:[%s5388_s1 + $0x10c] sm:$0xf] }
 0x1b9   :  { %v3102_v12 = vor.u32 %v3256_v49, %v3099_v44  ;;  %v3094_v44 = vor.u32 %v3255_v9, %v3091_v14 }
 0x1bb   :  { %v4315_v11 = vpop.f32.mrf.mxu2  ;;  %v4317_v10 = vpop.f32.mrf.mxu3  ;;  %1828 = vmatpush.bf16.msra.mxu3 %v3102_v12  ;;  %1730 = vmatpush.bf16.msra.mxu1 %v3094_v44 }
 0x1bc   :  { %v4319_v17 = vpop.f32.mrf.mxu0  ;;  %v4321_v53 = vpop.f32.mrf.mxu1 }
 0x1bd   :  { %5503 = vst [vmem:[#allocation111_spill] sm:$0xff] %v4321_v53 }
 0x1c3   :  { %v4329_v16 = vpop.f32.mrf.mxu2  ;;  %v4331_v49 = vpop.f32.mrf.mxu3 }
 0x1c4   :  { %5504 = vst [vmem:[#allocation112_spill] sm:$0xff] %v4329_v16  ;;  %v4333_v15 = vpop.f32.mrf.mxu0  ;;  %v4335_v7 = vpop.f32.mrf.mxu1 }
 0x1c5   :  { %5505 = vst [vmem:[#allocation113_spill] sm:$0xff] %v4331_v49 }
 0x1c6   :  { %5506 = vst [vmem:[#allocation114_spill] sm:$0xff] %v4333_v15 }
 0x1c7   :  { %5507 = vst [vmem:[#allocation115_spill] sm:$0xff] %v4335_v7  ;;  %3026 = vmatmul.msk.bf16.gmra.mxu0 %vm404_vm4, %v4055_v8  ;;  %3034 = vmatmul.msk.bf16.gmra.mxu1 %vm404_vm4, %v4055_v8 }
 0x1c8   :  { %3042 = vmatmul.msk.bf16.gmra.mxu2 %vm404_vm4, %v4055_v8  ;;  %3050 = vmatmul.msk.bf16.gmra.mxu3 %vm404_vm4, %v4055_v8 }
 0x1cb   :  { %v4345_v9 = vpop.f32.mrf.mxu2  ;;  %v4347_v12 = vpop.f32.mrf.mxu3 }
 0x1cc   :  { %5508 = vst [vmem:[#allocation116_spill] sm:$0xff] %v4345_v9  ;;  %v4349_v13 = vpop.f32.mrf.mxu0  ;;  %v4351_v14 = vpop.f32.mrf.mxu1 }
 0x1cd   :  { %5509 = vst [vmem:[#allocation117_spill] sm:$0xff] %v4347_v12 }
 0x1ce   :  { %5510 = vst [vmem:[#allocation118_spill] sm:$0xff] %v4349_v13 }
 0x1cf   :  { %5511 = vst [vmem:[#allocation119_spill] sm:$0xff] %v4351_v14 }
 0x1d3   :  { %v4353_v44 = vpop.f32.mrf.mxu2  ;;  %v4355_v6 = vpop.f32.mrf.mxu3 }
 0x1d4   :  { %5512 = vst [vmem:[#allocation120_spill] sm:$0xff] %v4353_v44  ;;  %v4357_v4 = vpop.f32.mrf.mxu0  ;;  %v4359_v7 = vpop.f32.mrf.mxu1 }
 0x1d5   :  { %5513 = vst [vmem:[#allocation121_spill] sm:$0xff] %v4355_v6 }
 0x1d6   :  { %5514 = vst [vmem:[#allocation122_spill] sm:$0xff] %v4357_v4 }
 0x1d7   :  { %5515 = vst [vmem:[#allocation123_spill] sm:$0xff] %v4359_v7  ;;  %3027 = vmatmul.msk.bf16.gmra.mxu0 %vm404_vm4, %v4087_v54  ;;  %3035 = vmatmul.msk.bf16.gmra.mxu1 %vm404_vm4, %v4087_v54 }
 0x1d8   :  { %3043 = vmatmul.msk.bf16.gmra.mxu2 %vm404_vm4, %v4087_v54  ;;  %3051 = vmatmul.msk.bf16.gmra.mxu3 %vm404_vm4, %v4087_v54 }
 0x1db   :  { %v4369_v8 = vpop.f32.mrf.mxu2  ;;  %v4371_v44 = vpop.f32.mrf.mxu3 }
 0x1dc   :  { %5516 = vst [vmem:[#allocation124_spill] sm:$0xff] %v4369_v8  ;;  %v4373_v6 = vpop.f32.mrf.mxu0  ;;  %v4375_v4 = vpop.f32.mrf.mxu1 }
 0x1dd   :  { %5517 = vst [vmem:[#allocation125_spill] sm:$0xff] %v4371_v44 }
 0x1de   :  { %5518 = vst [vmem:[#allocation126_spill] sm:$0xff] %v4373_v6 }
 0x1df   :  { %5519 = vst [vmem:[#allocation127_spill] sm:$0xff] %v4375_v4 }
 0x1e3   :  { %v4377_v7 = vpop.f32.mrf.mxu2  ;;  %v4379_v14 = vpop.f32.mrf.mxu3 }
 0x1e4   :  { %5520 = vst [vmem:[#allocation128_spill] sm:$0xff] %v4377_v7  ;;  %v4381_v13 = vpop.f32.mrf.mxu0  ;;  %v4383_v12 = vpop.f32.mrf.mxu1 }
 0x1e5   :  { %5521 = vst [vmem:[#allocation129_spill] sm:$0xff] %v4379_v14 }
 0x1e6   :  { %5522 = vst [vmem:[#allocation130_spill] sm:$0xff] %v4381_v13 }
 0x1e7   :  { %5523 = vst [vmem:[#allocation131_spill] sm:$0xff] %v4383_v12  ;;  %3028 = vmatmul.msk.bf16.gmra.mxu0 %vm404_vm4, %v4119_v50  ;;  %3036 = vmatmul.msk.bf16.gmra.mxu1 %vm404_vm4, %v4119_v50 }
 0x1e8   :  { %3044 = vmatmul.msk.bf16.gmra.mxu2 %vm404_vm4, %v4119_v50  ;;  %3052 = vmatmul.msk.bf16.gmra.mxu3 %vm404_vm4, %v4119_v50  ;;  %v3145_v50 = vld [vmem:[%s5388_s1 + $0x158] sm:$0xf] }
 0x1eb   :  { %v4393_v54 = vpop.f32.mrf.mxu2  ;;  %v4395_v7 = vpop.f32.mrf.mxu3 }
 0x1ec   :  { %5524 = vst [vmem:[#allocation132_spill] sm:$0xff] %v4393_v54  ;;  %v4397_v14 = vpop.f32.mrf.mxu0  ;;  %v4399_v13 = vpop.f32.mrf.mxu1 }
 0x1ed   :  { %5525 = vst [vmem:[#allocation133_spill] sm:$0xff] %v4395_v7 }
 0x1ee   :  { %5526 = vst [vmem:[#allocation134_spill] sm:$0xff] %v4397_v14 }
 0x1ef   :  { %5527 = vst [vmem:[#allocation135_spill] sm:$0xff] %v4399_v13  ;;  %v3147_v13 = vld [vmem:[%s5388_s1 + $0x178] sm:$0x70] }
 0x1f3   :  { %v4401_v12 = vpop.f32.mrf.mxu2  ;;  %v4403_v4 = vpop.f32.mrf.mxu3 }
 0x1f4   :  { %5528 = vst [vmem:[#allocation136_spill] sm:$0xff] %v4401_v12  ;;  %v4405_v6 = vpop.f32.mrf.mxu0  ;;  %v4407_v44 = vpop.f32.mrf.mxu1  ;;  %v3269_v12 = vld [vmem:[%s5388_s1 + $0x16c] sm:$0x70] }
 0x1f5   :  { %5529 = vst [vmem:[#allocation137_spill] sm:$0xff] %v4403_v4 }
 0x1f6   :  { %5530 = vst [vmem:[#allocation138_spill] sm:$0xff] %v4405_v6  ;;  %v3137_v6 = vld [vmem:[%s5388_s1 + $0x150] sm:$0xf] }
 0x1f7   :  { %5531 = vst [vmem:[#allocation139_spill] sm:$0xff] %v4407_v44  ;;  %3029 = vmatmul.msk.bf16.gmra.mxu0 %vm404_vm4, %v4151_v27  ;;  %3037 = vmatmul.msk.bf16.gmra.mxu1 %vm404_vm4, %v4151_v27  ;;  %v3270_v44 = vld [vmem:[%s5388_s1 + $0x174] sm:$0x70]  ;;  %v3138_v14 = vor.u32 %v3269_v12, %v3137_v6  ;;  %v3265_v6 = vld [vmem:[%s5388_s1 + $0x154] sm:$0xf] }
 0x1f8   :  { %3045 = vmatmul.msk.bf16.gmra.mxu2 %vm404_vm4, %v4151_v27  ;;  %3053 = vmatmul.msk.bf16.gmra.mxu3 %vm404_vm4, %v4151_v27  ;;  %v3146_v4 = vor.u32 %v3270_v44, %v3145_v50  ;;  %v3266_v27 = vld [vmem:[%s5388_s1 + $0x15c] sm:$0xf]  ;;  %v3139_v12 = vld [vmem:[%s5388_s1 + $0x170] sm:$0x70] }
 0x1f9   :  { %v3150_v7 = vor.u32 %v3266_v27, %v3147_v13  ;;  %v1663_v3 = vsel %vm429_vm0, %v3138_v14, 0 }
 0x1fa   :  { %v1669_v44 = vsel %vm429_vm0, %v3146_v4, 0  ;;  %1876 = vmatpush.bf16.msrb.mxu0 %v1663_v3  ;;  %v3142_v4 = vor.u32 %v3265_v6, %v3139_v12  ;;  %v1399_v3 = vld [vmem:[%s5387_s0 + $0x8] sm:$0xe]  ;;  %v3274_v6 = vld [vmem:[%s5387_s0 + $0x4] sm:$0x1] }
 0x1fb   :  { %v4435_v54 = vpop.f32.mrf.mxu2  ;;  %v4437_v8 = vpop.f32.mrf.mxu3  ;;  %1974 = vmatpush.bf16.msrb.mxu2 %v1669_v44  ;;  %v1672_v15 = vsel %vm429_vm0, %v3150_v7, 0  ;;  %v1451_v12 = vrot.slane %v3274_v6, 5 }
 0x1fc   :  { %5532 = vst [vmem:[#allocation140_spill] sm:$0xff] %v4435_v54  ;;  %v4440_v50 = vpop.f32.mrf.mxu0  ;;  %v4442_v9 = vpop.f32.mrf.mxu1  ;;  %2023 = vmatpush.bf16.msrb.mxu3 %v1672_v15  ;;  %v1666_v13 = vsel %vm429_vm0, %v3142_v4, 0  ;;  %v3056_v4 = vrot.slane %v1399_v3, 9 }
 0x1fd   :  { %5533 = vst [vmem:[#allocation141_spill] sm:$0xff] %v4437_v8  ;;  %1925 = vmatpush.bf16.msrb.mxu1 %v1666_v13  ;;  %v3275_v13 = vld [vmem:[%s5387_s0 + $0xc] sm:$0x1] }
 0x1fe   :  { %5534 = vst [vmem:[#allocation142_spill] sm:$0xff] %v4440_v50 }
 0x1ff   :  { %5535 = vst [vmem:[#allocation143_spill] sm:$0xff] %v4442_v9  ;;  %v1398_v9 = vld [vmem:[%s5387_s0] sm:$0xe] }
 0x200   :  { %v3055_v15 = vrot.slane %v1398_v9, 9 }
 0x202   :  { %v1452_v3 = vsel %vm4481_vm7, %v3055_v15, %v1451_v12  ;;  %v3276_v15 = vld [vmem:[%s5387_s0 + $0x14] sm:$0x1] }
 0x203   :  { %v4453_v27 = vpop.f32.mrf.mxu2  ;;  %v4455_v44 = vpop.f32.mrf.mxu3  ;;  %v1530_v50 = vunpack.c.l.b16 %v1452_v3  ;;  %v1459_v12 = vrot.slane %v3276_v15, 5  ;;  %v3277_v3 = vld [vmem:[%s5387_s0 + $0x1c] sm:$0x1] }
 0x204   :  { %5536 = vst [vmem:[#allocation144_spill] sm:$0xff] %v4453_v27  ;;  %v4457_v14 = vpop.f32.mrf.mxu0  ;;  %v4459_v7 = vpop.f32.mrf.mxu1 }
 0x205   :  { %5537 = vst [vmem:[#allocation145_spill] sm:$0xff] %v4455_v44 }
 0x206   :  { %5538 = vst [vmem:[#allocation146_spill] sm:$0xff] %v4457_v14 }
 0x207   :  { %5539 = vst [vmem:[#allocation147_spill] sm:$0xff] %v4459_v7  ;;  %3030 = vmatmul.msk.bf16.gmra.mxu0 %vm404_vm4, %v4211_v24  ;;  %3038 = vmatmul.msk.bf16.gmra.mxu1 %vm404_vm4, %v4211_v24  ;;  %v1455_v7 = vrot.slane %v3275_v13, 5 }
 0x208   :  { %3046 = vmatmul.msk.bf16.gmra.mxu2 %vm404_vm4, %v4211_v24  ;;  %3054 = vmatmul.msk.bf16.gmra.mxu3 %vm404_vm4, %v4211_v24 }
 0x209   :  { %v1456_v6 = vsel %vm4481_vm7, %v3056_v4, %v1455_v7  ;;  %v1401_v7 = vld [vmem:[%s5387_s0 + $0x18] sm:$0xe] }
 0x20a   :  { %v1531_v13 = vunpack.c.l.b16 %v1456_v6  ;;  %v3058_v4 = vrot.slane %v1401_v7, 9  ;;  %v1463_v6 = vrot.slane %v3277_v3, 5 }
 0x20b   :  { %v4485_v44 = vpop.f32.mrf.mxu2  ;;  %v4487_v27 = vpop.f32.mrf.mxu3 }
 0x20c   :  { %5542 = vst [vmem:[#allocation148_spill] sm:$0xff] %v4485_v44  ;;  %v4489_v24 = vpop.f32.mrf.mxu0  ;;  %v4491_v9 = vpop.f32.mrf.mxu1  ;;  %v4501_v2 = vpack.c.b16 %v1531_v13, %v1530_v50  ;;  %v1464_v15 = vsel %vm4481_vm7, %v3058_v4, %v1463_v6 }
 0x20d   :  { %5543 = vst [vmem:[#allocation149_spill] sm:$0xff] %v4487_v27 }
 0x20e   :  { %5544 = vst [vmem:[#allocation150_spill] sm:$0xff] %v4489_v24 }
 0x20f   :  { %5545 = vst [vmem:[#allocation151_spill] sm:$0xff] %v4491_v9  ;;  %v1400_v9 = vld [vmem:[%s5387_s0 + $0x10] sm:$0xe] }
 0x210   :  { %v3057_v50 = vrot.slane %v1400_v9, 9 }
 0x212   :  { %v1460_v9 = vsel %vm4481_vm7, %v3057_v50, %v1459_v12  ;;  %v1403_v50 = vld [vmem:[%s5387_s0 + $0x28] sm:$0xe]  ;;  %v3278_v12 = vld [vmem:[%s5387_s0 + $0x24] sm:$0x1] }
 0x213   :  { %v4497_v8 = vpop.f32.mrf.mxu2  ;;  %v4499_v54 = vpop.f32.mrf.mxu3  ;;  %v1532_v7 = vunpack.c.l.b16 %v1460_v9  ;;  %v1467_v4 = vrot.slane %v3278_v12, 5  ;;  %v3060_v6 = vrot.slane %v1403_v50, 9  ;;  %v3279_v9 = vld [vmem:[%s5387_s0 + $0x2c] sm:$0x1] }
 0x214   :  { %5546 = vst [vmem:[#allocation152_spill] sm:$0xff] %v4497_v8  ;;  %v4503_v44 = vpop.f32.mrf.mxu0  ;;  %v4505_v27 = vpop.f32.mrf.mxu1  ;;  %v1533_v8 = vunpack.c.l.b16 %v1464_v15  ;;  %v1471_v15 = vrot.slane %v3279_v9, 5 }
 0x215   :  { %5547 = vst [vmem:[#allocation153_spill] sm:$0xff] %v4499_v54 }
 0x216   :  { %5548 = vst [vmem:[#allocation154_spill] sm:$0xff] %v4503_v44  ;;  %v4543_v3 = vpack.c.b16 %v1533_v8, %v1532_v7  ;;  %v1472_v12 = vsel %vm4481_vm7, %v3060_v6, %v1471_v15 }
 0x217   :  { %5549 = vst [vmem:[#allocation155_spill] sm:$0xff] %v4505_v27  ;;  %3151 = vmatmul.msk.bf16.vlgmr.msra.gmra.mxu0 %vm404_vm4, %v4501_v2  ;;  %3159 = vmatmul.msk.bf16.vlgmr.msra.gmra.mxu1 %vm404_vm4, %v4501_v2 }
 0x218   :  { %3167 = vmatmul.msk.bf16.vlgmr.msra.gmra.mxu2 %vm404_vm4, %v4501_v2  ;;  %3175 = vmatmul.msk.bf16.vlgmr.msra.gmra.mxu3 %vm404_vm4, %v4501_v2 }
 0x21b   :  { %v4527_v13 = vpop.f32.mrf.mxu2  ;;  %v4529_v27 = vpop.f32.mrf.mxu3 }
 0x21c   :  { %5550 = vst [vmem:[#allocation156_spill] sm:$0xff] %v4527_v13  ;;  %v4531_v44 = vpop.f32.mrf.mxu0  ;;  %v4533_v54 = vpop.f32.mrf.mxu1 }
 0x21d   :  { %5551 = vst [vmem:[#allocation157_spill] sm:$0xff] %v4529_v27 }
 0x21e   :  { %5552 = vst [vmem:[#allocation158_spill] sm:$0xff] %v4531_v44 }
 0x21f   :  { %5553 = vst [vmem:[#allocation159_spill] sm:$0xff] %v4533_v54  ;;  %v1402_v54 = vld [vmem:[%s5387_s0 + $0x20] sm:$0xe] }
 0x220   :  { %v3059_v8 = vrot.slane %v1402_v54, 9 }
 0x222   :  { %v1468_v54 = vsel %vm4481_vm7, %v3059_v8, %v1467_v4  ;;  %v1405_v8 = vld [vmem:[%s5387_s0 + $0x38] sm:$0xe]  ;;  %v3280_v4 = vld [vmem:[%s5387_s0 + $0x34] sm:$0x1] }
 0x223   :  { %v4539_v24 = vpop.f32.mrf.mxu2  ;;  %v4541_v49 = vpop.f32.mrf.mxu3  ;;  %v1534_v50 = vunpack.c.l.b16 %v1468_v54  ;;  %v1475_v6 = vrot.slane %v3280_v4, 5  ;;  %v3062_v15 = vrot.slane %v1405_v8, 9  ;;  %v3281_v54 = vld [vmem:[%s5387_s0 + $0x3c] sm:$0x1]  ;;  %v3105_v8 = vld [vmem:[%s5388_s1 + $0x110] sm:$0xf] }
 0x224   :  { %5554 = vst [vmem:[#allocation160_spill] sm:$0xff] %v4539_v24  ;;  %v4545_v13 = vpop.f32.mrf.mxu0  ;;  %v4547_v27 = vpop.f32.mrf.mxu1  ;;  %v1535_v24 = vunpack.c.l.b16 %v1472_v12  ;;  %v1479_v12 = vrot.slane %v3281_v54, 5  ;;  %v3261_v54 = vld [vmem:[%s5388_s1 + $0x12c] sm:$0xf0] }
 0x225   :  { %5555 = vst [vmem:[#allocation161_spill] sm:$0xff] %v4541_v49 }
 0x226   :  { %5556 = vst [vmem:[#allocation162_spill] sm:$0xff] %v4545_v13  ;;  %v4585_v9 = vpack.c.b16 %v1535_v24, %v1534_v50  ;;  %v3262_v50 = vld [vmem:[%s5388_s1 + $0x134] sm:$0xf0]  ;;  %v1480_v53 = vsel %vm4481_vm7, %v3062_v15, %v1479_v12  ;;  %v1406_v15 = vld [vmem:[%s5387_s0 + $0x40] sm:$0xe] }
 0x227   :  { %5557 = vst [vmem:[#allocation163_spill] sm:$0xff] %v4547_v27  ;;  %3152 = vmatmul.msk.bf16.gmra.mxu0 %vm404_vm4, %v4543_v3  ;;  %3160 = vmatmul.msk.bf16.gmra.mxu1 %vm404_vm4, %v4543_v3  ;;  %v3282_v12 = vld [vmem:[%s5387_s0 + $0x44] sm:$0x1] }
 0x228   :  { %3168 = vmatmul.msk.bf16.gmra.mxu2 %vm404_vm4, %v4543_v3  ;;  %3176 = vmatmul.msk.bf16.gmra.mxu3 %vm404_vm4, %v4543_v3 }
 0x22b   :  { %v4569_v7 = vpop.f32.mrf.mxu2  ;;  %v4571_v27 = vpop.f32.mrf.mxu3 }
 0x22c   :  { %5558 = vst [vmem:[#allocation164_spill] sm:$0xff] %v4569_v7  ;;  %v4573_v13 = vpop.f32.mrf.mxu0  ;;  %v4575_v49 = vpop.f32.mrf.mxu1 }
 0x22d   :  { %5559 = vst [vmem:[#allocation165_spill] sm:$0xff] %v4571_v27 }
 0x22e   :  { %5560 = vst [vmem:[#allocation166_spill] sm:$0xff] %v4573_v13 }
 0x22f   :  { %5561 = vst [vmem:[#allocation167_spill] sm:$0xff] %v4575_v49  ;;  %v1404_v49 = vld [vmem:[%s5387_s0 + $0x30] sm:$0xe] }
 0x230   :  { %v3061_v24 = vrot.slane %v1404_v49, 9  ;;  %v3113_v49 = vld [vmem:[%s5388_s1 + $0x118] sm:$0xf] }
 0x231   :  { %v3114_v4 = vor.u32 %v3262_v50, %v3113_v49 }
 0x232   :  { %v1476_v0 = vsel %vm4481_vm7, %v3061_v24, %v1475_v6 }
 0x233   :  { %v4581_v44 = vpop.f32.mrf.mxu2  ;;  %v4583_v1 = vpop.f32.mrf.mxu3  ;;  %1975 = vmatpush.bf16.msrb.mxu2 %v3114_v4  ;;  %v1536_v4 = vunpack.c.l.b16 %v1476_v0  ;;  %v1407_v0 = vld [vmem:[%s5387_s0 + $0x48] sm:$0xe] }
 0x234   :  { %5562 = vst [vmem:[#allocation168_spill] sm:$0xff] %v4581_v44  ;;  %v4587_v7 = vpop.f32.mrf.mxu0  ;;  %v4589_v27 = vpop.f32.mrf.mxu1 }
 0x235   :  { %5563 = vst [vmem:[#allocation169_spill] sm:$0xff] %v4583_v1  ;;  %v3106_v1 = vor.u32 %v3261_v54, %v3105_v8  ;;  %v1537_v54 = vunpack.c.l.b16 %v1480_v53  ;;  %v3063_v53 = vrot.slane %v1406_v15, 9 }
 0x236   :  { %5564 = vst [vmem:[#allocation170_spill] sm:$0xff] %v4587_v7  ;;  %v3115_v7 = vld [vmem:[%s5388_s1 + $0x138] sm:$0xf0] }
 0x237   :  { %5565 = vst [vmem:[#allocation171_spill] sm:$0xff] %v4589_v27  ;;  %3153 = vmatmul.msk.bf16.gmra.mxu0 %vm404_vm4, %v4585_v9  ;;  %3161 = vmatmul.msk.bf16.gmra.mxu1 %vm404_vm4, %v4585_v9  ;;  %v3258_v27 = vld [vmem:[%s5388_s1 + $0x11c] sm:$0xf]  ;;  %v4651_v6 = vpack.c.b16 %v1537_v54, %v1536_v4 }
 0x238   :  { %3169 = vmatmul.msk.bf16.gmra.mxu2 %vm404_vm4, %v4585_v9  ;;  %3177 = vmatmul.msk.bf16.gmra.mxu3 %vm404_vm4, %v4585_v9  ;;  %v3118_v44 = vor.u32 %v3258_v27, %v3115_v7  ;;  %v3257_v27 = vld [vmem:[%s5388_s1 + $0x114] sm:$0xf] }
 0x239   :  { %1877 = vmatpush.bf16.msrb.mxu0 %v3106_v1  ;;  %v3107_v7 = vld [vmem:[%s5388_s1 + $0x130] sm:$0xf0] }
 0x23a   :  { %2024 = vmatpush.bf16.msrb.mxu3 %v3118_v44  ;;  %v3110_v8 = vor.u32 %v3257_v27, %v3107_v7  ;;  %v1483_v27 = vrot.slane %v3282_v12, 5  ;;  %v3064_v7 = vrot.slane %v1407_v0, 9 }
 0x23b   :  { %v4629_v13 = vpop.f32.mrf.mxu2  ;;  %v4631_v16 = vpop.f32.mrf.mxu3 }
 0x23c   :  { %5566 = vst [vmem:[#allocation172_spill] sm:$0xff] %v4629_v13  ;;  %v4633_v49 = vpop.f32.mrf.mxu0  ;;  %v4635_v50 = vpop.f32.mrf.mxu1  ;;  %1926 = vmatpush.bf16.msrb.mxu1 %v3110_v8  ;;  %v3283_v8 = vld [vmem:[%s5387_s0 + $0x4c] sm:$0x1]  ;;  %v1484_v15 = vsel %vm4481_vm7, %v3063_v53, %v1483_v27  ;;  %v1409_v53 = vld [vmem:[%s5387_s0 + $0x58] sm:$0xe] }
 0x23d   :  { %5567 = vst [vmem:[#allocation173_spill] sm:$0xff] %v4631_v16  ;;  %v1487_v4 = vrot.slane %v3283_v8, 5  ;;  %v1538_v0 = vunpack.c.l.b16 %v1484_v15  ;;  %v3284_v27 = vld [vmem:[%s5387_s0 + $0x54] sm:$0x1]  ;;  %v3285_v15 = vld [vmem:[%s5387_s0 + $0x5c] sm:$0x1] }
 0x23e   :  { %5568 = vst [vmem:[#allocation174_spill] sm:$0xff] %v4633_v49 }
 0x23f   :  { %5569 = vst [vmem:[#allocation175_spill] sm:$0xff] %v4635_v50  ;;  %v1488_v12 = vsel %vm4481_vm7, %v3064_v7, %v1487_v4  ;;  %v1491_v7 = vrot.slane %v3284_v27, 5  ;;  %v3066_v4 = vrot.slane %v1409_v53, 9 }
 0x243   :  { %v4647_v50 = vpop.f32.mrf.mxu2  ;;  %v4649_v24 = vpop.f32.mrf.mxu3 }
 0x244   :  { %5570 = vst [vmem:[#allocation176_spill] sm:$0xff] %v4647_v50  ;;  %v4653_v1 = vpop.f32.mrf.mxu0  ;;  %v4655_v44 = vpop.f32.mrf.mxu1  ;;  %v1539_v50 = vunpack.c.l.b16 %v1488_v12  ;;  %v1495_v12 = vrot.slane %v3285_v15, 5 }
 0x245   :  { %5571 = vst [vmem:[#allocation177_spill] sm:$0xff] %v4649_v24 }
 0x246   :  { %5572 = vst [vmem:[#allocation178_spill] sm:$0xff] %v4653_v1  ;;  %v4693_v8 = vpack.c.b16 %v1539_v50, %v1538_v0  ;;  %v1496_v27 = vsel %vm4481_vm7, %v3066_v4, %v1495_v12 }
 0x247   :  { %5573 = vst [vmem:[#allocation179_spill] sm:$0xff] %v4655_v44  ;;  %3154 = vmatmul.msk.bf16.gmra.mxu0 %vm404_vm4, %v4651_v6  ;;  %3162 = vmatmul.msk.bf16.gmra.mxu1 %vm404_vm4, %v4651_v6 }
 0x248   :  { %3170 = vmatmul.msk.bf16.gmra.mxu2 %vm404_vm4, %v4651_v6  ;;  %3178 = vmatmul.msk.bf16.gmra.mxu3 %vm404_vm4, %v4651_v6 }
 0x24b   :  { %v4677_v54 = vpop.f32.mrf.mxu2  ;;  %v4679_v44 = vpop.f32.mrf.mxu3 }
 0x24c   :  { %5574 = vst [vmem:[#allocation180_spill] sm:$0xff] %v4677_v54  ;;  %v4681_v1 = vpop.f32.mrf.mxu0  ;;  %v4683_v24 = vpop.f32.mrf.mxu1 }
 0x24d   :  { %5575 = vst [vmem:[#allocation181_spill] sm:$0xff] %v4679_v44 }
 0x24e   :  { %5576 = vst [vmem:[#allocation182_spill] sm:$0xff] %v4681_v1 }
 0x24f   :  { %5577 = vst [vmem:[#allocation183_spill] sm:$0xff] %v4683_v24  ;;  %v1408_v24 = vld [vmem:[%s5387_s0 + $0x50] sm:$0xe] }
 0x250   :  { %v3065_v50 = vrot.slane %v1408_v24, 9 }
 0x252   :  { %v1492_v24 = vsel %vm4481_vm7, %v3065_v50, %v1491_v7  ;;  %v1411_v50 = vld [vmem:[%s5387_s0 + $0x68] sm:$0xe]  ;;  %v3286_v7 = vld [vmem:[%s5387_s0 + $0x64] sm:$0x1] }
 0x253   :  { %v4689_v49 = vpop.f32.mrf.mxu2  ;;  %v4691_v16 = vpop.f32.mrf.mxu3  ;;  %v1540_v53 = vunpack.c.l.b16 %v1492_v24  ;;  %v1499_v4 = vrot.slane %v3286_v7, 5  ;;  %v3068_v12 = vrot.slane %v1411_v50, 9  ;;  %v3287_v24 = vld [vmem:[%s5387_s0 + $0x6c] sm:$0x1] }
 0x254   :  { %5578 = vst [vmem:[#allocation184_spill] sm:$0xff] %v4689_v49  ;;  %v4695_v54 = vpop.f32.mrf.mxu0  ;;  %v4697_v44 = vpop.f32.mrf.mxu1  ;;  %v1541_v49 = vunpack.c.l.b16 %v1496_v27  ;;  %v1503_v27 = vrot.slane %v3287_v24, 5 }
 0x255   :  { %5579 = vst [vmem:[#allocation185_spill] sm:$0xff] %v4691_v16 }
 0x256   :  { %5580 = vst [vmem:[#allocation186_spill] sm:$0xff] %v4695_v54  ;;  %v4735_v15 = vpack.c.b16 %v1541_v49, %v1540_v53  ;;  %v1504_v7 = vsel %vm4481_vm7, %v3068_v12, %v1503_v27 }
 0x257   :  { %5581 = vst [vmem:[#allocation187_spill] sm:$0xff] %v4697_v44  ;;  %3155 = vmatmul.msk.bf16.gmra.mxu0 %vm404_vm4, %v4693_v8  ;;  %3163 = vmatmul.msk.bf16.gmra.mxu1 %vm404_vm4, %v4693_v8 }
 0x258   :  { %3171 = vmatmul.msk.bf16.gmra.mxu2 %vm404_vm4, %v4693_v8  ;;  %3179 = vmatmul.msk.bf16.gmra.mxu3 %vm404_vm4, %v4693_v8  ;;  %5588 = vst [vmem:[#allocation194_spill] sm:$0xff] %v4735_v15 }
 0x25b   :  { %v4719_v0 = vpop.f32.mrf.mxu2  ;;  %v4721_v44 = vpop.f32.mrf.mxu3 }
 0x25c   :  { %5582 = vst [vmem:[#allocation188_spill] sm:$0xff] %v4719_v0  ;;  %v4723_v54 = vpop.f32.mrf.mxu0  ;;  %v4725_v16 = vpop.f32.mrf.mxu1 }
 0x25d   :  { %5583 = vst [vmem:[#allocation189_spill] sm:$0xff] %v4721_v44 }
 0x25e   :  { %5584 = vst [vmem:[#allocation190_spill] sm:$0xff] %v4723_v54 }
 0x25f   :  { %5585 = vst [vmem:[#allocation191_spill] sm:$0xff] %v4725_v16  ;;  %v1410_v16 = vld [vmem:[%s5387_s0 + $0x60] sm:$0xe] }
 0x260   :  { %v3067_v49 = vrot.slane %v1410_v16, 9 }
 0x262   :  { %v1500_v16 = vsel %vm4481_vm7, %v3067_v49, %v1499_v4  ;;  %v1413_v49 = vld [vmem:[%s5387_s0 + $0x78] sm:$0xe]  ;;  %v3288_v4 = vld [vmem:[%s5387_s0 + $0x74] sm:$0x1] }
 0x263   :  { %v4731_v1 = vpop.f32.mrf.mxu2  ;;  %v4733_v13 = vpop.f32.mrf.mxu3  ;;  %v1542_v50 = vunpack.c.l.b16 %v1500_v16  ;;  %v1507_v12 = vrot.slane %v3288_v4, 5  ;;  %v3070_v27 = vrot.slane %v1413_v49, 9  ;;  %v3289_v16 = vld [vmem:[%s5387_s0 + $0x7c] sm:$0x1] }
 0x264   :  { %5586 = vst [vmem:[#allocation192_spill] sm:$0xff] %v4731_v1  ;;  %v4737_v0 = vpop.f32.mrf.mxu0  ;;  %v4739_v44 = vpop.f32.mrf.mxu1  ;;  %v1543_v1 = vunpack.c.l.b16 %v1504_v7  ;;  %v1511_v7 = vrot.slane %v3289_v16, 5 }
 0x265   :  { %5587 = vst [vmem:[#allocation193_spill] sm:$0xff] %v4733_v13 }
 0x266   :  { %5589 = vst [vmem:[#allocation195_spill] sm:$0xff] %v4737_v0  ;;  %v4777_v24 = vpack.c.b16 %v1543_v1, %v1542_v50  ;;  %v1512_v4 = vsel %vm4481_vm7, %v3070_v27, %v1511_v7  ;;  %v4844_v27 = vld [vmem:[%s5389_s2] sm:$0xff]  ;;  %v1016_v7 = vadd.f32 %v4237_v22, %v3685_v43  ;;  %v1114_v22 = vadd.f32 %v4249_v52, %v3697_v30  ;;  %s3316_s2 = smov [#allocation2]  }
 0x267   :  { %5590 = vst [vmem:[#allocation196_spill] sm:$0xff] %v4739_v44  ;;  %3156 = vmatmul.msk.bf16.gmra.mxu0 %vm404_vm4, %v4735_v15  ;;  %3164 = vmatmul.msk.bf16.gmra.mxu1 %vm404_vm4, %v4735_v15  ;;  %s2737_s12 = sshll.u32 %s3316_s2, 4  ;;  %s2738_s12 = int_to_ptr.vmem [resolvable:$true] %s2737_s12 }
 0x268   :  { %3172 = vmatmul.msk.bf16.gmra.mxu2 %vm404_vm4, %v4735_v15  ;;  %3180 = vmatmul.msk.bf16.gmra.mxu3 %vm404_vm4, %v4735_v15  ;;  %5597 = vst [vmem:[#allocation203_spill] sm:$0xff] %v4777_v24 }
 0x26b   :  { %v4761_v53 = vpop.f32.mrf.mxu2  ;;  %v4763_v44 = vpop.f32.mrf.mxu3 }
 0x26c   :  { %5591 = vst [vmem:[#allocation197_spill] sm:$0xff] %v4761_v53  ;;  %v4765_v0 = vpop.f32.mrf.mxu0  ;;  %v4767_v13 = vpop.f32.mrf.mxu1 }
 0x26d   :  { %5592 = vst [vmem:[#allocation198_spill] sm:$0xff] %v4763_v44 }
 0x26e   :  { %5593 = vst [vmem:[#allocation199_spill] sm:$0xff] %v4765_v0 }
 0x26f   :  { %5594 = vst [vmem:[#allocation200_spill] sm:$0xff] %v4767_v13  ;;  %v1412_v13 = vld [vmem:[%s5387_s0 + $0x70] sm:$0xe] }
 0x270   :  { %v3069_v1 = vrot.slane %v1412_v13, 9 }
 0x272   :  { %v1508_v13 = vsel %vm4481_vm7, %v3069_v1, %v1507_v12 }
 0x273   :  { %v4773_v54 = vpop.f32.mrf.mxu2  ;;  %v4775_v15 = vpop.f32.mrf.mxu3  ;;  %v1544_v49 = vunpack.c.l.b16 %v1508_v13  ;;  %v1065_v13 = vadd.f32 %v4239_v23, %v3687_v29 }
 0x274   :  { %5595 = vst [vmem:[#allocation201_spill] sm:$0xff] %v4773_v54  ;;  %v4779_v53 = vpop.f32.mrf.mxu0  ;;  %v4781_v44 = vpop.f32.mrf.mxu1  ;;  %v1545_v54 = vunpack.c.l.b16 %v1512_v4 }
 0x275   :  { %5596 = vst [vmem:[#allocation202_spill] sm:$0xff] %v4775_v15 }
 0x276   :  { %5598 = vst [vmem:[#allocation204_spill] sm:$0xff] %v4779_v53  ;;  %v4819_v16 = vpack.c.b16 %v1545_v54, %v1544_v49 }
 0x277   :  { %5599 = vst [vmem:[#allocation205_spill] sm:$0xff] %v4781_v44  ;;  %3157 = vmatmul.msk.bf16.gmra.mxu0 %vm404_vm4, %v4777_v24  ;;  %3165 = vmatmul.msk.bf16.gmra.mxu1 %vm404_vm4, %v4777_v24 }
 0x278   :  { %3173 = vmatmul.msk.bf16.gmra.mxu2 %vm404_vm4, %v4777_v24  ;;  %3181 = vmatmul.msk.bf16.gmra.mxu3 %vm404_vm4, %v4777_v24 }
 0x27b   :  { %v4803_v50 = vpop.f32.mrf.mxu2  ;;  %v4805_v44 = vpop.f32.mrf.mxu3 }
 0x27c   :  { %5600 = vst [vmem:[#allocation206_spill] sm:$0xff] %v4803_v50  ;;  %v4807_v53 = vpop.f32.mrf.mxu0  ;;  %v4809_v15 = vpop.f32.mrf.mxu1 }
 0x27d   :  { %5601 = vst [vmem:[#allocation207_spill] sm:$0xff] %v4805_v44 }
 0x27e   :  { %5602 = vst [vmem:[#allocation208_spill] sm:$0xff] %v4807_v53 }
 0x27f   :  { %5603 = vst [vmem:[#allocation209_spill] sm:$0xff] %v4809_v15 }
 0x283   :  { %v4815_v0 = vpop.f32.mrf.mxu2  ;;  %v4817_v24 = vpop.f32.mrf.mxu3 }
 0x284   :  { %5604 = vst [vmem:[#allocation210_spill] sm:$0xff] %v4815_v0  ;;  %v4821_v50 = vpop.f32.mrf.mxu0  ;;  %v4823_v44 = vpop.f32.mrf.mxu1 }
 0x285   :  { %5605 = vst [vmem:[#allocation211_spill] sm:$0xff] %v4817_v24 }
 0x286   :  { %5606 = vst [vmem:[#allocation212_spill] sm:$0xff] %v4821_v50 }
 0x287   :  { %5607 = vst [vmem:[#allocation213_spill] sm:$0xff] %v4823_v44  ;;  %3158 = vmatmul.msk.bf16.gmra.mxu0 %vm404_vm4, %v4819_v16  ;;  %3166 = vmatmul.msk.bf16.gmra.mxu1 %vm404_vm4, %v4819_v16 }
 0x288   :  { %3174 = vmatmul.msk.bf16.gmra.mxu2 %vm404_vm4, %v4819_v16  ;;  %3182 = vmatmul.msk.bf16.gmra.mxu3 %vm404_vm4, %v4819_v16 }
 0x28b   :  { %v4833_v14 = vpop.f32.mrf.mxu2  ;;  %v4835_v54 = vpop.f32.mrf.mxu3 }
 0x28c   :  { %5608 = vst [vmem:[#allocation214_spill] sm:$0xff] %v4833_v14  ;;  %v4837_v1 = vpop.f32.mrf.mxu0  ;;  %v4839_v12 = vpop.f32.mrf.mxu1 }
 0x28d   :  { %5609 = vst [vmem:[#allocation215_spill] sm:$0xff] %v4835_v54  ;;  %v4855_v54 = vperm.slane %v4844_v27, 0 }
 0x28e   :  { %5610 = vst [vmem:[#allocation216_spill] sm:$0xff] %v4837_v1 }
 0x28f   :  { %5611 = vst [vmem:[#allocation217_spill] sm:$0xff] %v4839_v12  ;;  %v4858_v12 = vperm.slane %v4844_v27, 1 }
 0x293   :  { %v4850_v4 = vpop.f32.mrf.mxu2  ;;  %v4852_v49 = vpop.f32.mrf.mxu3 }
 0x294   :  { %5612 = vst [vmem:[#allocation218_spill] sm:$0xff] %v4850_v4  ;;  %v1683_v1 = vpop.f32.mrf.mxu0  ;;  %v1732_v14 = vpop.f32.mrf.mxu1 }
 0x295   :  { %5613 = vst [vmem:[#allocation219_spill] sm:$0xff] %v4852_v49  ;;  %v2066_v44 = vadd.f32 %v1683_v1, %v1016_v7  ;;  %v2067_v50 = vadd.f32 %v1732_v14, %v1065_v13  ;;  %v4878_v14 = vperm.slane %v4844_v27, 3  ;;  %v1018_v1 = vadd.f32 %v4253_v58, %v3701_v32 }
 0x297   :  { %v2212_v24 = vadd.f32 %v4855_v54, %v2066_v44  ;;  %v2213_v43 = vadd.f32 %v4858_v12, %v2067_v50  ;;  %3183 = vmatmul.msk.bf16.vlgmr.msrb.gmra.mxu0 %vm404_vm4, %v4501_v2  ;;  %3191 = vmatmul.msk.bf16.vlgmr.msrb.gmra.mxu1 %vm404_vm4, %v4501_v2  ;;  %v1163_v44 = vadd.f32 %v4251_v42, %v3699_v31  ;;  %v4875_v50 = vperm.slane %v4844_v27, 2 }
 0x298   :  { %3199 = vmatmul.msk.bf16.vlgmr.msrb.gmra.mxu2 %vm404_vm4, %v4501_v2  ;;  %3207 = vmatmul.msk.bf16.vlgmr.msrb.gmra.mxu3 %vm404_vm4, %v4501_v2  ;;  %v1067_v2 = vadd.f32 %v4255_v55, %v3703_v33  ;;  %v1116_v55 = vadd.f32 %v4257_v60, %v3705_v34 }
 0x299   :  { %v2340_v29 = vmax.f32 %v2212_v24, 0.0  ;;  %v2341_v23 = vmax.f32 %v2213_v43, 0.0 }
 0x29b   :  { %v2468_v24 = vadd.f32 %v2341_v23, %v2340_v29  ;;  %v1781_v7 = vpop.f32.mrf.mxu2  ;;  %v1830_v13 = vpop.f32.mrf.mxu3  ;;  %v1165_v29 = vadd.f32 %v4259_v51, %v3707_v35 }
 0x29c   :  { %v2068_v43 = vadd.f32 %v1781_v7, %v1114_v22  ;;  %v2069_v30 = vadd.f32 %v1830_v13, %v1163_v44  ;;  %v1685_v52 = vpop.f32.mrf.mxu0  ;;  %v1734_v49 = vpop.f32.mrf.mxu1  ;;  %v1070_v44 = vadd.f32 %v4263_v59, %v3711_v38 }
 0x29d   :  { %v2074_v31 = vadd.f32 %v1685_v52, %v1018_v1  ;;  %v2075_v42 = vadd.f32 %v1734_v49, %v1067_v2  ;;  %v1021_v49 = vadd.f32 %v4261_v36, %v3709_v37 }
 0x29e   :  { %v2214_v4 = vadd.f32 %v4875_v50, %v2068_v43  ;;  %v2215_v0 = vadd.f32 %v4878_v14, %v2069_v30 }
 0x29f   :  { %v2220_v15 = vadd.f32 %v4855_v54, %v2074_v31  ;;  %v2221_v32 = vadd.f32 %v4858_v12, %v2075_v42  ;;  %v1023_v42 = vadd.f32 %v4277_v25, %v3725_v40 }
 0x2a0   :  { %v2342_v58 = vmax.f32 %v2214_v4, 0.0  ;;  %v2343_v22 = vmax.f32 %v2215_v0, 0.0 }
 0x2a1   :  { %v2348_v53 = vmax.f32 %v2220_v15, 0.0  ;;  %v2349_v33 = vmax.f32 %v2221_v32, 0.0  ;;  %v1072_v32 = vadd.f32 %v4279_v26, %v3727_v41 }
 0x2a2   :  { %v2484_v23 = vadd.f32 %v2468_v24, %v2342_v58  ;;  %v1168_v24 = vadd.f32 %v4275_v63, %v3723_v39 }
 0x2a3   :  { %v2469_v1 = vadd.f32 %v2349_v33, %v2348_v53  ;;  %v1783_v2 = vpop.f32.mrf.mxu2  ;;  %v1832_v7 = vpop.f32.mrf.mxu3  ;;  %v1119_v53 = vadd.f32 %v4273_v28, %v3721_v19 }
 0x2a4   :  { %v4896_v4 = vadd.f32 %v2484_v23, %v2343_v22  ;;  %v2076_v15 = vadd.f32 %v1783_v2, %v1116_v55  ;;  %v2077_v13 = vadd.f32 %v1832_v7, %v1165_v29  ;;  %v1688_v43 = vpop.f32.mrf.mxu0  ;;  %v1737_v34 = vpop.f32.mrf.mxu1  ;;  %v1170_v2 = vadd.f32 %v4283_v21, %v3731_v46 }
 0x2a5   :  { %v2082_v60 = vadd.f32 %v1688_v43, %v1021_v49  ;;  %v2083_v30 = vadd.f32 %v1737_v34, %v1070_v44  ;;  %v1075_v43 = vadd.f32 %v4287_v18, %v3735_v48 }
 0x2a6   :  { %v2222_v35 = vadd.f32 %v4875_v50, %v2076_v15  ;;  %v2223_v51 = vadd.f32 %v4878_v14, %v2077_v13  ;;  %v1026_v13 = vadd.f32 %v4285_v20, %v3733_v47 }
 0x2a7   :  { %v2228_v37 = vadd.f32 %v4855_v54, %v2082_v60  ;;  %v2229_v36 = vadd.f32 %v4858_v12, %v2083_v30  ;;  %3184 = vmatmul.msk.bf16.gmra.mxu0 %vm404_vm4, %v4543_v3  ;;  %3192 = vmatmul.msk.bf16.gmra.mxu1 %vm404_vm4, %v4543_v3 }
 0x2a8   :  { %v2350_v38 = vmax.f32 %v2222_v35, 0.0  ;;  %3200 = vmatmul.msk.bf16.gmra.mxu2 %vm404_vm4, %v4543_v3  ;;  %3208 = vmatmul.msk.bf16.gmra.mxu3 %vm404_vm4, %v4543_v3  ;;  %v2351_v31 = vmax.f32 %v2223_v51, 0.0 }
 0x2a9   :  { %v2356_v59 = vmax.f32 %v2228_v37, 0.0  ;;  %v2357_v0 = vmax.f32 %v2229_v36, 0.0 }
 0x2aa   :  { %v2485_v52 = vadd.f32 %v2469_v1, %v2350_v38  ;;  %v1121_v1 = vadd.f32 %v4281_v5, %v3729_v45 }
 0x2ab   :  { %v2470_v58 = vadd.f32 %v2357_v0, %v2356_v59  ;;  %v1786_v33 = vpop.f32.mrf.mxu2  ;;  %v1835_v55 = vpop.f32.mrf.mxu3  ;;  %v1124_v0 = vadd.f32 %v4315_v11, %v3763_v56 }
 0x2ac   :  { %v4918_v3 = vadd.f32 %v2485_v52, %v2351_v31  ;;  %v2084_v29 = vadd.f32 %v1786_v33, %v1119_v53  ;;  %v2085_v23 = vadd.f32 %v1835_v55, %v1168_v24  ;;  %v1690_v22 = vpop.f32.mrf.mxu0  ;;  %v1739_v19 = vpop.f32.mrf.mxu1  ;;  %v1173_v53 = vadd.f32 %v4317_v10, %v3765_v57 }
 0x2ad   :  { %v2090_v28 = vadd.f32 %v1690_v22, %v1023_v42  ;;  %v2091_v49 = vadd.f32 %v1739_v19, %v1072_v32  ;;  %v1028_v31 = vadd.f32 %v4319_v17, %v3773_v61  ;;  %v5614_v42 = vld [vmem:[#allocation111_spill] sm:$0xff] }
 0x2ae   :  { %v2230_v39 = vadd.f32 %v4875_v50, %v2084_v29  ;;  %v2231_v63 = vadd.f32 %v4878_v14, %v2085_v23  ;;  %v1077_v32 = vadd.f32 %v5614_v42, %v3775_v62  ;;  %v5625_v42 = vld [vmem:[#allocation10_spill] sm:$0xff] }
 0x2af   :  { %v2236_v40 = vadd.f32 %v4855_v54, %v2090_v28  ;;  %v2237_v25 = vadd.f32 %v4858_v12, %v2091_v49 }
 0x2b0   :  { %v2358_v41 = vmax.f32 %v2230_v39, 0.0  ;;  %v2359_v15 = vmax.f32 %v2231_v63, 0.0  ;;  %v5615_v39 = vld [vmem:[#allocation5_spill] sm:$0xff]  ;;  %v5616_v63 = vld [vmem:[#allocation112_spill] sm:$0xff] }
 0x2b1   :  { %v2364_v26 = vmax.f32 %v2236_v40, 0.0  ;;  %v2365_v44 = vmax.f32 %v2237_v25, 0.0  ;;  %v1126_v40 = vadd.f32 %v5616_v63, %v5615_v39  ;;  %v5617_v25 = vld [vmem:[#allocation6_spill] sm:$0xff] }
 0x2b2   :  { %v2486_v7 = vadd.f32 %v2470_v58, %v2358_v41  ;;  %v5618_v41 = vld [vmem:[#allocation113_spill] sm:$0xff] }
 0x2b3   :  { %v2471_v34 = vadd.f32 %v2365_v44, %v2364_v26  ;;  %v1788_v60 = vpop.f32.mrf.mxu2  ;;  %v1837_v30 = vpop.f32.mrf.mxu3  ;;  %v1175_v26 = vadd.f32 %v5618_v41, %v5617_v25 }
 0x2b4   :  { %v4932_v35 = vadd.f32 %v2486_v7, %v2359_v15  ;;  %v2092_v51 = vadd.f32 %v1788_v60, %v1121_v1  ;;  %v2093_v37 = vadd.f32 %v1837_v30, %v1170_v2  ;;  %v1693_v36 = vpop.f32.mrf.mxu0  ;;  %v1742_v45 = vpop.f32.mrf.mxu1  ;;  %v5619_v2 = vld [vmem:[#allocation7_spill] sm:$0xff]  ;;  %v5620_v7 = vld [vmem:[#allocation114_spill] sm:$0xff] }
 0x2b5   :  { %v2098_v5 = vadd.f32 %v1693_v36, %v1026_v13  ;;  %v2099_v38 = vadd.f32 %v1742_v45, %v1075_v43  ;;  %v1031_v15 = vadd.f32 %v5620_v7, %v5619_v2  ;;  %v5621_v13 = vld [vmem:[#allocation8_spill] sm:$0xff]  ;;  %v5622_v43 = vld [vmem:[#allocation115_spill] sm:$0xff]  ;;  %v5631_v7 = vld [vmem:[#allocation13_spill] sm:$0xff] }
 0x2b6   :  { %v2238_v46 = vadd.f32 %v4875_v50, %v2092_v51  ;;  %v2239_v21 = vadd.f32 %v4878_v14, %v2093_v37 }
 0x2b7   :  { %v2244_v47 = vadd.f32 %v4855_v54, %v2098_v5  ;;  %v2245_v20 = vadd.f32 %v4858_v12, %v2099_v38  ;;  %3185 = vmatmul.msk.bf16.gmra.mxu0 %vm404_vm4, %v4585_v9  ;;  %3193 = vmatmul.msk.bf16.gmra.mxu1 %vm404_vm4, %v4585_v9 }
 0x2b8   :  { %v2366_v48 = vmax.f32 %v2238_v46, 0.0  ;;  %3201 = vmatmul.msk.bf16.gmra.mxu2 %vm404_vm4, %v4585_v9  ;;  %3209 = vmatmul.msk.bf16.gmra.mxu3 %vm404_vm4, %v4585_v9  ;;  %v2367_v52 = vmax.f32 %v2239_v21, 0.0 }
 0x2b9   :  { %v2372_v18 = vmax.f32 %v2244_v47, 0.0  ;;  %v2373_v59 = vmax.f32 %v2245_v20, 0.0 }
 0x2ba   :  { %v2487_v24 = vadd.f32 %v2471_v34, %v2366_v48  ;;  %v1080_v34 = vadd.f32 %v5622_v43, %v5621_v13  ;;  %v5633_v43 = vld [vmem:[#allocation14_spill] sm:$0xff] }
 0x2bb   :  { %v2472_v58 = vadd.f32 %v2373_v59, %v2372_v18  ;;  %v1791_v33 = vpop.f32.mrf.mxu2  ;;  %v1840_v55 = vpop.f32.mrf.mxu3 }
 0x2bc   :  { %v4954_v9 = vadd.f32 %v2487_v24, %v2367_v52  ;;  %v2100_v29 = vadd.f32 %v1791_v33, %v1124_v0  ;;  %v2101_v23 = vadd.f32 %v1840_v55, %v1173_v53  ;;  %v1695_v22 = vpop.f32.mrf.mxu0  ;;  %v1744_v56 = vpop.f32.mrf.mxu1  ;;  %v5623_v24 = vld [vmem:[#allocation9_spill] sm:$0xff]  ;;  %v5624_v52 = vld [vmem:[#allocation116_spill] sm:$0xff] }
 0x2bd   :  { %v2106_v11 = vadd.f32 %v1695_v22, %v1028_v31  ;;  %v2107_v19 = vadd.f32 %v1744_v56, %v1077_v32  ;;  %v1129_v31 = vadd.f32 %v5624_v52, %v5623_v24  ;;  %v5626_v32 = vld [vmem:[#allocation117_spill] sm:$0xff]  ;;  %v5629_v56 = vld [vmem:[#allocation12_spill] sm:$0xff] }
 0x2be   :  { %v2246_v57 = vadd.f32 %v4875_v50, %v2100_v29  ;;  %v2247_v10 = vadd.f32 %v4878_v14, %v2101_v23  ;;  %v5627_v29 = vld [vmem:[#allocation11_spill] sm:$0xff]  ;;  %v5628_v23 = vld [vmem:[#allocation118_spill] sm:$0xff] }
 0x2bf   :  { %v2252_v61 = vadd.f32 %v4855_v54, %v2106_v11  ;;  %v2253_v17 = vadd.f32 %v4858_v12, %v2107_v19  ;;  %v1033_v22 = vadd.f32 %v5628_v23, %v5627_v29  ;;  %v5630_v11 = vld [vmem:[#allocation119_spill] sm:$0xff] }
 0x2c0   :  { %v2374_v62 = vmax.f32 %v2246_v57, 0.0  ;;  %v2375_v1 = vmax.f32 %v2247_v10, 0.0  ;;  %v1082_v19 = vadd.f32 %v5630_v11, %v5629_v56  ;;  %v5640_v56 = vld [vmem:[#allocation124_spill] sm:$0xff] }
 0x2c1   :  { %v2380_v28 = vmax.f32 %v2252_v61, 0.0  ;;  %v2381_v49 = vmax.f32 %v2253_v17, 0.0 }
 0x2c2   :  { %v2488_v44 = vadd.f32 %v2472_v58, %v2374_v62  ;;  %v1178_v58 = vadd.f32 %v5626_v32, %v5625_v42 }
 0x2c3   :  { %v2473_v60 = vadd.f32 %v2381_v49, %v2380_v28  ;;  %v1793_v30 = vpop.f32.mrf.mxu2  ;;  %v1842_v51 = vpop.f32.mrf.mxu3 }
 0x2c4   :  { %v4968_v37 = vadd.f32 %v2488_v44, %v2375_v1  ;;  %v2108_v36 = vadd.f32 %v1793_v30, %v1126_v40  ;;  %v2109_v45 = vadd.f32 %v1842_v51, %v1175_v26  ;;  %v1698_v5 = vpop.f32.mrf.mxu0  ;;  %v1747_v38 = vpop.f32.mrf.mxu1 }
 0x2c5   :  { %v2114_v46 = vadd.f32 %v1698_v5, %v1031_v15  ;;  %v2115_v21 = vadd.f32 %v1747_v38, %v1080_v34  ;;  %v5632_v15 = vld [vmem:[#allocation120_spill] sm:$0xff]  ;;  %v5634_v34 = vld [vmem:[#allocation121_spill] sm:$0xff] }
 0x2c6   :  { %v2254_v47 = vadd.f32 %v4875_v50, %v2108_v36  ;;  %v2255_v20 = vadd.f32 %v4878_v14, %v2109_v45  ;;  %v1131_v13 = vadd.f32 %v5632_v15, %v5631_v7  ;;  %v5635_v36 = vld [vmem:[#allocation15_spill] sm:$0xff]  ;;  %v5636_v45 = vld [vmem:[#allocation122_spill] sm:$0xff]  ;;  %v5637_v38 = vld [vmem:[#allocation16_spill] sm:$0xff] }
 0x2c7   :  { %v2260_v48 = vadd.f32 %v4855_v54, %v2114_v46  ;;  %v2261_v18 = vadd.f32 %v4858_v12, %v2115_v21  ;;  %3186 = vmatmul.msk.bf16.gmra.mxu0 %vm404_vm4, %v4651_v6  ;;  %3194 = vmatmul.msk.bf16.gmra.mxu1 %vm404_vm4, %v4651_v6  ;;  %v1036_v5 = vadd.f32 %v5636_v45, %v5635_v36  ;;  %v5638_v46 = vld [vmem:[#allocation123_spill] sm:$0xff] }
 0x2c8   :  { %v2382_v59 = vmax.f32 %v2254_v47, 0.0  ;;  %3202 = vmatmul.msk.bf16.gmra.mxu2 %vm404_vm4, %v4651_v6  ;;  %3210 = vmatmul.msk.bf16.gmra.mxu3 %vm404_vm4, %v4651_v6  ;;  %v2383_v55 = vmax.f32 %v2255_v20, 0.0  ;;  %v1085_v21 = vadd.f32 %v5638_v46, %v5637_v38  ;;  %v5648_v38 = vld [vmem:[#allocation128_spill] sm:$0xff] }
 0x2c9   :  { %v2388_v0 = vmax.f32 %v2260_v48, 0.0  ;;  %v2389_v53 = vmax.f32 %v2261_v18, 0.0 }
 0x2ca   :  { %v2489_v33 = vadd.f32 %v2473_v60, %v2382_v59  ;;  %v1180_v60 = vadd.f32 %v5634_v34, %v5633_v43 }
 0x2cb   :  { %v2474_v57 = vadd.f32 %v2389_v53, %v2388_v0  ;;  %v1796_v10 = vpop.f32.mrf.mxu2  ;;  %v1845_v61 = vpop.f32.mrf.mxu3 }
 0x2cc   :  { %v4990_v6 = vadd.f32 %v2489_v33, %v2383_v55  ;;  %v2116_v17 = vadd.f32 %v1796_v10, %v1129_v31  ;;  %v2117_v62 = vadd.f32 %v1845_v61, %v1178_v58  ;;  %v1700_v28 = vpop.f32.mrf.mxu0  ;;  %v1749_v49 = vpop.f32.mrf.mxu1 }
 0x2cd   :  { %v2122_v39 = vadd.f32 %v1700_v28, %v1033_v22  ;;  %v2123_v63 = vadd.f32 %v1749_v49, %v1082_v19  ;;  %v5639_v22 = vld [vmem:[#allocation17_spill] sm:$0xff]  ;;  %v5641_v19 = vld [vmem:[#allocation18_spill] sm:$0xff] }
 0x2ce   :  { %v2262_v40 = vadd.f32 %v4875_v50, %v2116_v17  ;;  %v2263_v25 = vadd.f32 %v4878_v14, %v2117_v62  ;;  %v1134_v11 = vadd.f32 %v5640_v56, %v5639_v22  ;;  %v5643_v62 = vld [vmem:[#allocation19_spill] sm:$0xff]  ;;  %v5644_v28 = vld [vmem:[#allocation126_spill] sm:$0xff] }
 0x2cf   :  { %v2268_v41 = vadd.f32 %v4855_v54, %v2122_v39  ;;  %v2269_v26 = vadd.f32 %v4858_v12, %v2123_v63  ;;  %v1038_v49 = vadd.f32 %v5644_v28, %v5643_v62  ;;  %v5645_v39 = vld [vmem:[#allocation20_spill] sm:$0xff]  ;;  %v5646_v63 = vld [vmem:[#allocation127_spill] sm:$0xff]  ;;  %v5655_v62 = vld [vmem:[#allocation194_spill] sm:$0xff] }
 0x2d0   :  { %v2390_v44 = vmax.f32 %v2262_v40, 0.0  ;;  %v2391_v51 = vmax.f32 %v2263_v25, 0.0  ;;  %v1087_v40 = vadd.f32 %v5646_v63, %v5645_v39  ;;  %v5656_v63 = vld [vmem:[#allocation25_spill] sm:$0xff] }
 0x2d1   :  { %v2396_v1 = vmax.f32 %v2268_v41, 0.0  ;;  %v2397_v2 = vmax.f32 %v2269_v26, 0.0 }
 0x2d2   :  { %v2490_v30 = vadd.f32 %v2474_v57, %v2390_v44  ;;  %v5642_v57 = vld [vmem:[#allocation125_spill] sm:$0xff] }
 0x2d3   :  { %v2475_v47 = vadd.f32 %v2397_v2, %v2396_v1  ;;  %v1798_v20 = vpop.f32.mrf.mxu2  ;;  %v1847_v48 = vpop.f32.mrf.mxu3  ;;  %v1183_v10 = vadd.f32 %v5642_v57, %v5641_v19 }
 0x2d4   :  { %v5004_v18 = vadd.f32 %v2490_v30, %v2391_v51  ;;  %v2124_v59 = vadd.f32 %v1798_v20, %v1131_v13  ;;  %v2125_v0 = vadd.f32 %v1847_v48, %v1180_v60  ;;  %v1703_v53 = vpop.f32.mrf.mxu0  ;;  %v1752_v24 = vpop.f32.mrf.mxu1 }
 0x2d5   :  { %v2130_v52 = vadd.f32 %v1703_v53, %v1036_v5  ;;  %v2131_v31 = vadd.f32 %v1752_v24, %v1085_v21  ;;  %v5647_v5 = vld [vmem:[#allocation21_spill] sm:$0xff]  ;;  %v5649_v21 = vld [vmem:[#allocation22_spill] sm:$0xff] }
 0x2d6   :  { %v2270_v42 = vadd.f32 %v4875_v50, %v2124_v59  ;;  %v2271_v32 = vadd.f32 %v4878_v14, %v2125_v0  ;;  %v1136_v46 = vadd.f32 %v5648_v38, %v5647_v5  ;;  %v5651_v0 = vld [vmem:[#allocation23_spill] sm:$0xff]  ;;  %v5652_v53 = vld [vmem:[#allocation130_spill] sm:$0xff] }
 0x2d7   :  { %v2276_v58 = vadd.f32 %v4855_v54, %v2130_v52  ;;  %v2277_v33 = vadd.f32 %v4858_v12, %v2131_v31  ;;  %3187 = vmatmul.msk.bf16.gmra.mxu0 %vm404_vm4, %v4693_v8  ;;  %3195 = vmatmul.msk.bf16.gmra.mxu1 %vm404_vm4, %v4693_v8  ;;  %v1041_v24 = vadd.f32 %v5652_v53, %v5651_v0  ;;  %v5653_v52 = vld [vmem:[#allocation24_spill] sm:$0xff]  ;;  %v5654_v31 = vld [vmem:[#allocation131_spill] sm:$0xff] }
 0x2d8   :  { %v2398_v55 = vmax.f32 %v2270_v42, 0.0  ;;  %3203 = vmatmul.msk.bf16.gmra.mxu2 %vm404_vm4, %v4693_v8  ;;  %3211 = vmatmul.msk.bf16.gmra.mxu3 %vm404_vm4, %v4693_v8  ;;  %v2399_v17 = vmax.f32 %v2271_v32, 0.0  ;;  %v1090_v42 = vadd.f32 %v5654_v31, %v5653_v52 }
 0x2d9   :  { %v2404_v29 = vmax.f32 %v2276_v58, 0.0  ;;  %v2405_v23 = vmax.f32 %v2277_v33, 0.0 }
 0x2da   :  { %v2491_v61 = vadd.f32 %v2475_v47, %v2398_v55  ;;  %v5650_v47 = vld [vmem:[#allocation129_spill] sm:$0xff] }
 0x2db   :  { %v2476_v25 = vadd.f32 %v2405_v23, %v2404_v29  ;;  %v1801_v41 = vpop.f32.mrf.mxu2  ;;  %v1850_v26 = vpop.f32.mrf.mxu3  ;;  %v1185_v20 = vadd.f32 %v5650_v47, %v5649_v21 }
 0x2dc   :  { %v5026_v8 = vadd.f32 %v2491_v61, %v2399_v17  ;;  %v2132_v44 = vadd.f32 %v1801_v41, %v1134_v11  ;;  %v2133_v1 = vadd.f32 %v1850_v26, %v1183_v10  ;;  %v1705_v2 = vpop.f32.mrf.mxu0  ;;  %v1754_v7 = vpop.f32.mrf.mxu1  ;;  %v5658_v41 = vld [vmem:[#allocation26_spill] sm:$0xff]  ;;  %v5659_v26 = vld [vmem:[#allocation133_spill] sm:$0xff] }
 0x2dd   :  { %v2138_v15 = vadd.f32 %v1705_v2, %v1038_v49  ;;  %v2139_v13 = vadd.f32 %v1754_v7, %v1087_v40  ;;  %v5657_v40 = vld [vmem:[#allocation132_spill] sm:$0xff]  ;;  %v5660_v7 = vld [vmem:[#allocation27_spill] sm:$0xff] }
 0x2de   :  { %v2278_v43 = vadd.f32 %v4875_v50, %v2132_v44  ;;  %v2279_v34 = vadd.f32 %v4878_v14, %v2133_v1  ;;  %v1188_v44 = vadd.f32 %v5659_v26, %v5658_v41 }
 0x2df   :  { %v2284_v60 = vadd.f32 %v4855_v54, %v2138_v15  ;;  %v2285_v30 = vadd.f32 %v4858_v12, %v2139_v13  ;;  %v5661_v15 = vld [vmem:[#allocation134_spill] sm:$0xff] }
 0x2e0   :  { %v2406_v51 = vmax.f32 %v2278_v43, 0.0  ;;  %v2407_v59 = vmax.f32 %v2279_v34, 0.0  ;;  %v1043_v13 = vadd.f32 %v5661_v15, %v5660_v7  ;;  %v5662_v43 = vld [vmem:[#allocation28_spill] sm:$0xff]  ;;  %v5663_v34 = vld [vmem:[#allocation135_spill] sm:$0xff] }
 0x2e1   :  { %v2412_v36 = vmax.f32 %v2284_v60, 0.0  ;;  %v2413_v45 = vmax.f32 %v2285_v30, 0.0  ;;  %v1092_v60 = vadd.f32 %v5663_v34, %v5662_v43 }
 0x2e2   :  { %v2492_v48 = vadd.f32 %v2476_v25, %v2406_v51  ;;  %v1139_v25 = vadd.f32 %v5657_v40, %v5656_v63 }
 0x2e3   :  { %v2477_v32 = vadd.f32 %v2413_v45, %v2412_v36  ;;  %v1803_v58 = vpop.f32.mrf.mxu2  ;;  %v1852_v33 = vpop.f32.mrf.mxu3 }
 0x2e4   :  { %v5040_v55 = vadd.f32 %v2492_v48, %v2407_v59  ;;  %v2140_v29 = vadd.f32 %v1803_v58, %v1136_v46  ;;  %v2141_v23 = vadd.f32 %v1852_v33, %v1185_v20  ;;  %v1708_v22 = vpop.f32.mrf.mxu0  ;;  %v1757_v56 = vpop.f32.mrf.mxu1  ;;  %v5666_v33 = vld [vmem:[#allocation30_spill] sm:$0xff] }
 0x2e5   :  { %v2146_v11 = vadd.f32 %v1708_v22, %v1041_v24  ;;  %v2147_v19 = vadd.f32 %v1757_v56, %v1090_v42  ;;  %v5664_v42 = vld [vmem:[#allocation29_spill] sm:$0xff] }
 0x2e6   :  { %v2286_v57 = vadd.f32 %v4875_v50, %v2140_v29  ;;  %v2287_v10 = vadd.f32 %v4878_v14, %v2141_v23  ;;  %v5667_v29 = vld [vmem:[#allocation137_spill] sm:$0xff] }
 0x2e7   :  { %v2292_v61 = vadd.f32 %v4855_v54, %v2146_v11  ;;  %v2293_v17 = vadd.f32 %v4858_v12, %v2147_v19  ;;  %3188 = vmatmul.msk.bf16.gmra.mxu0 %vm404_vm4, %v5655_v62  ;;  %3196 = vmatmul.msk.bf16.gmra.mxu1 %vm404_vm4, %v5655_v62  ;;  %v1190_v23 = vadd.f32 %v5667_v29, %v5666_v33  ;;  %v5668_v11 = vld [vmem:[#allocation31_spill] sm:$0xff]  ;;  %v5669_v19 = vld [vmem:[#allocation138_spill] sm:$0xff] }
 0x2e8   :  { %v2414_v28 = vmax.f32 %v2286_v57, 0.0  ;;  %3204 = vmatmul.msk.bf16.gmra.mxu2 %vm404_vm4, %v5655_v62  ;;  %3212 = vmatmul.msk.bf16.gmra.mxu3 %vm404_vm4, %v5655_v62  ;;  %v2415_v2 = vmax.f32 %v2287_v10, 0.0  ;;  %v1046_v57 = vadd.f32 %v5669_v19, %v5668_v11  ;;  %v5670_v10 = vld [vmem:[#allocation32_spill] sm:$0xff] }
 0x2e9   :  { %v2420_v49 = vmax.f32 %v2292_v61, 0.0  ;;  %v2421_v39 = vmax.f32 %v2293_v17, 0.0  ;;  %v5671_v61 = vld [vmem:[#allocation139_spill] sm:$0xff] }
 0x2ea   :  { %v2493_v1 = vadd.f32 %v2477_v32, %v2414_v28  ;;  %v5665_v32 = vld [vmem:[#allocation136_spill] sm:$0xff]  ;;  %v1095_v17 = vadd.f32 %v5671_v61, %v5670_v10 }
 0x2eb   :  { %v2478_v30 = vadd.f32 %v2421_v39, %v2420_v49  ;;  %v1806_v51 = vpop.f32.mrf.mxu2  ;;  %v1855_v36 = vpop.f32.mrf.mxu3  ;;  %v1141_v58 = vadd.f32 %v5665_v32, %v5664_v42 }
 0x2ec   :  { %v5062_v45 = vadd.f32 %v2493_v1, %v2415_v2  ;;  %v2148_v5 = vadd.f32 %v1806_v51, %v1139_v25  ;;  %v2149_v38 = vadd.f32 %v1855_v36, %v1188_v44  ;;  %v1710_v46 = vpop.f32.mrf.mxu0  ;;  %v1759_v21 = vpop.f32.mrf.mxu1  ;;  %v5674_v51 = vld [vmem:[#allocation140_spill] sm:$0xff] }
 0x2ed   :  { %v2154_v47 = vadd.f32 %v1710_v46, %v1043_v13  ;;  %v2155_v20 = vadd.f32 %v1759_v21, %v1092_v60  ;;  %v5672_v13 = vld [vmem:[#allocation203_spill] sm:$0xff] }
 0x2ee   :  { %v2294_v48 = vadd.f32 %v4875_v50, %v2148_v5  ;;  %v2295_v59 = vadd.f32 %v4878_v14, %v2149_v38  ;;  %v5675_v5 = vld [vmem:[#allocation34_spill] sm:$0xff]  ;;  %v5676_v38 = vld [vmem:[#allocation141_spill] sm:$0xff] }
 0x2ef   :  { %v2300_v0 = vadd.f32 %v4855_v54, %v2154_v47  ;;  %v2301_v53 = vadd.f32 %v4858_v12, %v2155_v20  ;;  %v1193_v46 = vadd.f32 %v5676_v38, %v5675_v5  ;;  %v5677_v20 = vld [vmem:[#allocation35_spill] sm:$0xff] }
 0x2f0   :  { %v2422_v24 = vmax.f32 %v2294_v48, 0.0  ;;  %v2423_v56 = vmax.f32 %v2295_v59, 0.0  ;;  %v5678_v48 = vld [vmem:[#allocation142_spill] sm:$0xff] }
 0x2f1   :  { %v2428_v52 = vmax.f32 %v2300_v0, 0.0  ;;  %v2429_v31 = vmax.f32 %v2301_v53, 0.0  ;;  %v1048_v59 = vadd.f32 %v5678_v48, %v5677_v20  ;;  %v5679_v0 = vld [vmem:[#allocation36_spill] sm:$0xff]  ;;  %v5680_v53 = vld [vmem:[#allocation143_spill] sm:$0xff] }
 0x2f2   :  { %v2494_v22 = vadd.f32 %v2478_v30, %v2422_v24  ;;  %v5673_v30 = vld [vmem:[#allocation33_spill] sm:$0xff]  ;;  %v1097_v24 = vadd.f32 %v5680_v53, %v5679_v0 }
 0x2f3   :  { %v2479_v62 = vadd.f32 %v2429_v31, %v2428_v52  ;;  %v1808_v28 = vpop.f32.mrf.mxu2  ;;  %v1857_v49 = vpop.f32.mrf.mxu3  ;;  %v1144_v36 = vadd.f32 %v5674_v51, %v5673_v30 }
 0x2f4   :  { %v5076_v39 = vadd.f32 %v2494_v22, %v2423_v56  ;;  %v2156_v63 = vadd.f32 %v1808_v28, %v1141_v58  ;;  %v2157_v40 = vadd.f32 %v1857_v49, %v1190_v23  ;;  %v1713_v25 = vpop.f32.mrf.mxu0  ;;  %v1762_v41 = vpop.f32.mrf.mxu1  ;;  %v5681_v28 = vld [vmem:[#allocation37_spill] sm:$0xff]  ;;  %v5682_v49 = vld [vmem:[#allocation144_spill] sm:$0xff] }
 0x2f5   :  { %v2162_v26 = vadd.f32 %v1713_v25, %v1046_v57  ;;  %v2163_v44 = vadd.f32 %v1762_v41, %v1095_v17  ;;  %v5684_v25 = vld [vmem:[#allocation145_spill] sm:$0xff] }
 0x2f6   :  { %v2302_v1 = vadd.f32 %v4875_v50, %v2156_v63  ;;  %v2303_v2 = vadd.f32 %v4878_v14, %v2157_v40  ;;  %v1146_v63 = vadd.f32 %v5682_v49, %v5681_v28  ;;  %v5683_v40 = vld [vmem:[#allocation38_spill] sm:$0xff] }
 0x2f7   :  { %v2308_v7 = vadd.f32 %v4855_v54, %v2162_v26  ;;  %v2309_v15 = vadd.f32 %v4858_v12, %v2163_v44  ;;  %3189 = vmatmul.msk.bf16.gmra.mxu0 %vm404_vm4, %v5672_v13  ;;  %3197 = vmatmul.msk.bf16.gmra.mxu1 %vm404_vm4, %v5672_v13  ;;  %v1195_v41 = vadd.f32 %v5684_v25, %v5683_v40 }
 0x2f8   :  { %v2430_v43 = vmax.f32 %v2302_v1, 0.0  ;;  %3205 = vmatmul.msk.bf16.gmra.mxu2 %vm404_vm4, %v5672_v13  ;;  %3213 = vmatmul.msk.bf16.gmra.mxu3 %vm404_vm4, %v5672_v13  ;;  %v2431_v47 = vmax.f32 %v2303_v2, 0.0  ;;  %v5685_v1 = vld [vmem:[#allocation39_spill] sm:$0xff]  ;;  %v5686_v2 = vld [vmem:[#allocation146_spill] sm:$0xff] }
 0x2f9   :  { %v2436_v34 = vmax.f32 %v2308_v7, 0.0  ;;  %v2437_v60 = vmax.f32 %v2309_v15, 0.0  ;;  %v1051_v7 = vadd.f32 %v5686_v2, %v5685_v1  ;;  %v5687_v15 = vld [vmem:[#allocation40_spill] sm:$0xff]  ;;  %v5688_v13 = vld [vmem:[#allocation147_spill] sm:$0xff] }
 0x2fa   :  { %v2495_v21 = vadd.f32 %v2479_v62, %v2430_v43  ;;  %v1100_v43 = vadd.f32 %v5688_v13, %v5687_v15 }
 0x2fb   :  { %v2480_v52 = vadd.f32 %v2437_v60, %v2436_v34  ;;  %v1811_v31 = vpop.f32.mrf.mxu2  ;;  %v1860_v42 = vpop.f32.mrf.mxu3 }
 0x2fc   :  { %v5098_v32 = vadd.f32 %v2495_v21, %v2431_v47  ;;  %v2164_v58 = vadd.f32 %v1811_v31, %v1144_v36  ;;  %v2165_v33 = vadd.f32 %v1860_v42, %v1193_v46  ;;  %v1715_v29 = vpop.f32.mrf.mxu0  ;;  %v1764_v23 = vpop.f32.mrf.mxu1  ;;  %v5689_v31 = vld [vmem:[#allocation41_spill] sm:$0xff]  ;;  %v5690_v42 = vld [vmem:[#allocation148_spill] sm:$0xff] }
 0x2fd   :  { %v2170_v22 = vadd.f32 %v1715_v29, %v1048_v59  ;;  %v2171_v56 = vadd.f32 %v1764_v23, %v1097_v24  ;;  %v5692_v29 = vld [vmem:[#allocation149_spill] sm:$0xff] }
 0x2fe   :  { %v2310_v11 = vadd.f32 %v4875_v50, %v2164_v58  ;;  %v2311_v19 = vadd.f32 %v4878_v14, %v2165_v33  ;;  %v1149_v58 = vadd.f32 %v5690_v42, %v5689_v31  ;;  %v5691_v33 = vld [vmem:[#allocation42_spill] sm:$0xff]  ;;  %v5149_v31 = vperm.slane %v4844_v27, 4 }
 0x2ff   :  { %v2316_v57 = vadd.f32 %v4855_v54, %v2170_v22  ;;  %v2317_v10 = vadd.f32 %v4858_v12, %v2171_v56  ;;  %v1198_v23 = vadd.f32 %v5692_v29, %v5691_v33  ;;  %v5152_v42 = vperm.slane %v4844_v27, 5 }
 0x300   :  { %v2438_v61 = vmax.f32 %v2310_v11, 0.0  ;;  %v2439_v44 = vmax.f32 %v2311_v19, 0.0  ;;  %v5693_v11 = vld [vmem:[#allocation43_spill] sm:$0xff]  ;;  %v5694_v19 = vld [vmem:[#allocation150_spill] sm:$0xff] }
 0x301   :  { %v2444_v17 = vmax.f32 %v2316_v57, 0.0  ;;  %v2445_v62 = vmax.f32 %v2317_v10, 0.0  ;;  %v1053_v57 = vadd.f32 %v5694_v19, %v5693_v11  ;;  %v5695_v10 = vld [vmem:[#allocation44_spill] sm:$0xff] }
 0x302   :  { %v2496_v26 = vadd.f32 %v2480_v52, %v2438_v61  ;;  %v5696_v61 = vld [vmem:[#allocation151_spill] sm:$0xff] }
 0x303   :  { %v2481_v34 = vadd.f32 %v2445_v62, %v2444_v17  ;;  %v1813_v60 = vpop.f32.mrf.mxu2  ;;  %v1862_v30 = vpop.f32.mrf.mxu3  ;;  %v1102_v17 = vadd.f32 %v5696_v61, %v5695_v10 }
 0x304   :  { %v5112_v51 = vadd.f32 %v2496_v26, %v2439_v44  ;;  %v2172_v36 = vadd.f32 %v1813_v60, %v1146_v63  ;;  %v2173_v5 = vadd.f32 %v1862_v30, %v1195_v41  ;;  %v1718_v38 = vpop.f32.mrf.mxu0  ;;  %v1767_v46 = vpop.f32.mrf.mxu1 }
 0x305   :  { %v2178_v21 = vadd.f32 %v1718_v38, %v1051_v7  ;;  %v2179_v47 = vadd.f32 %v1767_v46, %v1100_v43  ;;  %v5697_v43 = vld [vmem:[#allocation45_spill] sm:$0xff] }
 0x306   :  { %v2318_v20 = vadd.f32 %v4875_v50, %v2172_v36  ;;  %v2319_v48 = vadd.f32 %v4878_v14, %v2173_v5  ;;  %v5699_v5 = vld [vmem:[#allocation46_spill] sm:$0xff]  ;;  %v5700_v38 = vld [vmem:[#allocation153_spill] sm:$0xff] }
 0x307   :  { %v2324_v59 = vadd.f32 %v4855_v54, %v2178_v21  ;;  %v2325_v0 = vadd.f32 %v4858_v12, %v2179_v47  ;;  %3190 = vmatmul.msk.bf16.gmra.mxu0 %vm404_vm4, %v4819_v16  ;;  %3198 = vmatmul.msk.bf16.gmra.mxu1 %vm404_vm4, %v4819_v16  ;;  %v1200_v46 = vadd.f32 %v5700_v38, %v5699_v5  ;;  %v5701_v21 = vld [vmem:[#allocation47_spill] sm:$0xff]  ;;  %v5702_v47 = vld [vmem:[#allocation154_spill] sm:$0xff] }
 0x308   :  { %v2446_v53 = vmax.f32 %v2318_v20, 0.0  ;;  %3206 = vmatmul.msk.bf16.gmra.mxu2 %vm404_vm4, %v4819_v16  ;;  %3214 = vmatmul.msk.bf16.gmra.mxu3 %vm404_vm4, %v4819_v16  ;;  %v2447_v56 = vmax.f32 %v2319_v48, 0.0  ;;  %v1212_v20 = vadd.f32 %v5702_v47, %v5701_v21 }
 0x309   :  { %v2452_v24 = vmax.f32 %v2324_v59, 0.0  ;;  %v2453_v52 = vmax.f32 %v2325_v0, 0.0  ;;  %v5703_v0 = vld [vmem:[#allocation48_spill] sm:$0xff] }
 0x30a   :  { %v2497_v22 = vadd.f32 %v2481_v34, %v2446_v53  ;;  %v5698_v34 = vld [vmem:[#allocation152_spill] sm:$0xff]  ;;  %v5704_v53 = vld [vmem:[#allocation155_spill] sm:$0xff] }
 0x30b   :  { %v2482_v62 = vadd.f32 %v2453_v52, %v2452_v24  ;;  %v1816_v28 = vpop.f32.mrf.mxu2  ;;  %v1865_v49 = vpop.f32.mrf.mxu3  ;;  %v1151_v60 = vadd.f32 %v5698_v34, %v5697_v43  ;;  %v1261_v24 = vadd.f32 %v5704_v53, %v5703_v0 }
 0x30c   :  { %v5134_v16 = vadd.f32 %v2497_v22, %v2447_v56  ;;  %v2180_v63 = vadd.f32 %v1816_v28, %v1149_v58  ;;  %v2181_v40 = vadd.f32 %v1865_v49, %v1198_v23  ;;  %v1720_v25 = vpop.f32.mrf.mxu0  ;;  %v1769_v41 = vpop.f32.mrf.mxu1  ;;  %v5706_v28 = vld [vmem:[#allocation156_spill] sm:$0xff] }
 0x30d   :  { %v2186_v26 = vadd.f32 %v1720_v25, %v1053_v57  ;;  %v2187_v44 = vadd.f32 %v1769_v41, %v1102_v17 }
 0x30e   :  { %v2326_v1 = vadd.f32 %v4875_v50, %v2180_v63  ;;  %v2327_v2 = vadd.f32 %v4878_v14, %v2181_v40  ;;  %v5707_v63 = vld [vmem:[#allocation50_spill] sm:$0xff]  ;;  %v5708_v40 = vld [vmem:[#allocation157_spill] sm:$0xff] }
 0x30f   :  { %v2332_v7 = vadd.f32 %v4855_v54, %v2186_v26  ;;  %v2333_v15 = vadd.f32 %v4858_v12, %v2187_v44  ;;  %v1359_v25 = vadd.f32 %v5708_v40, %v5707_v63 }
 0x310   :  { %v2454_v13 = vmax.f32 %v2326_v1, 0.0  ;;  %v2455_v59 = vmax.f32 %v2327_v2, 0.0  ;;  %v5165_v1 = vperm.slane %v4844_v27, 6  ;;  %v5710_v2 = vld [vmem:[#allocation158_spill] sm:$0xff] }
 0x311   :  { %v2460_v30 = vmax.f32 %v2332_v7, 0.0  ;;  %v2461_v36 = vmax.f32 %v2333_v15, 0.0  ;;  %v5711_v15 = vld [vmem:[#allocation52_spill] sm:$0xff] }
 0x312   :  { %v2498_v48 = vadd.f32 %v2482_v62, %v2454_v13  ;;  %v5705_v62 = vld [vmem:[#allocation49_spill] sm:$0xff]  ;;  %v5712_v13 = vld [vmem:[#allocation159_spill] sm:$0xff] }
 0x313   :  { %v2483_v54 = vadd.f32 %v2461_v36, %v2460_v30  ;;  %v1818_v52 = vpop.f32.mrf.mxu2  ;;  %v1867_v12 = vpop.f32.mrf.mxu3  ;;  %v1310_v49 = vadd.f32 %v5706_v28, %v5705_v62  ;;  %v1263_v43 = vadd.f32 %v5712_v13, %v5711_v15 }
 0x314   :  { %v5154_v58 = vadd.f32 %v2498_v48, %v2455_v59  ;;  %v2188_v33 = vadd.f32 %v1818_v52, %v1151_v60  ;;  %v2189_v29 = vadd.f32 %v1867_v12, %v1200_v46  ;;  %v1879_v23 = vpop.f32.mrf.mxu0  ;;  %v1928_v22 = vpop.f32.mrf.mxu1  ;;  %v5713_v52 = vld [vmem:[#allocation53_spill] sm:$0xff]  ;;  %v5714_v12 = vld [vmem:[#allocation160_spill] sm:$0xff] }
 0x315   :  { %v2070_v56 = vadd.f32 %v1879_v23, %v1212_v20  ;;  %v2071_v11 = vadd.f32 %v1928_v22, %v1261_v24  ;;  %v5716_v23 = vld [vmem:[#allocation161_spill] sm:$0xff] }
 0x316   :  { %v2334_v19 = vadd.f32 %v4875_v50, %v2188_v33  ;;  %v2335_v57 = vadd.f32 %v4878_v14, %v2189_v29  ;;  %v5168_v50 = vperm.slane %v4844_v27, 7  ;;  %v5709_v14 = vld [vmem:[#allocation51_spill] sm:$0xff]  ;;  %v1312_v33 = vadd.f32 %v5714_v12, %v5713_v52  ;;  %v5715_v29 = vld [vmem:[#allocation54_spill] sm:$0xff]  ;;  %v5727_v52 = vld [vmem:[#allocation60_spill] sm:$0xff] }
 0x317   :  { %v2216_v10 = vadd.f32 %v5149_v31, %v2070_v56  ;;  %v2217_v61 = vadd.f32 %v5152_v42, %v2071_v11  ;;  %v1214_v7 = vadd.f32 %v5710_v2, %v5709_v14  ;;  %v1361_v22 = vadd.f32 %v5716_v23, %v5715_v29  ;;  %v5728_v12 = vld [vmem:[#allocation167_spill] sm:$0xff] }
 0x318   :  { %v2462_v17 = vmax.f32 %v2334_v19, 0.0  ;;  %v2463_v44 = vmax.f32 %v2335_v57, 0.0  ;;  %v5717_v19 = vld [vmem:[#allocation55_spill] sm:$0xff]  ;;  %v5718_v57 = vld [vmem:[#allocation162_spill] sm:$0xff] }
 0x319   :  { %v2344_v41 = vmax.f32 %v2216_v10, 0.0  ;;  %v2345_v60 = vmax.f32 %v2217_v61, 0.0  ;;  %v1217_v10 = vadd.f32 %v5718_v57, %v5717_v19  ;;  %v5719_v61 = vld [vmem:[#allocation56_spill] sm:$0xff] }
 0x31a   :  { %v2499_v26 = vadd.f32 %v2483_v54, %v2462_v17  ;;  %v5720_v17 = vld [vmem:[#allocation163_spill] sm:$0xff] }
 0x31b   :  { %v2516_v34 = vadd.f32 %v4896_v4, %v2344_v41  ;;  %v1977_v30 = vpop.f32.mrf.mxu2  ;;  %v2026_v36 = vpop.f32.mrf.mxu3  ;;  %v1266_v62 = vadd.f32 %v5720_v17, %v5719_v61 }
 0x31c   :  { %v5175_v5 = vadd.f32 %v2499_v26, %v2463_v44  ;;  %v2072_v38 = vadd.f32 %v1977_v30, %v1310_v49  ;;  %v2073_v46 = vadd.f32 %v2026_v36, %v1359_v25  ;;  %v1881_v21 = vpop.f32.mrf.mxu0  ;;  %v1930_v47 = vpop.f32.mrf.mxu1 }
 0x31d   :  { %v2532_v20 = vadd.f32 %v2516_v34, %v2345_v60  ;;  %v2078_v27 = vadd.f32 %v1881_v21, %v1214_v7  ;;  %v2079_v48 = vadd.f32 %v1930_v47, %v1263_v43 }
 0x31e   :  { %v2218_v59 = vadd.f32 %v5165_v1, %v2072_v38  ;;  %v2219_v0 = vadd.f32 %v5168_v50, %v2073_v46  ;;  %v5721_v38 = vld [vmem:[#allocation57_spill] sm:$0xff]  ;;  %v5722_v46 = vld [vmem:[#allocation164_spill] sm:$0xff] }
 0x31f   :  { %v2224_v53 = vadd.f32 %v5149_v31, %v2078_v27  ;;  %v2225_v4 = vadd.f32 %v5152_v42, %v2079_v48  ;;  %v1315_v21 = vadd.f32 %v5722_v46, %v5721_v38  ;;  %v5724_v27 = vld [vmem:[#allocation165_spill] sm:$0xff]  ;;  %v5733_v38 = vld [vmem:[#allocation63_spill] sm:$0xff]  ;;  %v5734_v46 = vld [vmem:[#allocation170_spill] sm:$0xff] }
 0x320   :  { %v2346_v24 = vmax.f32 %v2218_v59, 0.0  ;;  %v2347_v11 = vmax.f32 %v2219_v0, 0.0 }
 0x321   :  { %v2352_v54 = vmax.f32 %v2224_v53, 0.0  ;;  %v2353_v49 = vmax.f32 %v2225_v4, 0.0  ;;  %v5725_v4 = vld [vmem:[#allocation59_spill] sm:$0xff] }
 0x322   :  { %v2548_v56 = vadd.f32 %v2532_v20, %v2346_v24  ;;  %v5723_v20 = vld [vmem:[#allocation58_spill] sm:$0xff] }
 0x323   :  { %v2517_v28 = vadd.f32 %v4918_v3, %v2352_v54  ;;  %v1979_v63 = vpop.f32.mrf.mxu2  ;;  %v2028_v40 = vpop.f32.mrf.mxu3  ;;  %v1364_v48 = vadd.f32 %v5724_v27, %v5723_v20  ;;  %v5726_v24 = vld [vmem:[#allocation166_spill] sm:$0xff]  ;;  %v5736_v20 = vld [vmem:[#allocation171_spill] sm:$0xff] }
 0x324   :  { %v2564_v25 = vadd.f32 %v2548_v56, %v2347_v11  ;;  %v2080_v41 = vadd.f32 %v1979_v63, %v1312_v33  ;;  %v2081_v26 = vadd.f32 %v2028_v40, %v1361_v22  ;;  %v1884_v44 = vpop.f32.mrf.mxu0  ;;  %v1933_v14 = vpop.f32.mrf.mxu1  ;;  %v1219_v54 = vadd.f32 %v5726_v24, %v5725_v4 }
 0x325   :  { %v2533_v2 = vadd.f32 %v2517_v28, %v2353_v49  ;;  %v2086_v7 = vadd.f32 %v1884_v44, %v1217_v10  ;;  %v2087_v15 = vadd.f32 %v1933_v14, %v1266_v62  ;;  %v1268_v33 = vadd.f32 %v5728_v12, %v5727_v52  ;;  %v5729_v14 = vld [vmem:[#allocation61_spill] sm:$0xff] }
 0x326   :  { %v2580_v13 = vrot.slane %v2564_v25, 4  ;;  %v2226_v43 = vadd.f32 %v5165_v1, %v2080_v41  ;;  %v2227_v34 = vadd.f32 %v5168_v50, %v2081_v26 }
 0x327   :  { %v2232_v60 = vadd.f32 %v5149_v31, %v2086_v7  ;;  %v2233_v3 = vadd.f32 %v5152_v42, %v2087_v15 }
 0x328   :  { %v2581_v30 = vadd.f32 %v2580_v13, %v2564_v25  ;;  %v2354_v36 = vmax.f32 %v2226_v43, 0.0  ;;  %v2355_v53 = vmax.f32 %v2227_v34, 0.0  ;;  %v5731_v43 = vld [vmem:[#allocation62_spill] sm:$0xff]  ;;  %v5732_v34 = vld [vmem:[#allocation169_spill] sm:$0xff] }
 0x329   :  { %v2360_v47 = vmax.f32 %v2232_v60, 0.0  ;;  %v2361_v23 = vmax.f32 %v2233_v3, 0.0  ;;  %v1366_v60 = vadd.f32 %v5732_v34, %v5731_v43  ;;  %v5742_v43 = vld [vmem:[#allocation174_spill] sm:$0xff] }
 0x32a   :  { %v2582_v59 = vrot.slane %v2581_v30, 2  ;;  %v2549_v0 = vadd.f32 %v2533_v2, %v2354_v36  ;;  %v5730_v2 = vld [vmem:[#allocation168_spill] sm:$0xff] }
 0x32b   :  { %v2518_v29 = vadd.f32 %v4932_v35, %v2360_v47  ;;  %v1982_v22 = vpop.f32.mrf.mxu2  ;;  %v2031_v56 = vpop.f32.mrf.mxu3  ;;  %v1317_v7 = vadd.f32 %v5730_v2, %v5729_v14  ;;  %v5735_v47 = vld [vmem:[#allocation64_spill] sm:$0xff] }
 0x32c   :  { %v2565_v11 = vadd.f32 %v2549_v0, %v2355_v53  ;;  %v2088_v19 = vadd.f32 %v1982_v22, %v1315_v21  ;;  %v2089_v57 = vadd.f32 %v2031_v56, %v1364_v48  ;;  %v1886_v10 = vpop.f32.mrf.mxu0  ;;  %v1935_v61 = vpop.f32.mrf.mxu1  ;;  %v2583_v17 = vadd.f32 %v2582_v59, %v2581_v30 }
 0x32d   :  { %v2534_v62 = vadd.f32 %v2518_v29, %v2361_v23  ;;  %v2094_v28 = vadd.f32 %v1886_v10, %v1219_v54  ;;  %v2095_v49 = vadd.f32 %v1935_v61, %v1268_v33  ;;  %v1222_v21 = vadd.f32 %v5734_v46, %v5733_v38 }
 0x32e   :  { %v2586_v63 = vrot.slane %v2565_v11, 4  ;;  %v2234_v40 = vadd.f32 %v5165_v1, %v2088_v19  ;;  %v2235_v25 = vadd.f32 %v5168_v50, %v2089_v57  ;;  %v2584_v15 = vrot.slane %v2583_v17, 1 }
 0x32f   :  { %v2240_v41 = vadd.f32 %v5149_v31, %v2094_v28  ;;  %v2241_v35 = vadd.f32 %v5152_v42, %v2095_v49  ;;  %v1271_v27 = vadd.f32 %v5736_v20, %v5735_v47  ;;  %v5738_v28 = vld [vmem:[#allocation172_spill] sm:$0xff] }
 0x330   :  { %v2587_v26 = vadd.f32 %v2586_v63, %v2565_v11  ;;  %v2362_v44 = vmax.f32 %v2234_v40, 0.0  ;;  %v2363_v36 = vmax.f32 %v2235_v25, 0.0  ;;  %v2585_v29 = vadd.f32 %v2584_v15, %v2583_v17  ;;  %v5739_v17 = vld [vmem:[#allocation66_spill] sm:$0xff] }
 0x331   :  { %v2368_v13 = vmax.f32 %v2240_v41, 0.0  ;;  %v2369_v59 = vmax.f32 %v2241_v35, 0.0  ;;  %v5740_v41 = vld [vmem:[#allocation173_spill] sm:$0xff] }
 0x332   :  { %v2588_v3 = vrot.slane %v2587_v26, 2  ;;  %v2550_v30 = vadd.f32 %v2534_v62, %v2362_v44  ;;  %v5737_v62 = vld [vmem:[#allocation65_spill] sm:$0xff]  ;;  %v1369_v35 = vadd.f32 %v5740_v41, %v5739_v17  ;;  %v5749_v17 = vld [vmem:[#allocation71_spill] sm:$0xff]  ;;  %v5750_v41 = vld [vmem:[#allocation178_spill] sm:$0xff] }
 0x333   :  { %v2519_v48 = vadd.f32 %v4954_v9, %v2368_v13  ;;  %v1984_v0 = vpop.f32.mrf.mxu2  ;;  %v2033_v53 = vpop.f32.mrf.mxu3  ;;  %v1320_v49 = vadd.f32 %v5738_v28, %v5737_v62  ;;  %v5741_v13 = vld [vmem:[#allocation67_spill] sm:$0xff] }
 0x334   :  { %v2589_v4 = vadd.f32 %v2588_v3, %v2587_v26  ;;  %v2566_v24 = vadd.f32 %v2550_v30, %v2363_v36  ;;  %v2096_v54 = vadd.f32 %v1984_v0, %v1317_v7  ;;  %v2097_v52 = vadd.f32 %v2033_v53, %v1366_v60  ;;  %v1889_v12 = vpop.f32.mrf.mxu0  ;;  %v1938_v33 = vpop.f32.mrf.mxu1  ;;  %v5743_v60 = vld [vmem:[#allocation68_spill] sm:$0xff]  ;;  %v5744_v3 = vld [vmem:[#allocation175_spill] sm:$0xff] }
 0x335   :  { %v2535_v23 = vadd.f32 %v2519_v48, %v2369_v59  ;;  %v2102_v22 = vadd.f32 %v1889_v12, %v1222_v21  ;;  %v2103_v56 = vadd.f32 %v1938_v33, %v1271_v27  ;;  %v2676_v26 = vmul.f32 0.015625, %v2585_v29 }
 0x336   :  { %v2590_v11 = vrot.slane %v2589_v4, 1  ;;  %v2592_v19 = vrot.slane %v2566_v24, 4  ;;  %v2242_v57 = vadd.f32 %v5165_v1, %v2096_v54  ;;  %v2243_v10 = vadd.f32 %v5168_v50, %v2097_v52 }
 0x337   :  { %v2248_v9 = vadd.f32 %v5149_v31, %v2102_v22  ;;  %v2249_v61 = vadd.f32 %v5152_v42, %v2103_v56  ;;  %v1224_v34 = vadd.f32 %v5742_v43, %v5741_v13  ;;  %v1273_v30 = vadd.f32 %v5744_v3, %v5743_v60 }
 0x338   :  { %v2591_v63 = vadd.f32 %v2590_v11, %v2589_v4  ;;  %v2593_v40 = vadd.f32 %v2592_v19, %v2566_v24  ;;  %v2370_v25 = vmax.f32 %v2242_v57, 0.0  ;;  %v2371_v15 = vmax.f32 %v2243_v10, 0.0  ;;  %v5745_v19 = vld [vmem:[#allocation69_spill] sm:$0xff]  ;;  %v5746_v57 = vld [vmem:[#allocation176_spill] sm:$0xff] }
 0x339   :  { %v2376_v44 = vmax.f32 %v2248_v9, 0.0  ;;  %v2377_v38 = vmax.f32 %v2249_v61, 0.0  ;;  %v1322_v10 = vadd.f32 %v5746_v57, %v5745_v19  ;;  %v5747_v9 = vld [vmem:[#allocation70_spill] sm:$0xff]  ;;  %v5748_v61 = vld [vmem:[#allocation177_spill] sm:$0xff]  ;;  %v5757_v57 = vld [vmem:[#allocation75_spill] sm:$0xff] }
 0x33a   :  { %v2677_v14 = vmul.f32 0.015625, %v2591_v63  ;;  %v2594_v2 = vrot.slane %v2593_v40, 2  ;;  %v2551_v7 = vadd.f32 %v2535_v23, %v2370_v25  ;;  %v1371_v62 = vadd.f32 %v5748_v61, %v5747_v9  ;;  %v5759_v61 = vld [vmem:[#allocation76_spill] sm:$0xff] }
 0x33b   :  { %v2520_v36 = vadd.f32 %v4968_v37, %v2376_v44  ;;  %v1987_v46 = vpop.f32.mrf.mxu2  ;;  %v2036_v21 = vpop.f32.mrf.mxu3  ;;  %v5752_v44 = vld [vmem:[#allocation179_spill] sm:$0xff] }
 0x33c   :  { %v2709_v47 = vsel %vm2708_vm8, %v2677_v14, %v2676_v26  ;;  %v2595_v20 = vadd.f32 %v2594_v2, %v2593_v40  ;;  %v2567_v27 = vadd.f32 %v2551_v7, %v2371_v15  ;;  %v2104_v48 = vadd.f32 %v1987_v46, %v1320_v49  ;;  %v1891_v59 = vpop.f32.mrf.mxu0  ;;  %v1940_v0 = vpop.f32.mrf.mxu1  ;;  %v5751_v26 = vld [vmem:[#allocation72_spill] sm:$0xff] }
 0x33d   :  { %v2536_v53 = vadd.f32 %v2520_v36, %v2377_v38  ;;  %v2105_v4 = vadd.f32 %v2036_v21, %v1369_v35  ;;  %v2110_v24 = vadd.f32 %v1891_v59, %v1224_v34  ;;  %v2111_v54 = vadd.f32 %v1940_v0, %v1273_v30 }
 0x33e   :  { %v2596_v52 = vrot.slane %v2595_v20, 1  ;;  %v2598_v12 = vrot.slane %v2567_v27, 4  ;;  %v2250_v33 = vadd.f32 %v5165_v1, %v2104_v48  ;;  %v1227_v35 = vadd.f32 %v5750_v41, %v5749_v17 }
 0x33f   :  { %v2251_v37 = vadd.f32 %v5168_v50, %v2105_v4  ;;  %v2256_v29 = vadd.f32 %v5149_v31, %v2110_v24  ;;  %v2257_v23 = vadd.f32 %v5152_v42, %v2111_v54  ;;  %v1276_v14 = vadd.f32 %v5752_v44, %v5751_v26  ;;  %v5753_v54 = vld [vmem:[#allocation73_spill] sm:$0xff] }
 0x340   :  { %v2597_v22 = vadd.f32 %v2596_v52, %v2595_v20  ;;  %v2599_v56 = vadd.f32 %v2598_v12, %v2567_v27  ;;  %v2378_v11 = vmax.f32 %v2250_v33, 0.0  ;;  %v5754_v52 = vld [vmem:[#allocation180_spill] sm:$0xff]  ;;  %v5755_v33 = vld [vmem:[#allocation74_spill] sm:$0xff] }
 0x341   :  { %v2384_v28 = vmax.f32 %v2256_v29, 0.0  ;;  %v2379_v25 = vmax.f32 %v2251_v37, 0.0  ;;  %v2385_v7 = vmax.f32 %v2257_v23, 0.0  ;;  %v1325_v12 = vadd.f32 %v5754_v52, %v5753_v54  ;;  %v5756_v37 = vld [vmem:[#allocation181_spill] sm:$0xff]  ;;  %v5765_v54 = vld [vmem:[#allocation79_spill] sm:$0xff]  ;;  %v5766_v52 = vld [vmem:[#allocation186_spill] sm:$0xff] }
 0x342   :  { %v2678_v49 = vmul.f32 0.015625, %v2597_v22  ;;  %v2600_v63 = vrot.slane %v2599_v56, 2  ;;  %v2552_v40 = vadd.f32 %v2536_v53, %v2378_v11  ;;  %v1374_v29 = vadd.f32 %v5756_v37, %v5755_v33  ;;  %v5767_v33 = vld [vmem:[#allocation80_spill] sm:$0xff]  ;;  %v5768_v37 = vld [vmem:[#allocation187_spill] sm:$0xff] }
 0x343   :  { %v2521_v2 = vadd.f32 %v4990_v6, %v2384_v28  ;;  %v1989_v15 = vpop.f32.mrf.mxu2  ;;  %v2038_v13 = vpop.f32.mrf.mxu3 }
 0x344   :  { %v2711_v43 = vsel %vm2710_vm9, %v2678_v49, %v2709_v47  ;;  %v2601_v34 = vadd.f32 %v2600_v63, %v2599_v56  ;;  %v2568_v60 = vadd.f32 %v2552_v40, %v2379_v25  ;;  %v2112_v3 = vadd.f32 %v1989_v15, %v1322_v10  ;;  %v1894_v30 = vpop.f32.mrf.mxu0  ;;  %v1943_v36 = vpop.f32.mrf.mxu1  ;;  %v5758_v10 = vld [vmem:[#allocation182_spill] sm:$0xff] }
 0x345   :  { %v2537_v38 = vadd.f32 %v2521_v2, %v2385_v7  ;;  %v2113_v46 = vadd.f32 %v2038_v13, %v1371_v62  ;;  %v2118_v21 = vadd.f32 %v1894_v30, %v1227_v35  ;;  %v2119_v20 = vadd.f32 %v1943_v36, %v1276_v14  ;;  %v5760_v62 = vld [vmem:[#allocation183_spill] sm:$0xff] }
 0x346   :  { %v2602_v27 = vrot.slane %v2601_v34, 1  ;;  %v2604_v48 = vrot.slane %v2568_v60, 4  ;;  %v2258_v59 = vadd.f32 %v5165_v1, %v2112_v3  ;;  %v1229_v9 = vadd.f32 %v5758_v10, %v5757_v57 }
 0x347   :  { %v2259_v6 = vadd.f32 %v5168_v50, %v2113_v46  ;;  %v2264_v0 = vadd.f32 %v5149_v31, %v2118_v21  ;;  %v2265_v53 = vadd.f32 %v5152_v42, %v2119_v20  ;;  %v1278_v28 = vadd.f32 %v5760_v62, %v5759_v61  ;;  %v5761_v21 = vld [vmem:[#allocation77_spill] sm:$0xff]  ;;  %v5762_v20 = vld [vmem:[#allocation184_spill] sm:$0xff] }
 0x348   :  { %v2603_v47 = vadd.f32 %v2602_v27, %v2601_v34  ;;  %v2605_v4 = vadd.f32 %v2604_v48, %v2568_v60  ;;  %v2386_v24 = vmax.f32 %v2258_v59, 0.0  ;;  %v1327_v27 = vadd.f32 %v5762_v20, %v5761_v21  ;;  %v5763_v48 = vld [vmem:[#allocation78_spill] sm:$0xff]  ;;  %v5764_v59 = vld [vmem:[#allocation185_spill] sm:$0xff] }
 0x349   :  { %v2392_v23 = vmax.f32 %v2264_v0, 0.0  ;;  %v2387_v19 = vmax.f32 %v2259_v6, 0.0  ;;  %v2393_v63 = vmax.f32 %v2265_v53, 0.0  ;;  %v1376_v6 = vadd.f32 %v5764_v59, %v5763_v48  ;;  %v5774_v21 = vld [vmem:[#allocation190_spill] sm:$0xff]  ;;  %v5776_v48 = vld [vmem:[#allocation191_spill] sm:$0xff] }
 0x34a   :  { %v2679_v22 = vmul.f32 0.015625, %v2603_v47  ;;  %v2606_v56 = vrot.slane %v2605_v4, 2  ;;  %v2553_v11 = vadd.f32 %v2537_v38, %v2386_v24 }
 0x34b   :  { %v2522_v49 = vadd.f32 %v5004_v18, %v2392_v23  ;;  %v1992_v40 = vpop.f32.mrf.mxu2  ;;  %v2041_v25 = vpop.f32.mrf.mxu3 }
 0x34c   :  { %v2713_v17 = vsel %vm2712_vm10, %v2679_v22, %v2711_v43  ;;  %v2607_v41 = vadd.f32 %v2606_v56, %v2605_v4  ;;  %v2569_v35 = vadd.f32 %v2553_v11, %v2387_v19  ;;  %v2120_v26 = vadd.f32 %v1992_v40, %v1325_v12  ;;  %v1896_v44 = vpop.f32.mrf.mxu0  ;;  %v1945_v14 = vpop.f32.mrf.mxu1 }
 0x34d   :  { %v2538_v2 = vadd.f32 %v2522_v49, %v2393_v63  ;;  %v2121_v7 = vadd.f32 %v2041_v25, %v1374_v29  ;;  %v2126_v15 = vadd.f32 %v1896_v44, %v1229_v9  ;;  %v2127_v13 = vadd.f32 %v1945_v14, %v1278_v28 }
 0x34e   :  { %v2608_v34 = vrot.slane %v2607_v41, 1  ;;  %v2610_v60 = vrot.slane %v2569_v35, 4  ;;  %v2266_v3 = vadd.f32 %v5165_v1, %v2120_v26  ;;  %v1232_v12 = vadd.f32 %v5766_v52, %v5765_v54 }
 0x34f   :  { %v2267_v18 = vadd.f32 %v5168_v50, %v2121_v7  ;;  %v2272_v30 = vadd.f32 %v5149_v31, %v2126_v15  ;;  %v2273_v36 = vadd.f32 %v5152_v42, %v2127_v13  ;;  %v1281_v29 = vadd.f32 %v5768_v37, %v5767_v33  ;;  %v5769_v7 = vld [vmem:[#allocation81_spill] sm:$0xff]  ;;  %v5770_v15 = vld [vmem:[#allocation188_spill] sm:$0xff] }
 0x350   :  { %v2609_v43 = vadd.f32 %v2608_v34, %v2607_v41  ;;  %v2611_v38 = vadd.f32 %v2610_v60, %v2569_v35  ;;  %v2394_v46 = vmax.f32 %v2266_v3, 0.0  ;;  %v1330_v13 = vadd.f32 %v5770_v15, %v5769_v7  ;;  %v5771_v34 = vld [vmem:[#allocation82_spill] sm:$0xff]  ;;  %v5772_v60 = vld [vmem:[#allocation189_spill] sm:$0xff]  ;;  %v5783_v15 = vld [vmem:[#allocation88_spill] sm:$0xff] }
 0x351   :  { %v2400_v0 = vmax.f32 %v2272_v30, 0.0  ;;  %v2395_v24 = vmax.f32 %v2267_v18, 0.0  ;;  %v2401_v22 = vmax.f32 %v2273_v36, 0.0  ;;  %v1379_v3 = vadd.f32 %v5772_v60, %v5771_v34 }
 0x352   :  { %v2680_v53 = vmul.f32 0.015625, %v2609_v43  ;;  %v2612_v47 = vrot.slane %v2611_v38, 2  ;;  %v2554_v4 = vadd.f32 %v2538_v2, %v2394_v46  ;;  %v5773_v46 = vld [vmem:[#allocation83_spill] sm:$0xff] }
 0x353   :  { %v2523_v23 = vadd.f32 %v5026_v8, %v2400_v0  ;;  %v1994_v56 = vpop.f32.mrf.mxu2  ;;  %v2043_v11 = vpop.f32.mrf.mxu3  ;;  %v1234_v20 = vadd.f32 %v5774_v21, %v5773_v46 }
 0x354   :  { %v2715_v19 = vsel %vm2714_vm11, %v2680_v53, %v2713_v17  ;;  %v2613_v57 = vadd.f32 %v2612_v47, %v2611_v38  ;;  %v2570_v10 = vadd.f32 %v2554_v4, %v2395_v24  ;;  %v2128_v9 = vadd.f32 %v1994_v56, %v1327_v27  ;;  %v1899_v61 = vpop.f32.mrf.mxu0  ;;  %v1948_v62 = vpop.f32.mrf.mxu1  ;;  %v5775_v27 = vld [vmem:[#allocation84_spill] sm:$0xff] }
 0x355   :  { %v2539_v28 = vadd.f32 %v2523_v23, %v2401_v22  ;;  %v2129_v49 = vadd.f32 %v2043_v11, %v1376_v6  ;;  %v2134_v63 = vadd.f32 %v1899_v61, %v1232_v12  ;;  %v2135_v40 = vadd.f32 %v1948_v62, %v1281_v29 }
 0x356   :  { %v2614_v25 = vrot.slane %v2613_v57, 1  ;;  %v2616_v41 = vrot.slane %v2570_v10, 4  ;;  %v2274_v35 = vadd.f32 %v5165_v1, %v2128_v9  ;;  %v1283_v59 = vadd.f32 %v5776_v48, %v5775_v27 }
 0x357   :  { %v2275_v8 = vadd.f32 %v5168_v50, %v2129_v49  ;;  %v2280_v26 = vadd.f32 %v5149_v31, %v2134_v63  ;;  %v2281_v44 = vadd.f32 %v5152_v42, %v2135_v40  ;;  %v5778_v49 = vld [vmem:[#allocation192_spill] sm:$0xff]  ;;  %v5779_v40 = vld [vmem:[#allocation86_spill] sm:$0xff] }
 0x358   :  { %v2615_v17 = vadd.f32 %v2614_v25, %v2613_v57  ;;  %v2617_v14 = vadd.f32 %v2616_v41, %v2570_v10  ;;  %v2402_v2 = vmax.f32 %v2274_v35, 0.0  ;;  %v5780_v25 = vld [vmem:[#allocation193_spill] sm:$0xff] }
 0x359   :  { %v2408_v18 = vmax.f32 %v2280_v26, 0.0  ;;  %v2403_v38 = vmax.f32 %v2275_v8, 0.0  ;;  %v2409_v0 = vmax.f32 %v2281_v44, 0.0  ;;  %v1381_v41 = vadd.f32 %v5780_v25, %v5779_v40 }
 0x35a   :  { %v2681_v30 = vmul.f32 0.015625, %v2615_v17  ;;  %v2618_v36 = vrot.slane %v2617_v14, 2  ;;  %v2555_v43 = vadd.f32 %v2539_v28, %v2402_v2  ;;  %v5777_v28 = vld [vmem:[#allocation85_spill] sm:$0xff]  ;;  %v5782_v2 = vld [vmem:[#allocation195_spill] sm:$0xff] }
 0x35b   :  { %v2524_v6 = vadd.f32 %v5040_v55, %v2408_v18  ;;  %v1997_v53 = vpop.f32.mrf.mxu2  ;;  %v2046_v47 = vpop.f32.mrf.mxu3  ;;  %v1332_v63 = vadd.f32 %v5778_v49, %v5777_v28  ;;  %v5791_v28 = vld [vmem:[#allocation92_spill] sm:$0xff] }
 0x35c   :  { %v2717_v4 = vsel %vm2716_vm12, %v2681_v30, %v2715_v19  ;;  %v2619_v24 = vadd.f32 %v2618_v36, %v2617_v14  ;;  %v2571_v54 = vadd.f32 %v2555_v43, %v2403_v38  ;;  %v2136_v52 = vadd.f32 %v1997_v53, %v1330_v13  ;;  %v1901_v12 = vpop.f32.mrf.mxu0  ;;  %v1950_v33 = vpop.f32.mrf.mxu1  ;;  %v5781_v14 = vld [vmem:[#allocation87_spill] sm:$0xff]  ;;  %v5784_v13 = vld [vmem:[#allocation196_spill] sm:$0xff] }
 0x35d   :  { %v2540_v37 = vadd.f32 %v2524_v6, %v2409_v0  ;;  %v2137_v29 = vadd.f32 %v2046_v47, %v1379_v3  ;;  %v2142_v23 = vadd.f32 %v1901_v12, %v1234_v20  ;;  %v2143_v22 = vadd.f32 %v1950_v33, %v1283_v59  ;;  %v5792_v49 = vld [vmem:[#allocation200_spill] sm:$0xff] }
 0x35e   :  { %v2620_v56 = vrot.slane %v2619_v24, 1  ;;  %v2622_v11 = vrot.slane %v2571_v54, 4  ;;  %v2282_v57 = vadd.f32 %v5165_v1, %v2136_v52  ;;  %v1237_v7 = vadd.f32 %v5782_v2, %v5781_v14 }
 0x35f   :  { %v2283_v55 = vadd.f32 %v5168_v50, %v2137_v29  ;;  %v2288_v10 = vadd.f32 %v5149_v31, %v2142_v23  ;;  %v2289_v9 = vadd.f32 %v5152_v42, %v2143_v22  ;;  %v1286_v34 = vadd.f32 %v5784_v13, %v5783_v15  ;;  %v5786_v29 = vld [vmem:[#allocation197_spill] sm:$0xff]  ;;  %v5787_v22 = vld [vmem:[#allocation90_spill] sm:$0xff] }
 0x360   :  { %v2621_v19 = vadd.f32 %v2620_v56, %v2619_v24  ;;  %v2623_v61 = vadd.f32 %v2622_v11, %v2571_v54  ;;  %v2410_v62 = vmax.f32 %v2282_v57, 0.0  ;;  %v5788_v56 = vld [vmem:[#allocation198_spill] sm:$0xff] }
 0x361   :  { %v2416_v35 = vmax.f32 %v2288_v10, 0.0  ;;  %v2411_v17 = vmax.f32 %v2283_v55, 0.0  ;;  %v2417_v3 = vmax.f32 %v2289_v9, 0.0  ;;  %v1384_v11 = vadd.f32 %v5788_v56, %v5787_v22 }
 0x362   :  { %v2682_v8 = vmul.f32 0.015625, %v2621_v19  ;;  %v2624_v26 = vrot.slane %v2623_v61, 2  ;;  %v2556_v44 = vadd.f32 %v2540_v37, %v2410_v62  ;;  %v5785_v37 = vld [vmem:[#allocation89_spill] sm:$0xff]  ;;  %v5789_v19 = vld [vmem:[#allocation91_spill] sm:$0xff] }
 0x363   :  { %v2525_v60 = vadd.f32 %v5062_v45, %v2416_v35  ;;  %v1999_v18 = vpop.f32.mrf.mxu2  ;;  %v2048_v30 = vpop.f32.mrf.mxu3  ;;  %v1335_v23 = vadd.f32 %v5786_v29, %v5785_v37 }
 0x364   :  { %v2625_v36 = vadd.f32 %v2624_v26, %v2623_v61  ;;  %v2572_v43 = vadd.f32 %v2556_v44, %v2411_v17  ;;  %v2144_v38 = vadd.f32 %v1999_v18, %v1332_v63  ;;  %v2145_v46 = vadd.f32 %v2048_v30, %v1381_v41  ;;  %v1904_v21 = vpop.f32.mrf.mxu0  ;;  %v1953_v20 = vpop.f32.mrf.mxu1  ;;  %v5790_v61 = vld [vmem:[#allocation199_spill] sm:$0xff] }
 0x365   :  { %v2541_v27 = vadd.f32 %v2525_v60, %v2417_v3  ;;  %v2150_v48 = vadd.f32 %v1904_v21, %v1237_v7  ;;  %v2151_v59 = vadd.f32 %v1953_v20, %v1286_v34  ;;  %v2719_v6 = vsel %vm2718_vm13, %v2682_v8, %v2717_v4 }
 0x366   :  { %v2626_v0 = vrot.slane %v2625_v36, 1  ;;  %v2628_v53 = vrot.slane %v2572_v43, 4  ;;  %v2290_v47 = vadd.f32 %v5165_v1, %v2144_v38  ;;  %v2291_v45 = vadd.f32 %v5168_v50, %v2145_v46  ;;  %v5793_v38 = vld [vmem:[#allocation93_spill] sm:$0xff] }
 0x367   :  { %v2296_v24 = vadd.f32 %v5149_v31, %v2150_v48  ;;  %v2297_v54 = vadd.f32 %v5152_v42, %v2151_v59  ;;  %v1239_v62 = vadd.f32 %v5790_v61, %v5789_v19  ;;  %v1288_v63 = vadd.f32 %v5792_v49, %v5791_v28  ;;  %v5794_v46 = vld [vmem:[#allocation201_spill] sm:$0xff]  ;;  %v5795_v48 = vld [vmem:[#allocation94_spill] sm:$0xff] }
 0x368   :  { %v2627_v52 = vadd.f32 %v2626_v0, %v2625_v36  ;;  %v2629_v12 = vadd.f32 %v2628_v53, %v2572_v43  ;;  %v2418_v33 = vmax.f32 %v2290_v47, 0.0  ;;  %v2419_v9 = vmax.f32 %v2291_v45, 0.0  ;;  %v5796_v59 = vld [vmem:[#allocation202_spill] sm:$0xff]  ;;  %v5797_v45 = vld [vmem:[#allocation95_spill] sm:$0xff] }
 0x369   :  { %v2424_v4 = vmax.f32 %v2296_v24, 0.0  ;;  %v2425_v25 = vmax.f32 %v2297_v54, 0.0  ;;  %v1337_v21 = vadd.f32 %v5794_v46, %v5793_v38  ;;  %v5798_v24 = vld [vmem:[#allocation204_spill] sm:$0xff]  ;;  %v5808_v38 = vld [vmem:[#allocation209_spill] sm:$0xff] }
 0x36a   :  { %v2683_v57 = vmul.f32 0.015625, %v2627_v52  ;;  %v2630_v55 = vrot.slane %v2629_v12, 2  ;;  %v2557_v10 = vadd.f32 %v2541_v27, %v2418_v33  ;;  %v1242_v54 = vadd.f32 %v5798_v24, %v5797_v45  ;;  %v5799_v52 = vld [vmem:[#allocation96_spill] sm:$0xff] }
 0x36b   :  { %v2526_v40 = vadd.f32 %v5076_v39, %v2424_v4  ;;  %v2002_v41 = vpop.f32.mrf.mxu2  ;;  %v2051_v35 = vpop.f32.mrf.mxu3 }
 0x36c   :  { %v2631_v8 = vadd.f32 %v2630_v55, %v2629_v12  ;;  %v2573_v26 = vadd.f32 %v2557_v10, %v2419_v9  ;;  %v2152_v44 = vadd.f32 %v2002_v41, %v1335_v23  ;;  %v2153_v17 = vadd.f32 %v2051_v35, %v1384_v11  ;;  %v1906_v14 = vpop.f32.mrf.mxu0  ;;  %v1955_v2 = vpop.f32.mrf.mxu1  ;;  %v5800_v12 = vld [vmem:[#allocation205_spill] sm:$0xff] }
 0x36d   :  { %v2542_v7 = vadd.f32 %v2526_v40, %v2425_v25  ;;  %v2158_v15 = vadd.f32 %v1906_v14, %v1239_v62  ;;  %v2159_v13 = vadd.f32 %v1955_v2, %v1288_v63  ;;  %v2721_v34 = vsel %vm2720_vm14, %v2683_v57, %v2719_v6  ;;  %v5804_v2 = vld [vmem:[#allocation207_spill] sm:$0xff] }
 0x36e   :  { %v2634_v60 = vrot.slane %v2573_v26, 4  ;;  %v2298_v3 = vadd.f32 %v5165_v1, %v2152_v44  ;;  %v2299_v18 = vadd.f32 %v5168_v50, %v2153_v17  ;;  %2731 = vst [vmem:[#allocation2] sm:$0xff] %v2721_v34  ;;  %v2632_v20 = vrot.slane %v2631_v8, 1  ;;  %v5801_v44 = vld [vmem:[#allocation97_spill] sm:$0xff]  ;;  %v5802_v17 = vld [vmem:[#allocation206_spill] sm:$0xff] }
 0x36f   :  { %v2304_v39 = vadd.f32 %v5149_v31, %v2158_v15  ;;  %v2305_v30 = vadd.f32 %v5152_v42, %v2159_v13  ;;  %v1386_v6 = vadd.f32 %v5796_v59, %v5795_v48  ;;  %v1291_v33 = vadd.f32 %v5800_v12, %v5799_v52 }
 0x370   :  { %v2635_v36 = vadd.f32 %v2634_v60, %v2573_v26  ;;  %v2426_v43 = vmax.f32 %v2298_v3, 0.0  ;;  %v2427_v47 = vmax.f32 %v2299_v18, 0.0  ;;  %v2633_v9 = vadd.f32 %v2632_v20, %v2631_v8  ;;  %v5803_v8 = vld [vmem:[#allocation98_spill] sm:$0xff] }
 0x371   :  { %v2432_v27 = vmax.f32 %v2304_v39, 0.0  ;;  %v2433_v29 = vmax.f32 %v2305_v30, 0.0  ;;  %v1340_v14 = vadd.f32 %v5802_v17, %v5801_v44  ;;  %v5805_v39 = vld [vmem:[#allocation99_spill] sm:$0xff]  ;;  %v5806_v30 = vld [vmem:[#allocation208_spill] sm:$0xff] }
 0x372   :  { %v2636_v0 = vrot.slane %v2635_v36, 2  ;;  %v2558_v53 = vadd.f32 %v2542_v7, %v2426_v43  ;;  %v1389_v7 = vadd.f32 %v5804_v2, %v5803_v8  ;;  %v2684_v15 = vmul.f32 0.015625, %v2633_v9  ;;  %v5807_v43 = vld [vmem:[#allocation100_spill] sm:$0xff]  ;;  %v5811_v9 = vld [vmem:[#allocation102_spill] sm:$0xff] }
 0x373   :  { %v2527_v37 = vadd.f32 %v5098_v32, %v2432_v27  ;;  %v2004_v23 = vpop.f32.mrf.mxu2  ;;  %v2053_v22 = vpop.f32.mrf.mxu3  ;;  %v1293_v46 = vadd.f32 %v5808_v38, %v5807_v43 }
 0x374   :  { %v2637_v56 = vadd.f32 %v2636_v0, %v2635_v36  ;;  %v2574_v11 = vadd.f32 %v2558_v53, %v2427_v47  ;;  %v2160_v4 = vadd.f32 %v2004_v23, %v1337_v21  ;;  %v2161_v57 = vadd.f32 %v2053_v22, %v1386_v6  ;;  %v1909_v55 = vpop.f32.mrf.mxu0  ;;  %v1958_v10 = vpop.f32.mrf.mxu1 }
 0x375   :  { %v2543_v19 = vadd.f32 %v2527_v37, %v2433_v29  ;;  %v2166_v61 = vadd.f32 %v1909_v55, %v1242_v54  ;;  %v2167_v62 = vadd.f32 %v1958_v10, %v1291_v33  ;;  %v1244_v36 = vadd.f32 %v5806_v30, %v5805_v39  ;;  %v5810_v55 = vld [vmem:[#allocation210_spill] sm:$0xff] }
 0x376   :  { %v2638_v28 = vrot.slane %v2637_v56, 1  ;;  %v2640_v49 = vrot.slane %v2574_v11, 4  ;;  %v2306_v63 = vadd.f32 %v5165_v1, %v2160_v4  ;;  %v2307_v40 = vadd.f32 %v5168_v50, %v2161_v57  ;;  %v5809_v57 = vld [vmem:[#allocation101_spill] sm:$0xff] }
 0x377   :  { %v2312_v32 = vadd.f32 %v5149_v31, %v2166_v61  ;;  %v2313_v25 = vadd.f32 %v5152_v42, %v2167_v62  ;;  %v1342_v10 = vadd.f32 %v5810_v55, %v5809_v57 }
 0x378   :  { %v2639_v41 = vadd.f32 %v2638_v28, %v2637_v56  ;;  %v2641_v35 = vadd.f32 %v2640_v49, %v2574_v11  ;;  %v2434_v26 = vmax.f32 %v2306_v63, 0.0  ;;  %v2435_v18 = vmax.f32 %v2307_v40, 0.0 }
 0x379   :  { %v2440_v13 = vmax.f32 %v2312_v32, 0.0  ;;  %v2441_v20 = vmax.f32 %v2313_v25, 0.0  ;;  %v5813_v32 = vld [vmem:[#allocation103_spill] sm:$0xff]  ;;  %v5814_v25 = vld [vmem:[#allocation212_spill] sm:$0xff] }
 0x37a   :  { %v2685_v34 = vmul.f32 0.015625, %v2639_v41  ;;  %v2642_v60 = vrot.slane %v2641_v35, 2  ;;  %v2559_v3 = vadd.f32 %v2543_v19, %v2434_v26  ;;  %v5812_v19 = vld [vmem:[#allocation211_spill] sm:$0xff]  ;;  %v1247_v41 = vadd.f32 %v5814_v25, %v5813_v32  ;;  %v5816_v26 = vld [vmem:[#allocation213_spill] sm:$0xff] }
 0x37b   :  { %v2528_v21 = vadd.f32 %v5112_v51, %v2440_v13  ;;  %v2007_v27 = vpop.f32.mrf.mxu2  ;;  %v2056_v48 = vpop.f32.mrf.mxu3  ;;  %v1391_v61 = vadd.f32 %v5812_v19, %v5811_v9 }
 0x37c   :  { %v2722_v59 = vsel %vm2708_vm8, %v2685_v34, %v2684_v15  ;;  %v2643_v6 = vadd.f32 %v2642_v60, %v2641_v35  ;;  %v2575_v0 = vadd.f32 %v2559_v3, %v2435_v18  ;;  %v2168_v53 = vadd.f32 %v2007_v27, %v1340_v14  ;;  %v1911_v47 = vpop.f32.mrf.mxu0  ;;  %v1960_v45 = vpop.f32.mrf.mxu1  ;;  %v5815_v35 = vld [vmem:[#allocation104_spill] sm:$0xff] }
 0x37d   :  { %v2544_v24 = vadd.f32 %v2528_v21, %v2441_v20  ;;  %v2169_v54 = vadd.f32 %v2056_v48, %v1389_v7  ;;  %v2174_v52 = vadd.f32 %v1911_v47, %v1244_v36  ;;  %v2175_v12 = vadd.f32 %v1960_v45, %v1293_v46  ;;  %v5819_v47 = vld [vmem:[#allocation106_spill] sm:$0xff]  ;;  %v5820_v45 = vld [vmem:[#allocation215_spill] sm:$0xff] }
 0x37e   :  { %v2644_v33 = vrot.slane %v2643_v6, 1  ;;  %v2646_v37 = vrot.slane %v2575_v0, 4  ;;  %v2314_v29 = vadd.f32 %v5165_v1, %v2168_v53  ;;  %v1296_v44 = vadd.f32 %v5816_v26, %v5815_v35 }
 0x37f   :  { %v2315_v51 = vadd.f32 %v5168_v50, %v2169_v54  ;;  %v2320_v23 = vadd.f32 %v5149_v31, %v2174_v52  ;;  %v2321_v22 = vadd.f32 %v5152_v42, %v2175_v12 }
 0x380   :  { %v2645_v56 = vadd.f32 %v2644_v33, %v2643_v6  ;;  %v2647_v11 = vadd.f32 %v2646_v37, %v2575_v0  ;;  %v2442_v4 = vmax.f32 %v2314_v29, 0.0  ;;  %v5817_v6 = vld [vmem:[#allocation105_spill] sm:$0xff]  ;;  %v5818_v0 = vld [vmem:[#allocation214_spill] sm:$0xff]  ;;  %v5821_v29 = vld [vmem:[#allocation107_spill] sm:$0xff] }
 0x381   :  { %v2448_v62 = vmax.f32 %v2320_v23, 0.0  ;;  %v2443_v40 = vmax.f32 %v2315_v51, 0.0  ;;  %v2449_v14 = vmax.f32 %v2321_v22, 0.0  ;;  %v1345_v53 = vadd.f32 %v5818_v0, %v5817_v6  ;;  %v5822_v51 = vld [vmem:[#allocation216_spill] sm:$0xff] }
 0x382   :  { %v2686_v28 = vmul.f32 0.015625, %v2645_v56  ;;  %v2648_v49 = vrot.slane %v2647_v11, 2  ;;  %v2560_v63 = vadd.f32 %v2544_v24, %v2442_v4  ;;  %v1394_v24 = vadd.f32 %v5820_v45, %v5819_v47  ;;  %v5823_v22 = vld [vmem:[#allocation108_spill] sm:$0xff]  ;;  %v5824_v56 = vld [vmem:[#allocation217_spill] sm:$0xff] }
 0x383   :  { %v2529_v17 = vadd.f32 %v5134_v16, %v2448_v62  ;;  %v2009_v8 = vpop.f32.mrf.mxu2  ;;  %v2058_v2 = vpop.f32.mrf.mxu3  ;;  %v1249_v23 = vadd.f32 %v5822_v51, %v5821_v29 }
 0x384   :  { %v2723_v7 = vsel %vm2710_vm9, %v2686_v28, %v2722_v59  ;;  %v2649_v15 = vadd.f32 %v2648_v49, %v2647_v11  ;;  %v2576_v13 = vadd.f32 %v2560_v63, %v2443_v40  ;;  %v2176_v34 = vadd.f32 %v2009_v8, %v1342_v10  ;;  %v1914_v60 = vpop.f32.mrf.mxu0  ;;  %v1963_v3 = vpop.f32.mrf.mxu1 }
 0x385   :  { %v2545_v18 = vadd.f32 %v2529_v17, %v2449_v14  ;;  %v2177_v39 = vadd.f32 %v2058_v2, %v1391_v61  ;;  %v2182_v30 = vadd.f32 %v1914_v60, %v1247_v41  ;;  %v2183_v36 = vadd.f32 %v1963_v3, %v1296_v44 }
 0x386   :  { %v2650_v43 = vrot.slane %v2649_v15, 1  ;;  %v2652_v38 = vrot.slane %v2576_v13, 4  ;;  %v2322_v46 = vadd.f32 %v5165_v1, %v2176_v34  ;;  %v1298_v11 = vadd.f32 %v5824_v56, %v5823_v22 }
 0x387   :  { %v2323_v16 = vadd.f32 %v5168_v50, %v2177_v39  ;;  %v2328_v21 = vadd.f32 %v5149_v31, %v2182_v30  ;;  %v2329_v20 = vadd.f32 %v5152_v42, %v2183_v36  ;;  %v5827_v30 = vld [vmem:[#allocation110_spill] sm:$0xff]  ;;  %v5828_v36 = vld [vmem:[#allocation219_spill] sm:$0xff] }
 0x388   :  { %v2651_v27 = vadd.f32 %v2650_v43, %v2649_v15  ;;  %v2653_v48 = vadd.f32 %v2652_v38, %v2576_v13  ;;  %v2450_v59 = vmax.f32 %v2322_v46, 0.0  ;;  %v5826_v15 = vld [vmem:[#allocation218_spill] sm:$0xff]  ;;  %v1396_v43 = vadd.f32 %v5828_v36, %v5827_v30 }
 0x389   :  { %v2456_v54 = vmax.f32 %v2328_v21, 0.0  ;;  %v2451_v37 = vmax.f32 %v2323_v16, 0.0  ;;  %v2457_v57 = vmax.f32 %v2329_v20, 0.0 }
 0x38a   :  { %v2687_v52 = vmul.f32 0.015625, %v2651_v27  ;;  %v2654_v12 = vrot.slane %v2653_v48, 2  ;;  %v2561_v33 = vadd.f32 %v2545_v18, %v2450_v59 }
 0x38b   :  { %v2530_v4 = vadd.f32 %v5154_v58, %v2456_v54  ;;  %v2012_v55 = vpop.f32.mrf.mxu2  ;;  %v2061_v10 = vpop.f32.mrf.mxu3 }
 0x38c   :  { %v2724_v9 = vsel %vm2712_vm10, %v2687_v52, %v2723_v7  ;;  %v2655_v19 = vadd.f32 %v2654_v12, %v2653_v48  ;;  %v2577_v61 = vadd.f32 %v2561_v33, %v2451_v37  ;;  %v2184_v62 = vadd.f32 %v2012_v55, %v1345_v53  ;;  %v1916_v28 = vpop.f32.mrf.mxu0  ;;  %v1965_v49 = vpop.f32.mrf.mxu1  ;;  %v5825_v7 = vld [vmem:[#allocation109_spill] sm:$0xff] }
 0x38d   :  { %v2546_v63 = vadd.f32 %v2530_v4, %v2457_v57  ;;  %v2185_v40 = vadd.f32 %v2061_v10, %v1394_v24  ;;  %v2190_v32 = vadd.f32 %v1916_v28, %v1249_v23  ;;  %v2191_v25 = vadd.f32 %v1965_v49, %v1298_v11 }
 0x38e   :  { %v2656_v41 = vrot.slane %v2655_v19, 1  ;;  %v2658_v35 = vrot.slane %v2577_v61, 4  ;;  %v2330_v26 = vadd.f32 %v5165_v1, %v2184_v62  ;;  %v1347_v13 = vadd.f32 %v5826_v15, %v5825_v7 }
 0x38f   :  { %v2331_v58 = vadd.f32 %v5168_v50, %v2185_v40  ;;  %v2336_v44 = vadd.f32 %v5149_v31, %v2190_v32  ;;  %v2337_v17 = vadd.f32 %v5152_v42, %v2191_v25 }
 0x390   :  { %v2657_v14 = vadd.f32 %v2656_v41, %v2655_v19  ;;  %v2659_v8 = vadd.f32 %v2658_v35, %v2577_v61  ;;  %v2458_v2 = vmax.f32 %v2330_v26, 0.0 }
 0x391   :  { %v2464_v34 = vmax.f32 %v2336_v44, 0.0  ;;  %v2459_v39 = vmax.f32 %v2331_v58, 0.0  ;;  %v2465_v46 = vmax.f32 %v2337_v17, 0.0 }
 0x392   :  { %v2688_v60 = vmul.f32 0.015625, %v2657_v14  ;;  %v2660_v3 = vrot.slane %v2659_v8, 2  ;;  %v2562_v18 = vadd.f32 %v2546_v63, %v2458_v2 }
 0x393   :  { %v2531_v38 = vadd.f32 %v5175_v5, %v2464_v34  ;;  %v2014_v31 = vpop.f32.mrf.mxu2  ;;  %v2063_v16 = vpop.f32.mrf.mxu3 }
 0x394   :  { %v2725_v42 = vsel %vm2714_vm11, %v2688_v60, %v2724_v9  ;;  %v2661_v21 = vadd.f32 %v2660_v3, %v2659_v8  ;;  %v2578_v20 = vadd.f32 %v2562_v18, %v2459_v39  ;;  %v2192_v27 = vadd.f32 %v2014_v31, %v1347_v13 }
 0x395   :  { %v2547_v48 = vadd.f32 %v2531_v38, %v2465_v46  ;;  %v2193_v59 = vadd.f32 %v2063_v16, %v1396_v43 }
 0x396   :  { %v2662_v6 = vrot.slane %v2661_v21, 1  ;;  %v2664_v0 = vrot.slane %v2578_v20, 4  ;;  %v2338_v53 = vadd.f32 %v5165_v1, %v2192_v27 }
 0x397   :  { %v2339_v47 = vadd.f32 %v5168_v50, %v2193_v59 }
 0x398   :  { %v2663_v45 = vadd.f32 %v2662_v6, %v2661_v21  ;;  %v2665_v24 = vadd.f32 %v2664_v0, %v2578_v20  ;;  %v2466_v54 = vmax.f32 %v2338_v53, 0.0 }
 0x399   :  { %v2467_v33 = vmax.f32 %v2339_v47, 0.0 }
 0x39a   :  { %v2689_v5 = vmul.f32 0.015625, %v2663_v45  ;;  %v2666_v52 = vrot.slane %v2665_v24, 2  ;;  %v2563_v12 = vadd.f32 %v2547_v48, %v2466_v54 }
 0x39c   :  { %v2726_v37 = vsel %vm2716_vm12, %v2689_v5, %v2725_v42  ;;  %v2667_v29 = vadd.f32 %v2666_v52, %v2665_v24  ;;  %v2579_v51 = vadd.f32 %v2563_v12, %v2467_v33 }
 0x39e   :  { %v2668_v23 = vrot.slane %v2667_v29, 1  ;;  %v2670_v22 = vrot.slane %v2579_v51, 4 }
 0x3a0   :  { %v2669_v56 = vadd.f32 %v2668_v23, %v2667_v29  ;;  %v2671_v11 = vadd.f32 %v2670_v22, %v2579_v51 }
 0x3a2   :  { %v2690_v4 = vmul.f32 0.015625, %v2669_v56  ;;  %v2672_v57 = vrot.slane %v2671_v11, 2 }
 0x3a4   :  { %v2673_v1 = vadd.f32 %v2672_v57, %v2671_v11  ;;  %v2727_v50 = vsel %vm2718_vm13, %v2690_v4, %v2726_v37 }
 0x3a6   :  { %v2674_v55 = vrot.slane %v2673_v1, 1 }
 0x3a8   :  { %v2675_v10 = vadd.f32 %v2674_v55, %v2673_v1 }
 0x3aa   :  { %v2691_v9 = vmul.f32 0.015625, %v2675_v10 }
 0x3ac   :  { %v2728_v19 = vsel %vm2720_vm14, %v2691_v9, %v2727_v50 }
 0x3ad   :  { %2732 = vst [vmem:[#allocation2 + $0x8] sm:$0xff] %v2728_v19 }
 0x3ae   :  { %2745 = dma.vmem_to_hbm [thread:$0]  %s2738_s12, 256, %s2740_s15, [#allocation3], %s3317_s16, %s3317_s16, %s3318_s17  }
 0x3af   :  { %3314 = dma.done.wait [#allocation3], 256  }
 0x3b0   :  { %3315 = vsyncadd [#allocation3], 4294967040 }
 0x3b1   :  { %2750 = vsyncpa [#allocation3], 1 }

</bundles_post_ra>
